<compile_context>
chip_gen: v7x
topology: tpu7x:2x2x1
jax: 0.10.0
libtpu: 0.0.40
codegen_flags: <defaults>
</compile_context>

<pallas_src>
import jax
import jax.numpy as jnp
from jax.experimental import pallas as pl
from jax.experimental.pallas import tpu as pltpu

INPUT_DIM = 516
HIDDEN = (512, 256, 256, 64)
OUT_DIM = 1
DEFAULT_TM = 1024


def _mlp_kernel(x_ref,
                w1_ref, b1_ref,
                w2_ref, b2_ref,
                w3_ref, b3_ref,
                w4_ref, b4_ref,
                w5_ref, b5_ref,
                o_ref):
    """Fused MLP forward for one tile of points: (tm, 516) bf16 -> (tm, 1) f32."""
    x = x_ref[...]                                   # (tm, 516) bf16

    # Layers 1-4: bf16 MXU matmuls, fp32 accumulation; bias + ReLU + the bf16
    # cast for the next layer fused into one VPU expression.
    h = jnp.maximum(
        jnp.dot(x, w1_ref[...], preferred_element_type=jnp.float32)
        + b1_ref[...], 0.0).astype(jnp.bfloat16)     # (tm, 512)
    h = jnp.maximum(
        jnp.dot(h, w2_ref[...], preferred_element_type=jnp.float32)
        + b2_ref[...], 0.0).astype(jnp.bfloat16)     # (tm, 256)
    h = jnp.maximum(
        jnp.dot(h, w3_ref[...], preferred_element_type=jnp.float32)
        + b3_ref[...], 0.0).astype(jnp.bfloat16)     # (tm, 256)
    h = jnp.maximum(
        jnp.dot(h, w4_ref[...], preferred_element_type=jnp.float32)
        + b4_ref[...], 0.0)                          # (tm, 64) fp32

    # Layer 5 (64 -> 1): multiply + lane reduce on VPU/XLU, no N=1 MXU pass.
    logits = jnp.sum(h * w5_ref[...], axis=-1, keepdims=True) + b5_ref[...]
    o_ref[...] = logits.astype(o_ref.dtype)


def _round_up(x, m):
    return ((x + m - 1) // m) * m


def _choose_tm(K, tm):
    # Single grid step for small K (the grid is a serial loop on single-TC
    # v5e/v6e, so forcing a split is pure overhead there).  Multiple-of-16
    # rows keeps bf16 sublane packing / (8,128) tiling happy.
    # TODO(synk): on v7x (2 TCs) a 256-row-aligned 2-way split of small K
    # could use both cores; gate on pltpu.get_tpu_info() if that case matters.
    return max(16, _round_up(min(tm, K), 16))


def _prepare_params(params):
    """Cast nn.Linear-style fp32 params into the kernel's layout/dtypes."""
    (w1, b1), (w2, b2), (w3, b3), (w4, b4), (w5, b5) = params
    return (
        w1.astype(jnp.bfloat16), b1.astype(jnp.float32),      # (516,512), (1,512)
        w2.astype(jnp.bfloat16), b2.astype(jnp.float32),
        w3.astype(jnp.bfloat16), b3.astype(jnp.float32),
        w4.astype(jnp.bfloat16), b4.astype(jnp.float32),
        w5.reshape(1, HIDDEN[-1]).astype(jnp.float32),         # (1, 64)  VPU layer
        b5.reshape(1, OUT_DIM).astype(jnp.float32),            # (1, 1)
    )


def point_head_forward(point_features, params, *, tm=DEFAULT_TM):
    """point_features: (K, 516) -> logits (K, 1) float32."""
    K, C = point_features.shape
    assert C == INPUT_DIM

    # bf16 point features halve the dominant HBM stream.  Ideally the
    # upstream point-sampling gather already emits bf16 (then this is a no-op).
    x = point_features.astype(jnp.bfloat16)

    tm = _choose_tm(K, tm)
    K_pad = _round_up(K, tm)
    if K_pad != K:
        x = jnp.pad(x, ((0, K_pad - K), (0, 0)))

    flat = _prepare_params(params)

    def full_spec(arr):
        # Weights / biases broadcast to every grid step (block index (0, 0)),
        # so they stay VMEM-resident across the whole grid.
        return pl.BlockSpec(arr.shape, lambda i: (0, 0))

    grid = (K_pad // tm,)
    in_specs = [pl.BlockSpec((tm, INPUT_DIM), lambda i: (i, 0))]   # x rows
    in_specs += [full_spec(p) for p in flat]
    out_spec = pl.BlockSpec((tm, OUT_DIM), lambda i: (i, 0))

    flops_per_row = 2 * (INPUT_DIM * 512 + 512 * 256 + 256 * 256 + 256 * 64 + 64)
    param_bytes = sum(int(p.size) * p.dtype.itemsize for p in flat)
    cost = pl.CostEstimate(
        flops=flops_per_row * K_pad,
        transcendentals=0,
        bytes_accessed=K_pad * (INPUT_DIM * 2 + OUT_DIM * 4) + param_bytes,
    )

    out = pl.pallas_call(
        _mlp_kernel,
        out_shape=jax.ShapeDtypeStruct((K_pad, OUT_DIM), jnp.float32),
        grid_spec=pltpu.PrefetchScalarGridSpec(
            num_scalar_prefetch=0,
            grid=grid,
            in_specs=in_specs,
            out_specs=out_spec,
        ),
        compiler_params=pltpu.CompilerParams(
            dimension_semantics=("parallel",),
            # Working set at tm=1024 is ~10 MB (x tile x2 bufs + bf16 weights
            # x2 + fp32 activations) — well inside this limit on v5e/v6e/v7x.
            vmem_limit_bytes=32 * 1024 * 1024,
        ),
        cost_estimate=cost,
    )(x, *flat)
    return out[:K]


def point_head_forward_list(point_feature_list, params, *, tm=DEFAULT_TM):
    """List[(K_i, 516)] -> List[(K_i, 1)].

    Concatenates all per-image point sets into ONE pallas_call so the bf16
    weights (~1 MB) are DMA'd once and the grid warm-up is amortized.
    """
    sizes = [int(p.shape[0]) for p in point_feature_list]
    x_all = jnp.concatenate(point_feature_list, axis=0)
    out_all = point_head_forward(x_all, params, tm=tm)
    outs, off = [], 0
    for k in sizes:
        outs.append(out_all[off:off + k])
        off += k
    return outs


def init_params(key):
    """Deterministic synthetic init (matches nn.Linear shapes, not values)."""
    dims = (INPUT_DIM,) + HIDDEN + (OUT_DIM,)
    params = []
    for i in range(len(dims) - 1):
        key, kw, kb = jax.random.split(key, 3)
        fan_in = dims[i]
        bound = 1.0 / jnp.sqrt(fan_in)
        w = jax.random.uniform(kw, (dims[i], dims[i + 1]), jnp.float32,
                               minval=-bound, maxval=bound)
        b = jax.random.uniform(kb, (1, dims[i + 1]), jnp.float32,
                               minval=-bound, maxval=bound)
        params.append((w, b))
    return params


def reference_forward(x, params):
    """Plain-JAX reference with the same precision choices as the kernel."""
    (w1, b1), (w2, b2), (w3, b3), (w4, b4), (w5, b5) = params
    h = x.astype(jnp.bfloat16)
    for w, b in ((w1, b1), (w2, b2), (w3, b3)):
        h = jnp.maximum(
            jnp.dot(h, w.astype(jnp.bfloat16),
                    preferred_element_type=jnp.float32) + b, 0.0
        ).astype(jnp.bfloat16)
    h = jnp.maximum(
        jnp.dot(h, w4.astype(jnp.bfloat16),
                preferred_element_type=jnp.float32) + b4, 0.0)
    return (h * w5.reshape(1, -1)).sum(axis=-1, keepdims=True) + b5


if __name__ == "__main__":
    key = jax.random.PRNGKey(0)
    kp, kx1, kx2 = jax.random.split(key, 3)

    params = init_params(kp)

    # Two "images" of point features (K deliberately NOT tile multiples) —
    # handled by a single fused pallas_call via the list helper.
    feats = [
        jax.random.normal(kx1, (200, INPUT_DIM), jnp.float32),
        jax.random.normal(kx2, (137, INPUT_DIM), jnp.float32),
    ]

    logits_list = point_head_forward_list(feats, params)
    logits_list = jax.block_until_ready(logits_list)

    for x, logits in zip(feats, logits_list):
        ref = reference_forward(x, params)
        assert logits.shape == (x.shape[0], OUT_DIM)
        max_diff = float(jnp.max(jnp.abs(logits - ref)))
        assert jnp.allclose(logits, ref, atol=1e-2, rtol=1e-2), (
            f"mismatch vs. JAX reference (max abs diff = {max_diff})")

    print("KERNEL_OK")
</pallas_src>

<mosaic_0001>
module attributes {stable_mosaic.version = 11 : i64} {
  func.func @_mlp_kernel(%arg0: i32, %arg1: memref<352x516xbf16, #tpu.memory_space<vmem>>, %arg2: memref<516x512xbf16, #tpu.memory_space<vmem>>, %arg3: memref<1x512xf32, #tpu.memory_space<vmem>>, %arg4: memref<512x256xbf16, #tpu.memory_space<vmem>>, %arg5: memref<1x256xf32, #tpu.memory_space<vmem>>, %arg6: memref<256x256xbf16, #tpu.memory_space<vmem>>, %arg7: memref<1x256xf32, #tpu.memory_space<vmem>>, %arg8: memref<256x64xbf16, #tpu.memory_space<vmem>>, %arg9: memref<1x64xf32, #tpu.memory_space<vmem>>, %arg10: memref<1x64xf32, #tpu.memory_space<vmem>>, %arg11: memref<1x1xf32, #tpu.memory_space<vmem>>, %arg12: memref<352x1xf32, #tpu.memory_space<vmem>>) attributes {dimension_semantics = [#tpu.dimension_semantics<parallel>], iteration_bounds = array<i64: 1>, scalar_prefetch = 0 : i64, scratch_operands = 0 : i64, tpu.core_type = #tpu.core_type<tc>, window_params = [{transform_indices = @transform_0, window_bounds = array<i64: 352, 516>}, {pipeline_mode = #tpu.pipeline_mode<synchronous>, transform_indices = @transform_1, window_bounds = array<i64: 516, 512>}, {pipeline_mode = #tpu.pipeline_mode<synchronous>, transform_indices = @transform_2, window_bounds = array<i64: 1, 512>}, {pipeline_mode = #tpu.pipeline_mode<synchronous>, transform_indices = @transform_3, window_bounds = array<i64: 512, 256>}, {pipeline_mode = #tpu.pipeline_mode<synchronous>, transform_indices = @transform_4, window_bounds = array<i64: 1, 256>}, {pipeline_mode = #tpu.pipeline_mode<synchronous>, transform_indices = @transform_5, window_bounds = array<i64: 256, 256>}, {pipeline_mode = #tpu.pipeline_mode<synchronous>, transform_indices = @transform_6, window_bounds = array<i64: 1, 256>}, {pipeline_mode = #tpu.pipeline_mode<synchronous>, transform_indices = @transform_7, window_bounds = array<i64: 256, 64>}, {pipeline_mode = #tpu.pipeline_mode<synchronous>, transform_indices = @transform_8, window_bounds = array<i64: 1, 64>}, {pipeline_mode = #tpu.pipeline_mode<synchronous>, transform_indices = @transform_9, window_bounds = array<i64: 1, 64>}, {pipeline_mode = #tpu.pipeline_mode<synchronous>, transform_indices = @transform_10, window_bounds = array<i64: 1, 1>}, {transform_indices = @transform_11, window_bounds = array<i64: 352, 1>}]} {
    %c0 = arith.constant 0 : index
    %c0_0 = arith.constant 0 : index
    %0 = vector.load %arg1[%c0, %c0_0] : memref<352x516xbf16, #tpu.memory_space<vmem>>, vector<352x516xbf16>
    %c0_1 = arith.constant 0 : index
    %c0_2 = arith.constant 0 : index
    %1 = vector.load %arg2[%c0_1, %c0_2] : memref<516x512xbf16, #tpu.memory_space<vmem>>, vector<516x512xbf16>
    %cst = arith.constant dense<0.000000e+00> : vector<352x512xf32>
    %2 = tpu.matmul %0, %1, %cst {dimension_numbers = #tpu.dot_dimension_numbers<[1], [0], [0], [1], [0, 0, 1, 1], [], []>} : vector<352x516xbf16>, vector<516x512xbf16>, vector<352x512xf32> -> vector<352x512xf32>
    %c0_3 = arith.constant 0 : index
    %c0_4 = arith.constant 0 : index
    %3 = vector.load %arg3[%c0_3, %c0_4] : memref<1x512xf32, #tpu.memory_space<vmem>>, vector<1x512xf32>
    %4 = vector.broadcast %3 : vector<1x512xf32> to vector<352x512xf32>
    %5 = arith.addf %2, %4 : vector<352x512xf32>
    %cst_5 = arith.constant 0.000000e+00 : f32
    %6 = vector.broadcast %cst_5 : f32 to vector<352x512xf32>
    %7 = arith.maximumf %5, %6 : vector<352x512xf32>
    %8 = arith.truncf %7 : vector<352x512xf32> to vector<352x512xbf16>
    %c0_6 = arith.constant 0 : index
    %c0_7 = arith.constant 0 : index
    %9 = vector.load %arg4[%c0_6, %c0_7] : memref<512x256xbf16, #tpu.memory_space<vmem>>, vector<512x256xbf16>
    %cst_8 = arith.constant dense<0.000000e+00> : vector<352x256xf32>
    %10 = tpu.matmul %8, %9, %cst_8 {dimension_numbers = #tpu.dot_dimension_numbers<[1], [0], [0], [1], [0, 0, 1, 1], [], []>} : vector<352x512xbf16>, vector<512x256xbf16>, vector<352x256xf32> -> vector<352x256xf32>
    %c0_9 = arith.constant 0 : index
    %c0_10 = arith.constant 0 : index
    %11 = vector.load %arg5[%c0_9, %c0_10] : memref<1x256xf32, #tpu.memory_space<vmem>>, vector<1x256xf32>
    %12 = vector.broadcast %11 : vector<1x256xf32> to vector<352x256xf32>
    %13 = arith.addf %10, %12 : vector<352x256xf32>
    %cst_11 = arith.constant 0.000000e+00 : f32
    %14 = vector.broadcast %cst_11 : f32 to vector<352x256xf32>
    %15 = arith.maximumf %13, %14 : vector<352x256xf32>
    %16 = arith.truncf %15 : vector<352x256xf32> to vector<352x256xbf16>
    %c0_12 = arith.constant 0 : index
    %c0_13 = arith.constant 0 : index
    %17 = vector.load %arg6[%c0_12, %c0_13] : memref<256x256xbf16, #tpu.memory_space<vmem>>, vector<256x256xbf16>
    %cst_14 = arith.constant dense<0.000000e+00> : vector<352x256xf32>
    %18 = tpu.matmul %16, %17, %cst_14 {dimension_numbers = #tpu.dot_dimension_numbers<[1], [0], [0], [1], [0, 0, 1, 1], [], []>} : vector<352x256xbf16>, vector<256x256xbf16>, vector<352x256xf32> -> vector<352x256xf32>
    %c0_15 = arith.constant 0 : index
    %c0_16 = arith.constant 0 : index
    %19 = vector.load %arg7[%c0_15, %c0_16] : memref<1x256xf32, #tpu.memory_space<vmem>>, vector<1x256xf32>
    %20 = vector.broadcast %19 : vector<1x256xf32> to vector<352x256xf32>
    %21 = arith.addf %18, %20 : vector<352x256xf32>
    %cst_17 = arith.constant 0.000000e+00 : f32
    %22 = vector.broadcast %cst_17 : f32 to vector<352x256xf32>
    %23 = arith.maximumf %21, %22 : vector<352x256xf32>
    %24 = arith.truncf %23 : vector<352x256xf32> to vector<352x256xbf16>
    %c0_18 = arith.constant 0 : index
    %c0_19 = arith.constant 0 : index
    %25 = vector.load %arg8[%c0_18, %c0_19] : memref<256x64xbf16, #tpu.memory_space<vmem>>, vector<256x64xbf16>
    %cst_20 = arith.constant dense<0.000000e+00> : vector<352x64xf32>
    %26 = tpu.matmul %24, %25, %cst_20 {dimension_numbers = #tpu.dot_dimension_numbers<[1], [0], [0], [1], [0, 0, 1, 1], [], []>} : vector<352x256xbf16>, vector<256x64xbf16>, vector<352x64xf32> -> vector<352x64xf32>
    %c0_21 = arith.constant 0 : index
    %c0_22 = arith.constant 0 : index
    %27 = vector.load %arg9[%c0_21, %c0_22] : memref<1x64xf32, #tpu.memory_space<vmem>>, vector<1x64xf32>
    %28 = vector.broadcast %27 : vector<1x64xf32> to vector<352x64xf32>
    %29 = arith.addf %26, %28 : vector<352x64xf32>
    %cst_23 = arith.constant 0.000000e+00 : f32
    %30 = vector.broadcast %cst_23 : f32 to vector<352x64xf32>
    %31 = arith.maximumf %29, %30 : vector<352x64xf32>
    %c0_24 = arith.constant 0 : index
    %c0_25 = arith.constant 0 : index
    %32 = vector.load %arg10[%c0_24, %c0_25] : memref<1x64xf32, #tpu.memory_space<vmem>>, vector<1x64xf32>
    %33 = vector.broadcast %32 : vector<1x64xf32> to vector<352x64xf32>
    %34 = arith.mulf %31, %33 : vector<352x64xf32>
    %cst_26 = arith.constant dense<0.000000e+00> : vector<352xf32>
    %35 = vector.multi_reduction <add>, %34, %cst_26 [1] : vector<352x64xf32> to vector<352xf32>
    %36 = vector.shape_cast %35 : vector<352xf32> to vector<352x1xf32>
    %c0_27 = arith.constant 0 : index
    %c0_28 = arith.constant 0 : index
    %37 = vector.load %arg11[%c0_27, %c0_28] : memref<1x1xf32, #tpu.memory_space<vmem>>, vector<1x1xf32>
    %38 = vector.broadcast %37 : vector<1x1xf32> to vector<352x1xf32>
    %39 = arith.addf %36, %38 : vector<352x1xf32>
    %c0_29 = arith.constant 0 : index
    %c0_30 = arith.constant 0 : index
    %40 = vector.load %arg12[%c0_29, %c0_30] : memref<352x1xf32, #tpu.memory_space<vmem>>, vector<352x1xf32>
    tpu.vector_store %arg12[%c0_29, %c0_30], %39 {strides = array<i32>} : memref<352x1xf32, #tpu.memory_space<vmem>>, vector<352x1xf32>,
    return
  }
  func.func @transform_0(%arg0: i32) -> (i32, i32) {
    %c0_i32 = arith.constant 0 : i32
    %c0_i32_0 = arith.constant 0 : i32
    return %arg0, %c0_i32 : i32, i32
  }
  func.func @transform_1(%arg0: i32) -> (i32, i32) {
    %c0_i32 = arith.constant 0 : i32
    %c0_i32_0 = arith.constant 0 : i32
    %c0_i32_1 = arith.constant 0 : i32
    return %c0_i32, %c0_i32_0 : i32, i32
  }
  func.func @transform_2(%arg0: i32) -> (i32, i32) {
    %c0_i32 = arith.constant 0 : i32
    %c0_i32_0 = arith.constant 0 : i32
    %c0_i32_1 = arith.constant 0 : i32
    return %c0_i32, %c0_i32_0 : i32, i32
  }
  func.func @transform_3(%arg0: i32) -> (i32, i32) {
    %c0_i32 = arith.constant 0 : i32
    %c0_i32_0 = arith.constant 0 : i32
    %c0_i32_1 = arith.constant 0 : i32
    return %c0_i32, %c0_i32_0 : i32, i32
  }
  func.func @transform_4(%arg0: i32) -> (i32, i32) {
    %c0_i32 = arith.constant 0 : i32
    %c0_i32_0 = arith.constant 0 : i32
    %c0_i32_1 = arith.constant 0 : i32
    return %c0_i32, %c0_i32_0 : i32, i32
  }
  func.func @transform_5(%arg0: i32) -> (i32, i32) {
    %c0_i32 = arith.constant 0 : i32
    %c0_i32_0 = arith.constant 0 : i32
    %c0_i32_1 = arith.constant 0 : i32
    return %c0_i32, %c0_i32_0 : i32, i32
  }
  func.func @transform_6(%arg0: i32) -> (i32, i32) {
    %c0_i32 = arith.constant 0 : i32
    %c0_i32_0 = arith.constant 0 : i32
    %c0_i32_1 = arith.constant 0 : i32
    return %c0_i32, %c0_i32_0 : i32, i32
  }
  func.func @transform_7(%arg0: i32) -> (i32, i32) {
    %c0_i32 = arith.constant 0 : i32
    %c0_i32_0 = arith.constant 0 : i32
    %c0_i32_1 = arith.constant 0 : i32
    return %c0_i32, %c0_i32_0 : i32, i32
  }
  func.func @transform_8(%arg0: i32) -> (i32, i32) {
    %c0_i32 = arith.constant 0 : i32
    %c0_i32_0 = arith.constant 0 : i32
    %c0_i32_1 = arith.constant 0 : i32
    return %c0_i32, %c0_i32_0 : i32, i32
  }
  func.func @transform_9(%arg0: i32) -> (i32, i32) {
    %c0_i32 = arith.constant 0 : i32
    %c0_i32_0 = arith.constant 0 : i32
    %c0_i32_1 = arith.constant 0 : i32
    return %c0_i32, %c0_i32_0 : i32, i32
  }
  func.func @transform_10(%arg0: i32) -> (i32, i32) {
    %c0_i32 = arith.constant 0 : i32
    %c0_i32_0 = arith.constant 0 : i32
    %c0_i32_1 = arith.constant 0 : i32
    return %c0_i32, %c0_i32_0 : i32, i32
  }
  func.func @transform_11(%arg0: i32) -> (i32, i32) {
    %c0_i32 = arith.constant 0 : i32
    %c0_i32_0 = arith.constant 0 : i32
    return %arg0, %c0_i32 : i32, i32
  }
}

</mosaic_0001>

<bundles_post_ra>
// kernel: tpu_custom_call.1
= control target key start
LH: loop header
LB: loop body
LE: loop exit
PB: predicated region body
PF: predicated region fallthrough
CT: control target
= control target key end

     0   :  { %vm1592_vm0 = vcmask 1041408   ;;  %vm1525_vm1 = vcmask 31744   ;;  %vm5449_vm2 = vcmask 523264   ;;  %vm5633_vm3 = vcmask 7168   ;;  %s9429_s1 = inlined_call_operand.vmem [shape: bf16[516,512], index: 1, kind: input, shape index: {}]   ;;  %s9430_s0 = inlined_call_operand.vmem [shape: bf16[352,516], index: 0, kind: input, shape index: {}]   ;;  %s9431_s3 = inlined_call_operand.vmem [shape: bf16[512,256], index: 3, kind: input, shape index: {}]   ;;  %s9432_s2 = inlined_call_operand.vmem [shape: f32[1,512], index: 2, kind: input, shape index: {}]   ;;  %s9433_s5 = inlined_call_operand.vmem [shape: bf16[256,256], index: 5, kind: input, shape index: {}]   ;;  %s9434_s7 = inlined_call_operand.vmem [shape: bf16[256,64], index: 7, kind: input, shape index: {}]   ;;  %s9435_s4 = inlined_call_operand.vmem [shape: f32[1,256], index: 4, kind: input, shape index: {}]   ;;  %s9436_s6 = inlined_call_operand.vmem [shape: f32[1,256], index: 6, kind: input, shape index: {}]   ;;  %s9437_s8 = inlined_call_operand.vmem [shape: f32[1,64], index: 8, kind: input, shape index: {}]   ;;  %s9438_s9 = inlined_call_operand.vmem [shape: f32[1,64], index: 9, kind: input, shape index: {}]   ;;  %s9439_s10 = inlined_call_operand.<no memory space> [shape: f32[1,1], index: 10, kind: input, shape index: {}]   ;;  %s9440_s11 = inlined_call_operand.vmem [shape: f32[352,1], index: 11, kind: output, shape index: {}]  }
   0x1   :  { %v6790_v0 = vld [vmem:[%s9429_s1 + $0x4] ss:$16 sps:$4 sm:$0xff]   ;;  %v6792_v1 = vld [vmem:[%s9429_s1 + $0xc] ss:$16 sps:$4 sm:$0xff]   ;;  %v6794_v2 = vld [vmem:[%s9429_s1] ss:$16 sps:$4 sm:$0xff]  }
   0x2   :  { %1605 = vmatprep.subr.bf16.mxu0 %v6790_v0  ;;  %v6795_v3 = vld [vmem:[%s9429_s1 + $0x8] ss:$16 sps:$4 sm:$0xff]   ;;  %2364 = vmatprep.subr.bf16.mxu1 %v6792_v1  ;;  %v6796_v4 = vld [vmem:[%s9429_s1 + $0x24] ss:$16 sps:$4 sm:$0xff]   ;;  %v6798_v5 = vld [vmem:[%s9429_s1 + $0x2c] ss:$16 sps:$4 sm:$0xff]  }
   0x3   :  { %1606 = vmatpush1.bf16.msra.mxu0 %v6794_v2  ;;  %2365 = vmatpush1.bf16.msra.mxu1 %v6795_v3  ;;  %v6800_v6 = vld [vmem:[%s9429_s1 + $0x20] ss:$16 sps:$4 sm:$0xff]   ;;  %v6801_v7 = vld [vmem:[%s9429_s1 + $0x28] ss:$16 sps:$4 sm:$0xff]   ;;  %v6802_v8 = vld [vmem:[%s9429_s1 + $0x44] ss:$16 sps:$4 sm:$0xff]  }
   0x4   :  { %1607 = vmatprep.subr.bf16.mxu0 %v6796_v4  ;;  %2366 = vmatprep.subr.bf16.mxu1 %v6798_v5  ;;  %v6804_v9 = vld [vmem:[%s9429_s1 + $0x4c] ss:$16 sps:$4 sm:$0xff]   ;;  %v6806_v10 = vld [vmem:[%s9429_s1 + $0x40] ss:$16 sps:$4 sm:$0xff]   ;;  %v6807_v11 = vld [vmem:[%s9429_s1 + $0x48] ss:$16 sps:$4 sm:$0xff]  }
   0x5   :  { %v6808_v12 = vld [vmem:[%s9429_s1 + $0x64] ss:$16 sps:$4 sm:$0xff]   ;;  %v6810_v13 = vld [vmem:[%s9429_s1 + $0x6c] ss:$16 sps:$4 sm:$0xff]   ;;  %v6812_v14 = vld [vmem:[%s9429_s1 + $0x60] ss:$16 sps:$4 sm:$0xff]  }
   0x6   :  { %v6813_v15 = vld [vmem:[%s9429_s1 + $0x68] ss:$16 sps:$4 sm:$0xff]   ;;  %v6814_v16 = vld [vmem:[%s9429_s1 + $0x84] ss:$16 sps:$4 sm:$0xff]   ;;  %v6816_v17 = vld [vmem:[%s9429_s1 + $0x8c] ss:$16 sps:$4 sm:$0xff]  }
   0x7   :  { %1608 = vmatpush1.bf16.msra.mxu0 %v6800_v6  ;;  %2367 = vmatpush1.bf16.msra.mxu1 %v6801_v7  ;;  %v6818_v18 = vld [vmem:[%s9429_s1 + $0x80] ss:$16 sps:$4 sm:$0xff]   ;;  %v6819_v19 = vld [vmem:[%s9429_s1 + $0x88] ss:$16 sps:$4 sm:$0xff]   ;;  %v6820_v20 = vld [vmem:[%s9429_s1 + $0xa4] ss:$16 sps:$4 sm:$0xff]  }
   0x8   :  { %1609 = vmatprep.subr.bf16.mxu0 %v6802_v8  ;;  %2368 = vmatprep.subr.bf16.mxu1 %v6804_v9  ;;  %v6822_v21 = vld [vmem:[%s9429_s1 + $0xac] ss:$16 sps:$4 sm:$0xff]   ;;  %v6824_v22 = vld [vmem:[%s9429_s1 + $0xa0] ss:$16 sps:$4 sm:$0xff]   ;;  %v6825_v23 = vld [vmem:[%s9429_s1 + $0xa8] ss:$16 sps:$4 sm:$0xff]  }
   0x9   :  { %v6826_v24 = vld [vmem:[%s9429_s1 + $0xc4] ss:$16 sps:$4 sm:$0xff]   ;;  %v6828_v25 = vld [vmem:[%s9429_s1 + $0xcc] ss:$16 sps:$4 sm:$0xff]   ;;  %v6830_v26 = vld [vmem:[%s9429_s1 + $0xc0] ss:$16 sps:$4 sm:$0xff]  }
   0xa   :  { %v6831_v27 = vld [vmem:[%s9429_s1 + $0xc8] ss:$16 sps:$4 sm:$0xff]   ;;  %v6832_v28 = vld [vmem:[%s9429_s1 + $0xe4] ss:$16 sps:$4 sm:$0xff]   ;;  %v6834_v29 = vld [vmem:[%s9429_s1 + $0xec] ss:$16 sps:$4 sm:$0xff]  }
   0xb   :  { %1610 = vmatpush1.bf16.msra.mxu0 %v6806_v10  ;;  %2369 = vmatpush1.bf16.msra.mxu1 %v6807_v11  ;;  %v6836_v30 = vld [vmem:[%s9429_s1 + $0xe0] ss:$16 sps:$4 sm:$0xff]   ;;  %v6837_v31 = vld [vmem:[%s9429_s1 + $0xe8] ss:$16 sps:$4 sm:$0xff]   ;;  %v6838_v32 = vld [vmem:[%s9429_s1 + $0x104] ss:$16 sps:$4 sm:$0xff]  }
   0xc   :  { %1611 = vmatprep.subr.bf16.mxu0 %v6808_v12  ;;  %2370 = vmatprep.subr.bf16.mxu1 %v6810_v13  ;;  %v6840_v33 = vld [vmem:[%s9429_s1 + $0x10c] ss:$16 sps:$4 sm:$0xff]   ;;  %v6842_v34 = vld [vmem:[%s9429_s1 + $0x100] ss:$16 sps:$4 sm:$0xff]   ;;  %v6843_v35 = vld [vmem:[%s9429_s1 + $0x108] ss:$16 sps:$4 sm:$0xff]  }
   0xd   :  { %v6844_v36 = vld [vmem:[%s9429_s1 + $0x124] ss:$16 sps:$4 sm:$0xff]   ;;  %v6846_v37 = vld [vmem:[%s9429_s1 + $0x12c] ss:$16 sps:$4 sm:$0xff]   ;;  %v6848_v38 = vld [vmem:[%s9429_s1 + $0x120] ss:$16 sps:$4 sm:$0xff]  }
   0xe   :  { %v6849_v39 = vld [vmem:[%s9429_s1 + $0x128] ss:$16 sps:$4 sm:$0xff]   ;;  %v6850_v40 = vld [vmem:[%s9429_s1 + $0x144] ss:$16 sps:$4 sm:$0xff]   ;;  %v6852_v41 = vld [vmem:[%s9429_s1 + $0x14c] ss:$16 sps:$4 sm:$0xff]  }
   0xf   :  { %1612 = vmatpush1.bf16.msra.mxu0 %v6812_v14  ;;  %2371 = vmatpush1.bf16.msra.mxu1 %v6813_v15  ;;  %v6854_v42 = vld [vmem:[%s9429_s1 + $0x140] ss:$16 sps:$4 sm:$0xff]   ;;  %v6855_v43 = vld [vmem:[%s9429_s1 + $0x148] ss:$16 sps:$4 sm:$0xff]   ;;  %v6856_v44 = vld [vmem:[%s9429_s1 + $0x164] ss:$16 sps:$4 sm:$0xff]  }
  0x10   :  { %1613 = vmatprep.subr.bf16.mxu0 %v6814_v16  ;;  %2372 = vmatprep.subr.bf16.mxu1 %v6816_v17  ;;  %v6858_v45 = vld [vmem:[%s9429_s1 + $0x16c] ss:$16 sps:$4 sm:$0xff]   ;;  %v6860_v46 = vld [vmem:[%s9429_s1 + $0x160] ss:$16 sps:$4 sm:$0xff]   ;;  %v6861_v47 = vld [vmem:[%s9429_s1 + $0x168] ss:$16 sps:$4 sm:$0xff]  }
  0x11   :  { %v6888_v48 = vld [vmem:[%s9430_s0 + $0x4] ss:$20 sps:$4 sm:$0xff]   ;;  %v6864_v50 = vld [vmem:[%s9429_s1 + $0x18c] ss:$16 sps:$4 sm:$0xff]   ;;  %v6866_v51 = vld [vmem:[%s9429_s1 + $0x180] ss:$16 sps:$4 sm:$0xff]  }
  0x12   :  { %v6862_v49 = vld [vmem:[%s9429_s1 + $0x184] ss:$16 sps:$4 sm:$0xff]   ;;  %1637 = vmatprep.mubr.bf16.mxu0 %v6888_v48  ;;  %2396 = vmatprep.mubr.bf16.mxu1 %v6888_v48  ;;  %v6867_v52 = vld [vmem:[%s9429_s1 + $0x188] ss:$16 sps:$4 sm:$0xff]   ;;  %v6870_v54 = vld [vmem:[%s9429_s1 + $0x1ac] ss:$16 sps:$4 sm:$0xff]  }
  0x13   :  { %1614 = vmatpush1.bf16.msra.mxu0 %v6818_v18  ;;  %2373 = vmatpush1.bf16.msra.mxu1 %v6819_v19  ;;  %v6868_v53 = vld [vmem:[%s9429_s1 + $0x1a4] ss:$16 sps:$4 sm:$0xff]   ;;  %v6872_v55 = vld [vmem:[%s9429_s1 + $0x1a0] ss:$16 sps:$4 sm:$0xff]   ;;  %v6873_v56 = vld [vmem:[%s9429_s1 + $0x1a8] ss:$16 sps:$4 sm:$0xff]  }
  0x14   :  { %1615 = vmatprep.subr.bf16.mxu0 %v6820_v20  ;;  %2374 = vmatprep.subr.bf16.mxu1 %v6822_v21  ;;  %v6874_v57 = vld [vmem:[%s9429_s1 + $0x1c4] ss:$16 sps:$4 sm:$0xff]   ;;  %v6876_v58 = vld [vmem:[%s9429_s1 + $0x1cc] ss:$16 sps:$4 sm:$0xff]   ;;  %v6878_v59 = vld [vmem:[%s9429_s1 + $0x1c0] ss:$16 sps:$4 sm:$0xff]  }
  0x15   :  { %v6879_v60 = vld [vmem:[%s9429_s1 + $0x1c8] ss:$16 sps:$4 sm:$0xff]   ;;  %v6880_v61 = vld [vmem:[%s9429_s1 + $0x1e4] ss:$16 sps:$4 sm:$0xff]   ;;  %v6882_v62 = vld [vmem:[%s9429_s1 + $0x1ec] ss:$16 sps:$4 sm:$0xff]  }
  0x16   :  { %v6884_v63 = vld [vmem:[%s9429_s1 + $0x1e0] ss:$16 sps:$4 sm:$0xff]   ;;  %v6885_v0 = vld [vmem:[%s9429_s1 + $0x1e8] ss:$16 sps:$4 sm:$0xff]   ;;  %v6891_v1 = vld [vmem:[%s9429_s1 + $0x204] ss:$16 sps:$4 sm:$0xff]  }
  0x17   :  { %1616 = vmatpush1.bf16.msra.mxu0 %v6824_v22  ;;  %2375 = vmatpush1.bf16.msra.mxu1 %v6825_v23  ;;  %v6886_v2 = vld [vmem:[%s9430_s0] ss:$20 sps:$4 sm:$0xff]   ;;  %v6894_v8 = vld [vmem:[%s9430_s0 + $0x28] ss:$20 sps:$4 sm:$0xff]   ;;  %v6900_v13 = vld [vmem:[%s9430_s0 + $0x50] ss:$20 sps:$4 sm:$0xff]  }
  0x18   :  { %1617 = vmatprep.subr.bf16.mxu0 %v6826_v24  ;;  %2376 = vmatprep.subr.bf16.mxu1 %v6828_v25  ;;  %v6889_v3 = vld [vmem:[%s9429_s1 + $0x200] ss:$16 sps:$4 sm:$0xff]   ;;  %v6897_v5 = vld [vmem:[%s9429_s1 + $0x224] ss:$16 sps:$4 sm:$0xff]   ;;  %v6964_v15 = vld [vmem:[%s9429_s1 + $0x208] ss:$16 sps:$4 sm:$0xff]  }
  0x19   :  { %v6892_v4 = vld [vmem:[%s9430_s0 + $0x2c] ss:$20 sps:$4 sm:$0xff]   ;;  %v6903_v7 = vld [vmem:[%s9429_s1 + $0x244] ss:$16 sps:$4 sm:$0xff]   ;;  %v6904_v17 = vld [vmem:[%s9430_s0 + $0x7c] ss:$20 sps:$4 sm:$0xff]  }
  0x1a   :  { %v6895_v6 = vld [vmem:[%s9429_s1 + $0x220] ss:$16 sps:$4 sm:$0xff]   ;;  %v6898_v9 = vld [vmem:[%s9430_s0 + $0x54] ss:$20 sps:$4 sm:$0xff]   ;;  %v6966_v16 = vld [vmem:[%s9429_s1 + $0x20c] ss:$16 sps:$4 sm:$0xff]  }
  0x1b   :  { %1618 = vmatpush1.bf16.msra.mxu0 %v6830_v26  ;;  %2377 = vmatpush1.bf16.msra.mxu1 %v6831_v27  ;;  %v6901_v10 = vld [vmem:[%s9429_s1 + $0x240] ss:$16 sps:$4 sm:$0xff]   ;;  %v6912_v11 = vld [vmem:[%s9429_s1 + $0x264] ss:$16 sps:$4 sm:$0xff]   ;;  %v6969_v18 = vld [vmem:[%s9429_s1 + $0x22c] ss:$16 sps:$4 sm:$0xff]  }
  0x1c   :  { %1619 = vmatprep.subr.bf16.mxu0 %v6832_v28  ;;  %2378 = vmatprep.subr.bf16.mxu1 %v6834_v29  ;;  %v6910_v12 = vld [vmem:[%s9429_s1 + $0x260] ss:$16 sps:$4 sm:$0xff]   ;;  %v6918_v14 = vld [vmem:[%s9429_s1 + $0x284] ss:$16 sps:$4 sm:$0xff]   ;;  %v6967_v20 = vld [vmem:[%s9429_s1 + $0x228] ss:$16 sps:$4 sm:$0xff]  }
  0x1d   :  { %v6916_v19 = vld [vmem:[%s9429_s1 + $0x280] ss:$16 sps:$4 sm:$0xff]   ;;  %v6926_v21 = vld [vmem:[%s9429_s1 + $0x2a4] ss:$16 sps:$4 sm:$0xff]   ;;  %v6975_v22 = vld [vmem:[%s9429_s1 + $0x24c] ss:$16 sps:$4 sm:$0xff]  }
  0x1e   :  { %v6924_v23 = vld [vmem:[%s9429_s1 + $0x2a0] ss:$16 sps:$4 sm:$0xff]   ;;  %v6973_v24 = vld [vmem:[%s9429_s1 + $0x248] ss:$16 sps:$4 sm:$0xff]   ;;  %v6933_v25 = vld [vmem:[%s9429_s1 + $0x2c4] ss:$16 sps:$4 sm:$0xff]  }
  0x1f   :  { %1620 = vmatpush1.bf16.msra.mxu0 %v6836_v30  ;;  %2379 = vmatpush1.bf16.msra.mxu1 %v6837_v31  ;;  %v6981_v26 = vld [vmem:[%s9429_s1 + $0x26c] ss:$16 sps:$4 sm:$0xff]   ;;  %v6907_v28 = vld [vmem:[%s9430_s0 + $0xa4] ss:$20 sps:$4 sm:$0xff]   ;;  %v6931_v29 = vld [vmem:[%s9429_s1 + $0x2c0] ss:$16 sps:$4 sm:$0xff]  }
  0x20   :  { %1621 = vmatprep.subr.bf16.mxu0 %v6838_v32  ;;  %2380 = vmatprep.subr.bf16.mxu1 %v6840_v33  ;;  %v6906_v27 = vld [vmem:[%s9430_s0 + $0x78] ss:$20 sps:$4 sm:$0xff]   ;;  %v6939_v31 = vld [vmem:[%s9429_s1 + $0x2e4] ss:$16 sps:$4 sm:$0xff]   ;;  %v6937_v33 = vld [vmem:[%s9429_s1 + $0x2e0] ss:$16 sps:$4 sm:$0xff]  }
  0x21   :  { %v6979_v30 = vld [vmem:[%s9429_s1 + $0x268] ss:$16 sps:$4 sm:$0xff]   ;;  %v6987_v32 = vld [vmem:[%s9429_s1 + $0x28c] ss:$16 sps:$4 sm:$0xff]  }
  0x22   :  { %v6919_v48 = vld [vmem:[%s9430_s0 + $0xf4] ss:$20 sps:$4 sm:$0xff]  }
  0x23   :  { %1622 = vmatpush1.bf16.msra.mxu0 %v6842_v34  ;;  %2381 = vmatpush1.bf16.msra.mxu1 %v6843_v35  ;;  %v6985_v34 = vld [vmem:[%s9429_s1 + $0x288] ss:$16 sps:$4 sm:$0xff]   ;;  %v6948_v35 = vld [vmem:[%s9429_s1 + $0x304] ss:$16 sps:$4 sm:$0xff]  }
  0x24   :  { %1623 = vmatprep.subr.bf16.mxu0 %v6844_v36  ;;  %2382 = vmatprep.subr.bf16.mxu1 %v6846_v37  ;;  %v6993_v36 = vld [vmem:[%s9429_s1 + $0x2ac] ss:$16 sps:$4 sm:$0xff]   ;;  %v6909_v37 = vld [vmem:[%s9430_s0 + $0xa0] ss:$20 sps:$4 sm:$0xff]  }
  0x27   :  { %1624 = vmatpush1.bf16.msra.mxu0 %v6848_v38  ;;  %2383 = vmatpush1.bf16.msra.mxu1 %v6849_v39  ;;  %v6913_v38 = vld [vmem:[%s9430_s0 + $0xcc] ss:$20 sps:$4 sm:$0xff]  }
  0x28   :  { %1625 = vmatprep.subr.bf16.mxu0 %v6850_v40  ;;  %2384 = vmatprep.subr.bf16.mxu1 %v6852_v41  ;;  %v6946_v39 = vld [vmem:[%s9429_s1 + $0x300] ss:$16 sps:$4 sm:$0xff]   ;;  %v6991_v40 = vld [vmem:[%s9429_s1 + $0x2a8] ss:$16 sps:$4 sm:$0xff]   ;;  %v6954_v41 = vld [vmem:[%s9429_s1 + $0x324] ss:$16 sps:$4 sm:$0xff]  }
  0x2b   :  { %1626 = vmatpush1.bf16.msra.mxu0 %v6854_v42  ;;  %2385 = vmatpush1.bf16.msra.mxu1 %v6855_v43  ;;  %v6999_v42 = vld [vmem:[%s9429_s1 + $0x2cc] ss:$16 sps:$4 sm:$0xff]   ;;  %v6952_v43 = vld [vmem:[%s9429_s1 + $0x320] ss:$16 sps:$4 sm:$0xff]  }
  0x2c   :  { %1627 = vmatprep.subr.bf16.mxu0 %v6856_v44  ;;  %2386 = vmatprep.subr.bf16.mxu1 %v6858_v45  ;;  %v6997_v44 = vld [vmem:[%s9429_s1 + $0x2c8] ss:$16 sps:$4 sm:$0xff]   ;;  %v6960_v45 = vld [vmem:[%s9429_s1 + $0x344] ss:$16 sps:$4 sm:$0xff]  }
  0x2f   :  { %1628 = vmatpush1.bf16.msra.mxu0 %v6860_v46  ;;  %2387 = vmatpush1.bf16.msra.mxu1 %v6861_v47  ;;  %v7002_v46 = vld [vmem:[%s9429_s1 + $0x2ec] ss:$16 sps:$4 sm:$0xff]  }
  0x30   :  { %1629 = vmatprep.subr.bf16.mxu0 %v6862_v49  ;;  %2388 = vmatprep.subr.bf16.mxu1 %v6864_v50  ;;  %v6915_v47 = vld [vmem:[%s9430_s0 + $0xc8] ss:$20 sps:$4 sm:$0xff]   ;;  %v6958_v49 = vld [vmem:[%s9429_s1 + $0x340] ss:$16 sps:$4 sm:$0xff]  }
  0x31   :  { %v7000_v50 = vld [vmem:[%s9429_s1 + $0x2e8] ss:$16 sps:$4 sm:$0xff]  }
  0x33   :  { %1630 = vmatpush1.bf16.msra.mxu0 %v6866_v51  ;;  %2389 = vmatpush1.bf16.msra.mxu1 %v6867_v52  ;;  %v6978_v51 = vld [vmem:[%s9429_s1 + $0x364] ss:$16 sps:$4 sm:$0xff]   ;;  %v7011_v52 = vld [vmem:[%s9429_s1 + $0x30c] ss:$16 sps:$4 sm:$0xff]  }
  0x34   :  { %1631 = vmatprep.subr.bf16.mxu0 %v6868_v53  ;;  %2390 = vmatprep.subr.bf16.mxu1 %v6870_v54  ;;  %v6976_v53 = vld [vmem:[%s9429_s1 + $0x360] ss:$16 sps:$4 sm:$0xff]   ;;  %v7009_v54 = vld [vmem:[%s9429_s1 + $0x308] ss:$16 sps:$4 sm:$0xff]  }
  0x37   :  { %1632 = vmatpush1.bf16.msra.mxu0 %v6872_v55  ;;  %2391 = vmatpush1.bf16.msra.mxu1 %v6873_v56  ;;  %v6990_v55 = vld [vmem:[%s9429_s1 + $0x384] ss:$16 sps:$4 sm:$0xff]   ;;  %v7014_v56 = vld [vmem:[%s9429_s1 + $0x32c] ss:$16 sps:$4 sm:$0xff]  }
  0x38   :  { %1633 = vmatprep.subr.bf16.mxu0 %v6874_v57  ;;  %2392 = vmatprep.subr.bf16.mxu1 %v6876_v58  ;;  %v6921_v57 = vld [vmem:[%s9430_s0 + $0xf0] ss:$20 sps:$4 sm:$0xff]  }
  0x39   :  { %v6922_v58 = vld [vmem:[%s9430_s0 + $0x11c] ss:$20 sps:$4 sm:$0xff]  }
  0x3b   :  { %1634 = vmatpush1.bf16.msra.mxu0 %v6878_v59  ;;  %2393 = vmatpush1.bf16.msra.mxu1 %v6879_v60  ;;  %v6988_v59 = vld [vmem:[%s9429_s1 + $0x380] ss:$16 sps:$4 sm:$0xff]   ;;  %v7012_v60 = vld [vmem:[%s9429_s1 + $0x328] ss:$16 sps:$4 sm:$0xff]  }
  0x3c   :  { %1635 = vmatprep.subr.bf16.mxu0 %v6880_v61  ;;  %2394 = vmatprep.subr.bf16.mxu1 %v6882_v62  ;;  %v7007_v61 = vld [vmem:[%s9429_s1 + $0x3a4] ss:$16 sps:$4 sm:$0xff]   ;;  %v7020_v62 = vld [vmem:[%s9429_s1 + $0x34c] ss:$16 sps:$4 sm:$0xff]  }
  0x3f   :  { %1636 = vmatpush1.bf16.msra.mxu0 %v6884_v63  ;;  %2395 = vmatpush1.bf16.msra.mxu1 %v6885_v0  ;;  %v7005_v63 = vld [vmem:[%s9429_s1 + $0x3a0] ss:$16 sps:$4 sm:$0xff]   ;;  %v7018_v0 = vld [vmem:[%s9429_s1 + $0x348] ss:$16 sps:$4 sm:$0xff]  }
  0x40   :  { %1858 = vmatprep.subr.bf16.mxu0 %v6891_v1  ;;  %2617 = vmatprep.subr.bf16.mxu1 %v6966_v16  ;;  %v6927_v1 = vld [vmem:[%s9430_s0 + $0x118] ss:$20 sps:$4 sm:$0xff]  }
  0x41   :  { %v7033_v16 = vld [vmem:[%s9429_s1 + $0x3a8] ss:$16 sps:$4 sm:$0xff]  }
  0x42   :  { %1638 = vmatmul.mubr.bf16.vlgmr.msra.gmra.mrb[0].mxu0 %v6886_v2  ;;  %2397 = vmatmul.mubr.bf16.vlgmr.msra.gmra.mrb[0].mxu1 %v6886_v2  ;;  %v7023_v2 = vld [vmem:[%s9429_s1 + $0x3c4] ss:$16 sps:$4 sm:$0xff]  }
  0x43   :  { %1859 = vmatpush1.bf16.msra.mxu0 %v6889_v3  ;;  %1647 = vmatprep.mubr.bf16.mxu0 %v6892_v4  ;;  %v7026_v3 = vld [vmem:[%s9429_s1 + $0x36c] ss:$16 sps:$4 sm:$0xff]  }
  0x44   :  { %2406 = vmatprep.mubr.bf16.mxu1 %v6892_v4  ;;  %1860 = vmatprep.subr.bf16.mxu0 %v6897_v5  ;;  %v6928_v4 = vld [vmem:[%s9430_s0 + $0x144] ss:$20 sps:$4 sm:$0xff]   ;;  %v7021_v5 = vld [vmem:[%s9429_s1 + $0x3c0] ss:$16 sps:$4 sm:$0xff]  }
  0x45   :  { %2618 = vmatpush1.bf16.msra.mxu1 %v6964_v15 }
  0x46   :  { %2619 = vmatprep.subr.bf16.mxu1 %v6969_v18  ;;  %v7042_v18 = vld [vmem:[%s9429_s1 + $0x3c8] ss:$16 sps:$4 sm:$0xff]  }
  0x47   :  { %1861 = vmatpush1.bf16.msra.mxu0 %v6895_v6  ;;  %v7024_v6 = vld [vmem:[%s9429_s1 + $0x368] ss:$16 sps:$4 sm:$0xff]  }
  0x48   :  { %1862 = vmatprep.subr.bf16.mxu0 %v6903_v7  ;;  %v7032_v7 = vld [vmem:[%s9429_s1 + $0x38c] ss:$16 sps:$4 sm:$0xff]  }
  0x49   :  { %2620 = vmatpush1.bf16.msra.mxu1 %v6967_v20  ;;  %v6936_v20 = vld [vmem:[%s9430_s0 + $0x168] ss:$20 sps:$4 sm:$0xff]  }
  0x4a   :  { %1648 = vmatmul.mubr.bf16.gmra.mrb[4].mxu0 %v6894_v8  ;;  %2407 = vmatmul.mubr.bf16.gmra.mrb[4].mxu1 %v6894_v8  ;;  %v7038_v8 = vld [vmem:[%s9429_s1 + $0x3e4] ss:$16 sps:$4 sm:$0xff]  }
  0x4b   :  { %1657 = vmatprep.mubr.bf16.mxu0 %v6898_v9  ;;  %2416 = vmatprep.mubr.bf16.mxu1 %v6898_v9  ;;  %v7030_v9 = vld [vmem:[%s9429_s1 + $0x388] ss:$16 sps:$4 sm:$0xff]  }
  0x4c   :  { %1863 = vmatpush1.bf16.msra.mxu0 %v6901_v10  ;;  %2621 = vmatprep.subr.bf16.mxu1 %v6975_v22  ;;  %v7778_v10 = vld [vmem:[%s9429_s1 + $0x400] sm:$0x33]  ;;  %v7045_v22 = vld [vmem:[%s9429_s1 + $0x3e8] ss:$16 sps:$4 sm:$0xff]  }
  0x4d   :  { %1864 = vmatprep.subr.bf16.mxu0 %v6912_v11  ;;  %2622 = vmatpush1.bf16.msra.mxu1 %v6973_v24  ;;  %v7035_v11 = vld [vmem:[%s9429_s1 + $0x3ac] ss:$16 sps:$4 sm:$0xff]   ;;  %v5921_v15 = vcombine.high %v7778_v10, %v7778_v10 }
  0x4e   :  { %2623 = vmatprep.subr.bf16.mxu1 %v6981_v26  ;;  %v6943_v24 = vld [vmem:[%s9430_s0 + $0x1bc] ss:$20 sps:$4 sm:$0xff]   ;;  %v6949_v26 = vld [vmem:[%s9430_s0 + $0x1e4] ss:$20 sps:$4 sm:$0xff]  }
  0x50   :  { %1865 = vmatpush1.bf16.msra.mxu0 %v6910_v12  ;;  %v7036_v12 = vld [vmem:[%s9429_s1 + $0x3e0] ss:$16 sps:$4 sm:$0xff]  }
  0x51   :  { %1866 = vmatprep.subr.bf16.mxu0 %v6918_v14  ;;  %2624 = vmatpush1.bf16.msra.mxu1 %v6979_v30  ;;  %v6934_v14 = vld [vmem:[%s9430_s0 + $0x16c] ss:$20 sps:$4 sm:$0xff]   ;;  %v6961_v30 = vld [vmem:[%s9430_s0 + $0x234] ss:$20 sps:$4 sm:$0xff]  }
  0x52   :  { %1658 = vmatmul.mubr.bf16.gmra.mrb[8].mxu0 %v6900_v13  ;;  %2417 = vmatmul.mubr.bf16.gmra.mrb[8].mxu1 %v6900_v13  ;;  %v6930_v13 = vld [vmem:[%s9430_s0 + $0x140] ss:$20 sps:$4 sm:$0xff]  }
  0x53   :  { %1667 = vmatprep.mubr.bf16.mxu0 %v6904_v17  ;;  %2426 = vmatprep.mubr.bf16.mxu1 %v6904_v17  ;;  %v7044_v17 = vld [vmem:[%s9429_s1 + $0x3cc] ss:$16 sps:$4 sm:$0xff]  }
  0x54   :  { %1867 = vmatpush1.bf16.msra.mxu0 %v6916_v19  ;;  %2625 = vmatprep.subr.bf16.mxu1 %v6987_v32  ;;  %v7047_v19 = vld [vmem:[%s9429_s1 + $0x3ec] ss:$16 sps:$4 sm:$0xff]  }
  0x55   :  { %1868 = vmatprep.subr.bf16.mxu0 %v6926_v21  ;;  %2626 = vmatpush1.bf16.msra.mxu1 %v6985_v34  ;;  %v6940_v21 = vld [vmem:[%s9430_s0 + $0x194] ss:$20 sps:$4 sm:$0xff]   ;;  %v6970_v32 = vld [vmem:[%s9430_s0 + $0x25c] ss:$20 sps:$4 sm:$0xff]   ;;  %v6982_v34 = vld [vmem:[%s9430_s0 + $0x284] ss:$20 sps:$4 sm:$0xff]  }
  0x56   :  { %2627 = vmatprep.subr.bf16.mxu1 %v6993_v36  ;;  %v6994_v36 = vld [vmem:[%s9430_s0 + $0x2ac] ss:$20 sps:$4 sm:$0xff]  }
  0x58   :  { %1869 = vmatpush1.bf16.msra.mxu0 %v6924_v23  ;;  %v6942_v23 = vld [vmem:[%s9430_s0 + $0x190] ss:$20 sps:$4 sm:$0xff]  }
  0x59   :  { %1870 = vmatprep.subr.bf16.mxu0 %v6933_v25  ;;  %2628 = vmatpush1.bf16.msra.mxu1 %v6991_v40  ;;  %v6945_v25 = vld [vmem:[%s9430_s0 + $0x1b8] ss:$20 sps:$4 sm:$0xff]   ;;  %v7015_v40 = vld [vmem:[%s9430_s0 + $0x2fc] ss:$20 sps:$4 sm:$0xff]  }
  0x5a   :  { %1668 = vmatmul.mubr.bf16.gmra.mrb[12].mxu0 %v6906_v27  ;;  %2427 = vmatmul.mubr.bf16.gmra.mrb[12].mxu1 %v6906_v27  ;;  %v6951_v27 = vld [vmem:[%s9430_s0 + $0x1e0] ss:$20 sps:$4 sm:$0xff]  }
  0x5b   :  { %1677 = vmatprep.mubr.bf16.mxu0 %v6907_v28  ;;  %2436 = vmatprep.mubr.bf16.mxu1 %v6907_v28  ;;  %v6955_v28 = vld [vmem:[%s9430_s0 + $0x20c] ss:$20 sps:$4 sm:$0xff]  }
  0x5c   :  { %1871 = vmatpush1.bf16.msra.mxu0 %v6931_v29  ;;  %2629 = vmatprep.subr.bf16.mxu1 %v6999_v42  ;;  %v6957_v29 = vld [vmem:[%s9430_s0 + $0x208] ss:$20 sps:$4 sm:$0xff]   ;;  %v7027_v42 = vld [vmem:[%s9430_s0 + $0x324] ss:$20 sps:$4 sm:$0xff]  }
  0x5d   :  { %1872 = vmatprep.subr.bf16.mxu0 %v6939_v31  ;;  %2630 = vmatpush1.bf16.msra.mxu1 %v6997_v44  ;;  %v6963_v31 = vld [vmem:[%s9430_s0 + $0x230] ss:$20 sps:$4 sm:$0xff]   ;;  %v7039_v44 = vld [vmem:[%s9430_s0 + $0x34c] ss:$20 sps:$4 sm:$0xff]  }
  0x5e   :  { %2631 = vmatprep.subr.bf16.mxu1 %v7002_v46  ;;  %v7050_v46 = vld [vmem:[%s9430_s0 + $0xc] ss:$20 sps:$4 sm:$0xff]  }
  0x60   :  { %1873 = vmatpush1.bf16.msra.mxu0 %v6937_v33  ;;  %v6972_v33 = vld [vmem:[%s9430_s0 + $0x258] ss:$20 sps:$4 sm:$0xff]  }
  0x61   :  { %1874 = vmatprep.subr.bf16.mxu0 %v6948_v35  ;;  %2632 = vmatpush1.bf16.msra.mxu1 %v7000_v50  ;;  %v6984_v35 = vld [vmem:[%s9430_s0 + $0x280] ss:$20 sps:$4 sm:$0xff]  }
  0x62   :  { %1678 = vmatmul.mubr.bf16.gmra.mrb[16].mxu0 %v6909_v37  ;;  %2437 = vmatmul.mubr.bf16.gmra.mrb[16].mxu1 %v6909_v37  ;;  %v6996_v37 = vld [vmem:[%s9430_s0 + $0x2a8] ss:$20 sps:$4 sm:$0xff]  }
  0x63   :  { %1687 = vmatprep.mubr.bf16.mxu0 %v6913_v38  ;;  %2446 = vmatprep.mubr.bf16.mxu1 %v6913_v38  ;;  %v7003_v38 = vld [vmem:[%s9430_s0 + $0x2d4] ss:$20 sps:$4 sm:$0xff]  }
  0x64   :  { %1875 = vmatpush1.bf16.msra.mxu0 %v6946_v39  ;;  %2633 = vmatprep.subr.bf16.mxu1 %v7011_v52  ;;  %v7008_v39 = vld [vmem:[%s9430_s0 + $0x2d0] ss:$20 sps:$4 sm:$0xff]  }
  0x65   :  { %1876 = vmatprep.subr.bf16.mxu0 %v6954_v41  ;;  %2634 = vmatpush1.bf16.msra.mxu1 %v7009_v54  ;;  %v7017_v41 = vld [vmem:[%s9430_s0 + $0x2f8] ss:$20 sps:$4 sm:$0xff]   ;;  %v7056_v52 = vld [vmem:[%s9430_s0 + $0x5c] ss:$20 sps:$4 sm:$0xff]  }
  0x66   :  { %2635 = vmatprep.subr.bf16.mxu1 %v7014_v56  ;;  %v7059_v54 = vld [vmem:[%s9430_s0 + $0x84] ss:$20 sps:$4 sm:$0xff]   ;;  %v7062_v56 = vld [vmem:[%s9430_s0 + $0xac] ss:$20 sps:$4 sm:$0xff]  }
  0x68   :  { %1877 = vmatpush1.bf16.msra.mxu0 %v6952_v43  ;;  %v7029_v43 = vld [vmem:[%s9430_s0 + $0x320] ss:$20 sps:$4 sm:$0xff]  }
  0x69   :  { %1878 = vmatprep.subr.bf16.mxu0 %v6960_v45  ;;  %2636 = vmatpush1.bf16.msra.mxu1 %v7012_v60  ;;  %v7041_v45 = vld [vmem:[%s9430_s0 + $0x348] ss:$20 sps:$4 sm:$0xff]  }
  0x6a   :  { %1688 = vmatmul.mubr.bf16.gmra.mrb[20].mxu0 %v6915_v47  ;;  %2447 = vmatmul.mubr.bf16.gmra.mrb[20].mxu1 %v6915_v47  ;;  %v5920_v47 = vcombine.low %v7778_v10, %v7778_v10  ;;  %v7068_v60 = vld [vmem:[%s9430_s0 + $0xfc] ss:$20 sps:$4 sm:$0xff]   ;;  %v7083_v10 = vld [vmem:[%s9430_s0 + $0x1c4] ss:$20 sps:$4 sm:$0xff]  }
  0x6b   :  { %1697 = vmatprep.mubr.bf16.mxu0 %v6919_v48  ;;  %2456 = vmatprep.mubr.bf16.mxu1 %v6919_v48  ;;  %v7048_v48 = vld [vmem:[%s9430_s0 + $0x8] ss:$20 sps:$4 sm:$0xff]  }
  0x6c   :  { %1879 = vmatpush1.bf16.msra.mxu0 %v6958_v49  ;;  %2637 = vmatprep.subr.bf16.mxu1 %v7020_v62  ;;  %v7053_v49 = vld [vmem:[%s9430_s0 + $0x34] ss:$20 sps:$4 sm:$0xff]   ;;  %v1594_v50 = vsel %vm1592_vm0, %v5920_v47, 0  ;;  %v7146_v47 = vld [vmem:[%s9431_s3 + $0x50] ss:$8 sps:$4 sm:$0xff]  }
  0x6d   :  { %1880 = vmatprep.subr.bf16.mxu0 %v6978_v51  ;;  %2638 = vmatpush1.bf16.msra.mxu1 %v7018_v0  ;;  %v7055_v51 = vld [vmem:[%s9430_s0 + $0x30] ss:$20 sps:$4 sm:$0xff]  }
  0x6e   :  { %2639 = vmatprep.subr.bf16.mxu1 %v7026_v3  ;;  %v7073_v3 = vld [vmem:[%s9430_s0 + $0x120] ss:$20 sps:$4 sm:$0xff]  }
  0x70   :  { %1881 = vmatpush1.bf16.msra.mxu0 %v6976_v53  ;;  %v7058_v53 = vld [vmem:[%s9430_s0 + $0x58] ss:$20 sps:$4 sm:$0xff]  }
  0x71   :  { %1882 = vmatprep.subr.bf16.mxu0 %v6990_v55  ;;  %2640 = vmatpush1.bf16.msra.mxu1 %v7024_v6  ;;  %v7061_v55 = vld [vmem:[%s9430_s0 + $0x80] ss:$20 sps:$4 sm:$0xff]  }
  0x72   :  { %1698 = vmatmul.mubr.bf16.gmra.mrb[24].mxu0 %v6921_v57  ;;  %2457 = vmatmul.mubr.bf16.gmra.mrb[24].mxu1 %v6921_v57  ;;  %v7064_v57 = vld [vmem:[%s9430_s0 + $0xa8] ss:$20 sps:$4 sm:$0xff]  }
  0x73   :  { %1707 = vmatprep.mubr.bf16.mxu0 %v6922_v58  ;;  %2466 = vmatprep.mubr.bf16.mxu1 %v6922_v58  ;;  %v7065_v58 = vld [vmem:[%s9430_s0 + $0xd4] ss:$20 sps:$4 sm:$0xff]  }
  0x74   :  { %1883 = vmatpush1.bf16.msra.mxu0 %v6988_v59  ;;  %2641 = vmatprep.subr.bf16.mxu1 %v7032_v7  ;;  %v7067_v59 = vld [vmem:[%s9430_s0 + $0xd0] ss:$20 sps:$4 sm:$0xff]   ;;  %v7077_v6 = vld [vmem:[%s9430_s0 + $0x174] ss:$20 sps:$4 sm:$0xff]  }
  0x75   :  { %1884 = vmatprep.subr.bf16.mxu0 %v7007_v61  ;;  %2642 = vmatpush1.bf16.msra.mxu1 %v7030_v9  ;;  %v302_v61 = vld [vmem:[%s9429_s1 + $0x408] sm:$0x33]  ;;  %v7079_v7 = vld [vmem:[%s9430_s0 + $0x170] ss:$20 sps:$4 sm:$0xff]  }
  0x76   :  { %2643 = vmatprep.subr.bf16.mxu1 %v7035_v11  ;;  %v5923_v62 = vcombine.high %v302_v61, %v302_v61  ;;  %v7082_v9 = vld [vmem:[%s9430_s0 + $0x198] ss:$20 sps:$4 sm:$0xff]   ;;  %v7085_v11 = vld [vmem:[%s9430_s0 + $0x1c0] ss:$20 sps:$4 sm:$0xff]  }
  0x78   :  { %1885 = vmatpush1.bf16.msra.mxu0 %v7005_v63  ;;  %v5922_v63 = vcombine.low %v302_v61, %v302_v61  ;;  %v7174_v61 = vld [vmem:[%s9431_s3 + $0xb4] ss:$8 sps:$4 sm:$0xff]  }
  0x79   :  { %1886 = vmatprep.subr.bf16.mxu0 %v7023_v2  ;;  %2644 = vmatpush1.bf16.msra.mxu1 %v7033_v16  ;;  %v7071_v2 = vld [vmem:[%s9430_s0 + $0x124] ss:$20 sps:$4 sm:$0xff]  }
  0x7a   :  { %1708 = vmatmul.mubr.bf16.gmra.mrb[28].mxu0 %v6927_v1  ;;  %2467 = vmatmul.mubr.bf16.gmra.mrb[28].mxu1 %v6927_v1  ;;  %v1600_v0 = vsel %vm1592_vm0, %v5922_v63, 0  ;;  %v7070_v1 = vld [vmem:[%s9430_s0 + $0xf8] ss:$20 sps:$4 sm:$0xff]   ;;  %v7091_v16 = vld [vmem:[%s9430_s0 + $0x210] ss:$20 sps:$4 sm:$0xff]  }
  0x7b   :  { %1717 = vmatprep.mubr.bf16.mxu0 %v6928_v4  ;;  %2476 = vmatprep.mubr.bf16.mxu1 %v6928_v4  ;;  %v7074_v4 = vld [vmem:[%s9430_s0 + $0x14c] ss:$20 sps:$4 sm:$0xff]  }
  0x7c   :  { %1887 = vmatpush1.bf16.msra.mxu0 %v7021_v5  ;;  %2645 = vmatprep.subr.bf16.mxu1 %v7044_v17  ;;  %v7076_v5 = vld [vmem:[%s9430_s0 + $0x148] ss:$20 sps:$4 sm:$0xff]   ;;  %v7178_v63 = vld [vmem:[%s9431_s3 + $0xc4] ss:$8 sps:$4 sm:$0xff]  }
  0x7d   :  { %1888 = vmatprep.subr.bf16.mxu0 %v7038_v8  ;;  %2646 = vmatpush1.bf16.msra.mxu1 %v7042_v18  ;;  %v7080_v8 = vld [vmem:[%s9430_s0 + $0x19c] ss:$20 sps:$4 sm:$0xff]   ;;  %v7094_v18 = vld [vmem:[%s9430_s0 + $0x238] ss:$20 sps:$4 sm:$0xff]  }
  0x7e   :  { %2647 = vmatprep.subr.bf16.mxu1 %v7047_v19  ;;  %v7092_v17 = vld [vmem:[%s9430_s0 + $0x23c] ss:$20 sps:$4 sm:$0xff]   ;;  %v7095_v19 = vld [vmem:[%s9430_s0 + $0x264] ss:$20 sps:$4 sm:$0xff]  }
  0x80   :  { %1889 = vmatpush1.bf16.msra.mxu0 %v7036_v12  ;;  %v7086_v12 = vld [vmem:[%s9430_s0 + $0x1ec] ss:$20 sps:$4 sm:$0xff]  }
  0x81   :  { %5924 = vmatprep.subr.msk.bf16.mxu0 %vm1592_vm0, %v5921_v15  ;;  %2648 = vmatpush1.bf16.msra.mxu1 %v7045_v22  ;;  %v7089_v15 = vld [vmem:[%s9430_s0 + $0x214] ss:$20 sps:$4 sm:$0xff]  }
  0x82   :  { %1718 = vmatmul.mubr.bf16.gmra.mrb[32].mxu0 %v6930_v13  ;;  %2477 = vmatmul.mubr.bf16.gmra.mrb[32].mxu1 %v6930_v13  ;;  %v7088_v13 = vld [vmem:[%s9430_s0 + $0x1e8] ss:$20 sps:$4 sm:$0xff]  }
  0x83   :  { %1727 = vmatprep.mubr.bf16.mxu0 %v6934_v14  ;;  %2486 = vmatprep.mubr.bf16.mxu1 %v6934_v14  ;;  %v7126_v14 = vld [vmem:[%s9431_s3 + $0x4] ss:$8 sps:$4 sm:$0xff]   ;;  %v7100_v22 = vld [vmem:[%s9430_s0 + $0x288] ss:$20 sps:$4 sm:$0xff]  }
  0x84   :  { %5947 = vmatprep.subr.msk.bf16.mxu1 %vm1592_vm0, %v5923_v62  ;;  %v7172_v62 = vld [vmem:[%s9431_s3 + $0xb0] ss:$8 sps:$4 sm:$0xff]  }
  0x8a   :  { %1728 = vmatmul.mubr.bf16.gmra.mrb[36].mxu0 %v6936_v20  ;;  %2487 = vmatmul.mubr.bf16.gmra.mrb[36].mxu1 %v6936_v20  ;;  %v7097_v20 = vld [vmem:[%s9430_s0 + $0x260] ss:$20 sps:$4 sm:$0xff]  }
  0x8b   :  { %1737 = vmatprep.mubr.bf16.mxu0 %v6940_v21  ;;  %2496 = vmatprep.mubr.bf16.mxu1 %v6940_v21  ;;  %v7098_v21 = vld [vmem:[%s9430_s0 + $0x28c] ss:$20 sps:$4 sm:$0xff]  }
  0x92   :  { %1738 = vmatmul.mubr.bf16.gmra.mrb[40].mxu0 %v6942_v23  ;;  %2497 = vmatmul.mubr.bf16.gmra.mrb[40].mxu1 %v6942_v23  ;;  %v7101_v23 = vld [vmem:[%s9430_s0 + $0x2b4] ss:$20 sps:$4 sm:$0xff]  }
  0x93   :  { %1747 = vmatprep.mubr.bf16.mxu0 %v6943_v24  ;;  %2506 = vmatprep.mubr.bf16.mxu1 %v6943_v24  ;;  %v7103_v24 = vld [vmem:[%s9430_s0 + $0x2b0] ss:$20 sps:$4 sm:$0xff]  }
  0x9a   :  { %1748 = vmatmul.mubr.bf16.gmra.mrb[44].mxu0 %v6945_v25  ;;  %2507 = vmatmul.mubr.bf16.gmra.mrb[44].mxu1 %v6945_v25  ;;  %v7104_v25 = vld [vmem:[%s9430_s0 + $0x2dc] ss:$20 sps:$4 sm:$0xff]  }
  0x9b   :  { %1757 = vmatprep.mubr.bf16.mxu0 %v6949_v26  ;;  %2516 = vmatprep.mubr.bf16.mxu1 %v6949_v26  ;;  %v7106_v26 = vld [vmem:[%s9430_s0 + $0x2d8] ss:$20 sps:$4 sm:$0xff]  }
  0xa2   :  { %1758 = vmatmul.mubr.bf16.gmra.mrb[48].mxu0 %v6951_v27  ;;  %2517 = vmatmul.mubr.bf16.gmra.mrb[48].mxu1 %v6951_v27  ;;  %v7107_v27 = vld [vmem:[%s9430_s0 + $0x304] ss:$20 sps:$4 sm:$0xff]  }
  0xa3   :  { %1767 = vmatprep.mubr.bf16.mxu0 %v6955_v28  ;;  %2526 = vmatprep.mubr.bf16.mxu1 %v6955_v28  ;;  %v7109_v28 = vld [vmem:[%s9430_s0 + $0x300] ss:$20 sps:$4 sm:$0xff]  }
  0xaa   :  { %1768 = vmatmul.mubr.bf16.gmra.mrb[52].mxu0 %v6957_v29  ;;  %2527 = vmatmul.mubr.bf16.gmra.mrb[52].mxu1 %v6957_v29  ;;  %v7110_v29 = vld [vmem:[%s9430_s0 + $0x32c] ss:$20 sps:$4 sm:$0xff]  }
  0xab   :  { %1777 = vmatprep.mubr.bf16.mxu0 %v6961_v30  ;;  %2536 = vmatprep.mubr.bf16.mxu1 %v6961_v30  ;;  %v7112_v30 = vld [vmem:[%s9430_s0 + $0x328] ss:$20 sps:$4 sm:$0xff]  }
  0xb2   :  { %1778 = vmatmul.mubr.bf16.gmra.mrb[56].mxu0 %v6963_v31  ;;  %2537 = vmatmul.mubr.bf16.gmra.mrb[56].mxu1 %v6963_v31  ;;  %v7113_v31 = vld [vmem:[%s9430_s0 + $0x354] ss:$20 sps:$4 sm:$0xff]  }
  0xb3   :  { %1787 = vmatprep.mubr.bf16.mxu0 %v6970_v32  ;;  %2546 = vmatprep.mubr.bf16.mxu1 %v6970_v32  ;;  %v7115_v32 = vld [vmem:[%s9430_s0 + $0x350] ss:$20 sps:$4 sm:$0xff]  }
  0xba   :  { %1788 = vmatmul.mubr.bf16.gmra.mrb[60].mxu0 %v6972_v33  ;;  %2547 = vmatmul.mubr.bf16.gmra.mrb[60].mxu1 %v6972_v33  ;;  %v9441_v33 = vmov 0  }
  0xbb   :  { %1797 = vmatprep.mubr.bf16.mxu0 %v6982_v34  ;;  %2556 = vmatprep.mubr.bf16.mxu1 %v6982_v34  ;;  %v7118_v34 = vld [vmem:[%s9430_s0 + $0x10] ss:$20 sps:$4 sm:$0xff]  }
  0xc2   :  { %1798 = vmatmul.mubr.bf16.gmra.mrb[64].mxu0 %v6984_v35  ;;  %2557 = vmatmul.mubr.bf16.gmra.mrb[64].mxu1 %v6984_v35  ;;  %v7124_v35 = vld [vmem:[%s9431_s3] ss:$8 sps:$4 sm:$0xff]  }
  0xc3   :  { %1807 = vmatprep.mubr.bf16.mxu0 %v6994_v36  ;;  %2566 = vmatprep.mubr.bf16.mxu1 %v6994_v36  ;;  %v7131_v36 = vld [vmem:[%s9431_s3 + $0x14] ss:$8 sps:$4 sm:$0xff]  }
  0xca   :  { %1808 = vmatmul.mubr.bf16.gmra.mrb[68].mxu0 %v6996_v37  ;;  %2567 = vmatmul.mubr.bf16.gmra.mrb[68].mxu1 %v6996_v37  ;;  %v7129_v37 = vld [vmem:[%s9431_s3 + $0x10] ss:$8 sps:$4 sm:$0xff]  }
  0xcb   :  { %1817 = vmatprep.mubr.bf16.mxu0 %v7003_v38  ;;  %2576 = vmatprep.mubr.bf16.mxu1 %v7003_v38  ;;  %v7135_v38 = vld [vmem:[%s9431_s3 + $0x24] ss:$8 sps:$4 sm:$0xff]  }
  0xd2   :  { %1818 = vmatmul.mubr.bf16.gmra.mrb[72].mxu0 %v7008_v39  ;;  %2577 = vmatmul.mubr.bf16.gmra.mrb[72].mxu1 %v7008_v39  ;;  %v7119_v39 = vld [vmem:[%s9430_s0 + $0x38] ss:$20 sps:$4 sm:$0xff]  }
  0xd3   :  { %1827 = vmatprep.mubr.bf16.mxu0 %v7015_v40  ;;  %2586 = vmatprep.mubr.bf16.mxu1 %v7015_v40  ;;  %v7133_v40 = vld [vmem:[%s9431_s3 + $0x20] ss:$8 sps:$4 sm:$0xff]  }
  0xda   :  { %1828 = vmatmul.mubr.bf16.gmra.mrb[76].mxu0 %v7017_v41  ;;  %2587 = vmatmul.mubr.bf16.gmra.mrb[76].mxu1 %v7017_v41  ;;  %v7139_v41 = vld [vmem:[%s9431_s3 + $0x34] ss:$8 sps:$4 sm:$0xff]  }
  0xdb   :  { %1837 = vmatprep.mubr.bf16.mxu0 %v7027_v42  ;;  %2596 = vmatprep.mubr.bf16.mxu1 %v7027_v42  ;;  %v7137_v42 = vld [vmem:[%s9431_s3 + $0x30] ss:$8 sps:$4 sm:$0xff]  }
  0xe2   :  { %1838 = vmatmul.mubr.bf16.gmra.mrb[80].mxu0 %v7029_v43  ;;  %2597 = vmatmul.mubr.bf16.gmra.mrb[80].mxu1 %v7029_v43  ;;  %v7144_v43 = vld [vmem:[%s9431_s3 + $0x44] ss:$8 sps:$4 sm:$0xff]  }
  0xe3   :  { %1847 = vmatprep.mubr.bf16.mxu0 %v7039_v44  ;;  %2606 = vmatprep.mubr.bf16.mxu1 %v7039_v44  ;;  %v7120_v44 = vld [vmem:[%s9430_s0 + $0x60] ss:$20 sps:$4 sm:$0xff]  }
  0xea   :  { %1848 = vmatmul.mubr.bf16.gmra.mrb[84].mxu0 %v7041_v45  ;;  %2607 = vmatmul.mubr.bf16.gmra.mrb[84].mxu1 %v7041_v45  ;;  %v7142_v45 = vld [vmem:[%s9431_s3 + $0x40] ss:$8 sps:$4 sm:$0xff]  }
  0xeb   :  { %1890 = vmatprep.mubr.bf16.mxu0 %v7050_v46  ;;  %2649 = vmatprep.mubr.bf16.mxu1 %v7050_v46  ;;  %v7148_v46 = vld [vmem:[%s9431_s3 + $0x54] ss:$8 sps:$4 sm:$0xff]  }
  0xf2   :  { %1891 = vmatmul.mubr.bf16.vlgmr.msra.gmra.mrb[0].mxu0 %v7048_v48  ;;  %2650 = vmatmul.mubr.bf16.vlgmr.msra.gmra.mrb[0].mxu1 %v7048_v48  ;;  %v7153_v48 = vld [vmem:[%s9431_s3 + $0x64] ss:$8 sps:$4 sm:$0xff]  }
  0xf3   :  { %2112 = vmatpush1.bf16.msra.mxu0 %v1594_v50  ;;  %1900 = vmatprep.mubr.bf16.mxu0 %v7053_v49  ;;  %v7151_v50 = vld [vmem:[%s9431_s3 + $0x60] ss:$8 sps:$4 sm:$0xff]  }
  0xf4   :  { %2659 = vmatprep.mubr.bf16.mxu1 %v7053_v49  ;;  %2871 = vmatpush1.bf16.msra.mxu1 %v1600_v0  ;;  %v7121_v49 = vld [vmem:[%s9430_s0 + $0x88] ss:$20 sps:$4 sm:$0xff]   ;;  %v7127_v0 = vld [vmem:[%s9430_s0 + $0x100] ss:$20 sps:$4 sm:$0xff]  }
  0xf5   :  { %3783 = vmatprep.subr.bf16.mxu0 %v7126_v14 }
  0xfa   :  { %1901 = vmatmul.mubr.bf16.gmra.mrb[4].mxu0 %v7055_v51  ;;  %2660 = vmatmul.mubr.bf16.gmra.mrb[4].mxu1 %v7055_v51  ;;  %v7157_v51 = vld [vmem:[%s9431_s3 + $0x74] ss:$8 sps:$4 sm:$0xff]  }
  0xfb   :  { %1910 = vmatprep.mubr.bf16.mxu0 %v7056_v52  ;;  %2669 = vmatprep.mubr.bf16.mxu1 %v7056_v52  ;;  %v7155_v52 = vld [vmem:[%s9431_s3 + $0x70] ss:$8 sps:$4 sm:$0xff]  }
 0x102   :  { %1911 = vmatmul.mubr.bf16.gmra.mrb[8].mxu0 %v7058_v53  ;;  %2670 = vmatmul.mubr.bf16.gmra.mrb[8].mxu1 %v7058_v53  ;;  %v7161_v53 = vld [vmem:[%s9431_s3 + $0x84] ss:$8 sps:$4 sm:$0xff]  }
 0x103   :  { %1920 = vmatprep.mubr.bf16.mxu0 %v7059_v54  ;;  %2679 = vmatprep.mubr.bf16.mxu1 %v7059_v54  ;;  %v7122_v54 = vld [vmem:[%s9430_s0 + $0xb0] ss:$20 sps:$4 sm:$0xff]  }
 0x10a   :  { %1921 = vmatmul.mubr.bf16.gmra.mrb[12].mxu0 %v7061_v55  ;;  %2680 = vmatmul.mubr.bf16.gmra.mrb[12].mxu1 %v7061_v55  ;;  %v7159_v55 = vld [vmem:[%s9431_s3 + $0x80] ss:$8 sps:$4 sm:$0xff]  }
 0x10b   :  { %1930 = vmatprep.mubr.bf16.mxu0 %v7062_v56  ;;  %2689 = vmatprep.mubr.bf16.mxu1 %v7062_v56  ;;  %v7166_v56 = vld [vmem:[%s9431_s3 + $0x94] ss:$8 sps:$4 sm:$0xff]  }
 0x112   :  { %1931 = vmatmul.mubr.bf16.gmra.mrb[16].mxu0 %v7064_v57  ;;  %2690 = vmatmul.mubr.bf16.gmra.mrb[16].mxu1 %v7064_v57  ;;  %v7164_v57 = vld [vmem:[%s9431_s3 + $0x90] ss:$8 sps:$4 sm:$0xff]  }
 0x113   :  { %1940 = vmatprep.mubr.bf16.mxu0 %v7065_v58  ;;  %2699 = vmatprep.mubr.bf16.mxu1 %v7065_v58  ;;  %v7170_v58 = vld [vmem:[%s9431_s3 + $0xa4] ss:$8 sps:$4 sm:$0xff]  }
 0x11a   :  { %1941 = vmatmul.mubr.bf16.gmra.mrb[20].mxu0 %v7067_v59  ;;  %2700 = vmatmul.mubr.bf16.gmra.mrb[20].mxu1 %v7067_v59  ;;  %v7123_v59 = vld [vmem:[%s9430_s0 + $0xd8] ss:$20 sps:$4 sm:$0xff]  }
 0x11b   :  { %1950 = vmatprep.mubr.bf16.mxu0 %v7068_v60  ;;  %2709 = vmatprep.mubr.bf16.mxu1 %v7068_v60  ;;  %v7168_v60 = vld [vmem:[%s9431_s3 + $0xa0] ss:$8 sps:$4 sm:$0xff]  }
 0x122   :  { %1951 = vmatmul.mubr.bf16.gmra.mrb[24].mxu0 %v7070_v1  ;;  %2710 = vmatmul.mubr.bf16.gmra.mrb[24].mxu1 %v7070_v1  ;;  %v7176_v1 = vld [vmem:[%s9431_s3 + $0xc0] ss:$8 sps:$4 sm:$0xff]  }
 0x123   :  { %1960 = vmatprep.mubr.bf16.mxu0 %v7071_v2  ;;  %2719 = vmatprep.mubr.bf16.mxu1 %v7071_v2  ;;  %v7181_v2 = vld [vmem:[%s9431_s3 + $0xd4] ss:$8 sps:$4 sm:$0xff]  }
 0x12a   :  { %1961 = vmatmul.mubr.bf16.gmra.mrb[28].mxu0 %v7073_v3  ;;  %2720 = vmatmul.mubr.bf16.gmra.mrb[28].mxu1 %v7073_v3  ;;  %v7179_v3 = vld [vmem:[%s9431_s3 + $0xd0] ss:$8 sps:$4 sm:$0xff]  }
 0x12b   :  { %1970 = vmatprep.mubr.bf16.mxu0 %v7074_v4  ;;  %2729 = vmatprep.mubr.bf16.mxu1 %v7074_v4  ;;  %v7184_v4 = vld [vmem:[%s9431_s3 + $0xe4] ss:$8 sps:$4 sm:$0xff]  }
 0x132   :  { %1971 = vmatmul.mubr.bf16.gmra.mrb[32].mxu0 %v7076_v5  ;;  %2730 = vmatmul.mubr.bf16.gmra.mrb[32].mxu1 %v7076_v5  ;;  %v7128_v5 = vld [vmem:[%s9430_s0 + $0x128] ss:$20 sps:$4 sm:$0xff]  }
 0x133   :  { %1980 = vmatprep.mubr.bf16.mxu0 %v7077_v6  ;;  %2739 = vmatprep.mubr.bf16.mxu1 %v7077_v6  ;;  %v7182_v6 = vld [vmem:[%s9431_s3 + $0xe0] ss:$8 sps:$4 sm:$0xff]  }
 0x13a   :  { %1981 = vmatmul.mubr.bf16.gmra.mrb[36].mxu0 %v7079_v7  ;;  %2740 = vmatmul.mubr.bf16.gmra.mrb[36].mxu1 %v7079_v7  ;;  %v7132_v7 = vld [vmem:[%s9430_s0 + $0x150] ss:$20 sps:$4 sm:$0xff]  }
 0x13b   :  { %1990 = vmatprep.mubr.bf16.mxu0 %v7080_v8  ;;  %2749 = vmatprep.mubr.bf16.mxu1 %v7080_v8  ;;  %v7136_v8 = vld [vmem:[%s9430_s0 + $0x178] ss:$20 sps:$4 sm:$0xff]  }
 0x142   :  { %1991 = vmatmul.mubr.bf16.gmra.mrb[40].mxu0 %v7082_v9  ;;  %2750 = vmatmul.mubr.bf16.gmra.mrb[40].mxu1 %v7082_v9  ;;  %v305_v9 = vlaneseq }
 0x143   :  { %2000 = vmatprep.mubr.bf16.mxu0 %v7083_v10  ;;  %2759 = vmatprep.mubr.bf16.mxu1 %v7083_v10  ;;  %v7140_v10 = vld [vmem:[%s9430_s0 + $0x1a0] ss:$20 sps:$4 sm:$0xff]  }
 0x14a   :  { %2001 = vmatmul.mubr.bf16.gmra.mrb[44].mxu0 %v7085_v11  ;;  %2760 = vmatmul.mubr.bf16.gmra.mrb[44].mxu1 %v7085_v11  ;;  %v8190_v11 = vshrl.u32 %v305_v9, 7 }
 0x14b   :  { %2010 = vmatprep.mubr.bf16.mxu0 %v7086_v12  ;;  %2769 = vmatprep.mubr.bf16.mxu1 %v7086_v12  ;;  %v8195_v12 = vld [vmem:[%s9432_s2] sm:$0xf] }
 0x14c   :  { %v319_v14 = vsub.s32 3, %v8190_v11 }
 0x152   :  { %2011 = vmatmul.mubr.bf16.gmra.mrb[48].mxu0 %v7088_v13  ;;  %2770 = vmatmul.mubr.bf16.gmra.mrb[48].mxu1 %v7088_v13  ;;  %v315_v13 = vsub.s32 2, %v8190_v11 }
 0x153   :  { %2020 = vmatprep.mubr.bf16.mxu0 %v7089_v15  ;;  %2779 = vmatprep.mubr.bf16.mxu1 %v7089_v15 }
 0x154   :  { %v8204_v15 = vrot.slane %v8195_v12, %v315_v13 }
 0x15a   :  { %2021 = vmatmul.mubr.bf16.gmra.mrb[52].mxu0 %v7091_v16  ;;  %2780 = vmatmul.mubr.bf16.gmra.mrb[52].mxu1 %v7091_v16  ;;  %v8207_v16 = vrot.slane %v8195_v12, %v319_v14 }
 0x15b   :  { %2030 = vmatprep.mubr.bf16.mxu0 %v7092_v17  ;;  %2789 = vmatprep.mubr.bf16.mxu1 %v7092_v17  ;;  %v7141_v17 = vld [vmem:[%s9430_s0 + $0x1c8] ss:$20 sps:$4 sm:$0xff]  }
 0x162   :  { %2031 = vmatmul.mubr.bf16.gmra.mrb[56].mxu0 %v7094_v18  ;;  %2790 = vmatmul.mubr.bf16.gmra.mrb[56].mxu1 %v7094_v18  ;;  %v7187_v18 = vld [vmem:[%s9431_s3 + $0xf4] ss:$8 sps:$4 sm:$0xff]  }
 0x163   :  { %2040 = vmatprep.mubr.bf16.mxu0 %v7095_v19  ;;  %2799 = vmatprep.mubr.bf16.mxu1 %v7095_v19  ;;  %v7185_v19 = vld [vmem:[%s9431_s3 + $0xf0] ss:$8 sps:$4 sm:$0xff]  }
 0x16a   :  { %2041 = vmatmul.mubr.bf16.gmra.mrb[60].mxu0 %v7097_v20  ;;  %2800 = vmatmul.mubr.bf16.gmra.mrb[60].mxu1 %v7097_v20  ;;  %v7145_v20 = vld [vmem:[%s9430_s0 + $0x1f0] ss:$20 sps:$4 sm:$0xff]  }
 0x16b   :  { %2050 = vmatprep.mubr.bf16.mxu0 %v7098_v21  ;;  %2809 = vmatprep.mubr.bf16.mxu1 %v7098_v21  ;;  %v7190_v21 = vld [vmem:[%s9431_s3 + $0x104] ss:$8 sps:$4 sm:$0xff]  }
 0x172   :  { %2051 = vmatmul.mubr.bf16.gmra.mrb[64].mxu0 %v7100_v22  ;;  %2810 = vmatmul.mubr.bf16.gmra.mrb[64].mxu1 %v7100_v22  ;;  %v7149_v22 = vld [vmem:[%s9430_s0 + $0x218] ss:$20 sps:$4 sm:$0xff]  }
 0x173   :  { %2060 = vmatprep.mubr.bf16.mxu0 %v7101_v23  ;;  %2819 = vmatprep.mubr.bf16.mxu1 %v7101_v23  ;;  %v7150_v23 = vld [vmem:[%s9430_s0 + $0x240] ss:$20 sps:$4 sm:$0xff]  }
 0x17a   :  { %2061 = vmatmul.mubr.bf16.gmra.mrb[68].mxu0 %v7103_v24  ;;  %2820 = vmatmul.mubr.bf16.gmra.mrb[68].mxu1 %v7103_v24  ;;  %v7154_v24 = vld [vmem:[%s9430_s0 + $0x268] ss:$20 sps:$4 sm:$0xff]  }
 0x17b   :  { %2070 = vmatprep.mubr.bf16.mxu0 %v7104_v25  ;;  %2829 = vmatprep.mubr.bf16.mxu1 %v7104_v25  ;;  %v7158_v25 = vld [vmem:[%s9430_s0 + $0x290] ss:$20 sps:$4 sm:$0xff]  }
 0x182   :  { %2071 = vmatmul.mubr.bf16.gmra.mrb[72].mxu0 %v7106_v26  ;;  %2830 = vmatmul.mubr.bf16.gmra.mrb[72].mxu1 %v7106_v26  ;;  %v7162_v26 = vld [vmem:[%s9430_s0 + $0x2b8] ss:$20 sps:$4 sm:$0xff]  }
 0x183   :  { %2080 = vmatprep.mubr.bf16.mxu0 %v7107_v27  ;;  %2839 = vmatprep.mubr.bf16.mxu1 %v7107_v27  ;;  %v7163_v27 = vld [vmem:[%s9430_s0 + $0x2e0] ss:$20 sps:$4 sm:$0xff]  }
 0x18a   :  { %2081 = vmatmul.mubr.bf16.gmra.mrb[76].mxu0 %v7109_v28  ;;  %2840 = vmatmul.mubr.bf16.gmra.mrb[76].mxu1 %v7109_v28  ;;  %v7167_v28 = vld [vmem:[%s9430_s0 + $0x308] ss:$20 sps:$4 sm:$0xff]  }
 0x18b   :  { %2090 = vmatprep.mubr.bf16.mxu0 %v7110_v29  ;;  %2849 = vmatprep.mubr.bf16.mxu1 %v7110_v29  ;;  %v7171_v29 = vld [vmem:[%s9430_s0 + $0x330] ss:$20 sps:$4 sm:$0xff]  }
 0x192   :  { %2091 = vmatmul.mubr.bf16.gmra.mrb[80].mxu0 %v7112_v30  ;;  %2850 = vmatmul.mubr.bf16.gmra.mrb[80].mxu1 %v7112_v30  ;;  %v7175_v30 = vld [vmem:[%s9430_s0 + $0x358] ss:$20 sps:$4 sm:$0xff]  }
 0x193   :  { %2100 = vmatprep.mubr.bf16.mxu0 %v7113_v31  ;;  %2859 = vmatprep.mubr.bf16.mxu1 %v7113_v31  ;;  %v8294_v31 = vsub.s32 0, %v8190_v11 }
 0x195   :  { %9447 = vst [vmem:[#allocation3_spill] sm:$0xff] %v8294_v31 }
 0x19a   :  { %2101 = vmatmul.mubr.bf16.gmra.mrb[84].mxu0 %v7115_v32  ;;  %2860 = vmatmul.mubr.bf16.gmra.mrb[84].mxu1 %v7115_v32  ;;  %v8297_v32 = vsub.s32 1, %v8190_v11 }
 0x19b   :  { %2143 = vmatprep.mubr.bf16.mxu0 %v9441_v33  ;;  %2902 = vmatprep.mubr.bf16.mxu1 %v9441_v33 }
 0x19c   :  { %9448 = vst [vmem:[#allocation4_spill] sm:$0xff] %v8297_v32 }
 0x1a2   :  { %5925 = vmatmul.mubr.msk.bf16.vlgmr.msra.gmra.mrb[0].mxu0 %vm1525_vm1, %v7118_v34  ;;  %5948 = vmatmul.mubr.msk.bf16.vlgmr.msra.gmra.mrb[0].mxu1 %vm1525_vm1, %v7118_v34  ;;  %v8301_v34 = vrot.slane %v8195_v12, %v8294_v31 }
 0x1a3   :  { %2153 = vmatprep.mubr.bf16.mxu0 %v9441_v33  ;;  %2912 = vmatprep.mubr.bf16.mxu1 %v9441_v33 }
 0x1a4   :  { %3784 = vmatpush1.bf16.msra.mxu0 %v7124_v35  ;;  %v8305_v35 = vrot.slane %v8195_v12, %v8297_v32 }
 0x1a5   :  { %3785 = vmatprep.subr.bf16.mxu0 %v7131_v36 }
 0x1a8   :  { %3786 = vmatpush1.bf16.msra.mxu0 %v7129_v37 }
 0x1a9   :  { %3787 = vmatprep.subr.bf16.mxu0 %v7135_v38 }
 0x1aa   :  { %5926 = vmatmul.mubr.msk.bf16.gmra.mrb[4].mxu0 %vm1525_vm1, %v7119_v39  ;;  %5949 = vmatmul.mubr.msk.bf16.gmra.mrb[4].mxu1 %vm1525_vm1, %v7119_v39 }
 0x1ab   :  { %2163 = vmatprep.mubr.bf16.mxu0 %v9441_v33  ;;  %2922 = vmatprep.mubr.bf16.mxu1 %v9441_v33 }
 0x1ac   :  { %3788 = vmatpush1.bf16.msra.mxu0 %v7133_v40 }
 0x1ad   :  { %3789 = vmatprep.subr.bf16.mxu0 %v7139_v41 }
 0x1b0   :  { %3790 = vmatpush1.bf16.msra.mxu0 %v7137_v42 }
 0x1b1   :  { %3791 = vmatprep.subr.bf16.mxu0 %v7144_v43 }
 0x1b2   :  { %5927 = vmatmul.mubr.msk.bf16.gmra.mrb[8].mxu0 %vm1525_vm1, %v7120_v44  ;;  %5950 = vmatmul.mubr.msk.bf16.gmra.mrb[8].mxu1 %vm1525_vm1, %v7120_v44 }
 0x1b3   :  { %2173 = vmatprep.mubr.bf16.mxu0 %v9441_v33  ;;  %2932 = vmatprep.mubr.bf16.mxu1 %v9441_v33 }
 0x1b4   :  { %3792 = vmatpush1.bf16.msra.mxu0 %v7142_v45 }
 0x1b5   :  { %3793 = vmatprep.subr.bf16.mxu0 %v7148_v46 }
 0x1b8   :  { %3794 = vmatpush1.bf16.msra.mxu0 %v7146_v47 }
 0x1b9   :  { %3795 = vmatprep.subr.bf16.mxu0 %v7153_v48 }
 0x1ba   :  { %5928 = vmatmul.mubr.msk.bf16.gmra.mrb[12].mxu0 %vm1525_vm1, %v7121_v49  ;;  %5951 = vmatmul.mubr.msk.bf16.gmra.mrb[12].mxu1 %vm1525_vm1, %v7121_v49 }
 0x1bb   :  { %2183 = vmatprep.mubr.bf16.mxu0 %v9441_v33  ;;  %2942 = vmatprep.mubr.bf16.mxu1 %v9441_v33 }
 0x1bc   :  { %3796 = vmatpush1.bf16.msra.mxu0 %v7151_v50 }
 0x1bd   :  { %3797 = vmatprep.subr.bf16.mxu0 %v7157_v51 }
 0x1c0   :  { %3798 = vmatpush1.bf16.msra.mxu0 %v7155_v52 }
 0x1c1   :  { %3799 = vmatprep.subr.bf16.mxu0 %v7161_v53 }
 0x1c2   :  { %5929 = vmatmul.mubr.msk.bf16.gmra.mrb[16].mxu0 %vm1525_vm1, %v7122_v54  ;;  %5952 = vmatmul.mubr.msk.bf16.gmra.mrb[16].mxu1 %vm1525_vm1, %v7122_v54 }
 0x1c3   :  { %2193 = vmatprep.mubr.bf16.mxu0 %v9441_v33  ;;  %2952 = vmatprep.mubr.bf16.mxu1 %v9441_v33 }
 0x1c4   :  { %3800 = vmatpush1.bf16.msra.mxu0 %v7159_v55 }
 0x1c5   :  { %3801 = vmatprep.subr.bf16.mxu0 %v7166_v56 }
 0x1c8   :  { %3802 = vmatpush1.bf16.msra.mxu0 %v7164_v57 }
 0x1c9   :  { %3803 = vmatprep.subr.bf16.mxu0 %v7170_v58 }
 0x1ca   :  { %5930 = vmatmul.mubr.msk.bf16.gmra.mrb[20].mxu0 %vm1525_vm1, %v7123_v59  ;;  %5953 = vmatmul.mubr.msk.bf16.gmra.mrb[20].mxu1 %vm1525_vm1, %v7123_v59 }
 0x1cb   :  { %2203 = vmatprep.mubr.bf16.mxu0 %v9441_v33  ;;  %2962 = vmatprep.mubr.bf16.mxu1 %v9441_v33 }
 0x1cc   :  { %3804 = vmatpush1.bf16.msra.mxu0 %v7168_v60 }
 0x1cd   :  { %3805 = vmatprep.subr.bf16.mxu0 %v7174_v61 }
 0x1d0   :  { %3806 = vmatpush1.bf16.msra.mxu0 %v7172_v62 }
 0x1d1   :  { %3807 = vmatprep.subr.bf16.mxu0 %v7178_v63 }
 0x1d2   :  { %5931 = vmatmul.mubr.msk.bf16.gmra.mrb[24].mxu0 %vm1525_vm1, %v7127_v0  ;;  %5954 = vmatmul.mubr.msk.bf16.gmra.mrb[24].mxu1 %vm1525_vm1, %v7127_v0 }
 0x1d3   :  { %2213 = vmatprep.mubr.bf16.mxu0 %v9441_v33  ;;  %2972 = vmatprep.mubr.bf16.mxu1 %v9441_v33 }
 0x1d4   :  { %3808 = vmatpush1.bf16.msra.mxu0 %v7176_v1  ;;  %v7188_v1 = vld [vmem:[%s9431_s3 + $0x100] ss:$8 sps:$4 sm:$0xff]  }
 0x1d5   :  { %3809 = vmatprep.subr.bf16.mxu0 %v7181_v2 }
 0x1d8   :  { %3810 = vmatpush1.bf16.msra.mxu0 %v7179_v3 }
 0x1d9   :  { %3811 = vmatprep.subr.bf16.mxu0 %v7184_v4 }
 0x1da   :  { %5932 = vmatmul.mubr.msk.bf16.gmra.mrb[28].mxu0 %vm1525_vm1, %v7128_v5  ;;  %5955 = vmatmul.mubr.msk.bf16.gmra.mrb[28].mxu1 %vm1525_vm1, %v7128_v5 }
 0x1db   :  { %2223 = vmatprep.mubr.bf16.mxu0 %v9441_v33  ;;  %2982 = vmatprep.mubr.bf16.mxu1 %v9441_v33 }
 0x1dc   :  { %3812 = vmatpush1.bf16.msra.mxu0 %v7182_v6 }
 0x1dd   :  { %3813 = vmatprep.subr.bf16.mxu0 %v7187_v18 }
 0x1e0   :  { %3814 = vmatpush1.bf16.msra.mxu0 %v7185_v19 }
 0x1e1   :  { %4036 = vmatprep.subr.bf16.mxu0 %v7190_v21 }
 0x1e2   :  { %5933 = vmatmul.mubr.msk.bf16.gmra.mrb[32].mxu0 %vm1525_vm1, %v7132_v7  ;;  %5956 = vmatmul.mubr.msk.bf16.gmra.mrb[32].mxu1 %vm1525_vm1, %v7132_v7  ;;  %v7193_v7 = vld [vmem:[%s9431_s3 + $0x114] ss:$8 sps:$4 sm:$0xff]  }
 0x1e3   :  { %2233 = vmatprep.mubr.bf16.mxu0 %v9441_v33  ;;  %2992 = vmatprep.mubr.bf16.mxu1 %v9441_v33 }
 0x1ea   :  { %5934 = vmatmul.mubr.msk.bf16.gmra.mrb[36].mxu0 %vm1525_vm1, %v7136_v8  ;;  %5957 = vmatmul.mubr.msk.bf16.gmra.mrb[36].mxu1 %vm1525_vm1, %v7136_v8 }
 0x1eb   :  { %2243 = vmatprep.mubr.bf16.mxu0 %v9441_v33  ;;  %3002 = vmatprep.mubr.bf16.mxu1 %v9441_v33 }
 0x1f2   :  { %5935 = vmatmul.mubr.msk.bf16.gmra.mrb[40].mxu0 %vm1525_vm1, %v7140_v10  ;;  %5958 = vmatmul.mubr.msk.bf16.gmra.mrb[40].mxu1 %vm1525_vm1, %v7140_v10 }
 0x1f3   :  { %2253 = vmatprep.mubr.bf16.mxu0 %v9441_v33  ;;  %3012 = vmatprep.mubr.bf16.mxu1 %v9441_v33 }
 0x1fa   :  { %5936 = vmatmul.mubr.msk.bf16.gmra.mrb[44].mxu0 %vm1525_vm1, %v7141_v17  ;;  %5959 = vmatmul.mubr.msk.bf16.gmra.mrb[44].mxu1 %vm1525_vm1, %v7141_v17 }
 0x1fb   :  { %2263 = vmatprep.mubr.bf16.mxu0 %v9441_v33  ;;  %3022 = vmatprep.mubr.bf16.mxu1 %v9441_v33 }
 0x202   :  { %5937 = vmatmul.mubr.msk.bf16.gmra.mrb[48].mxu0 %vm1525_vm1, %v7145_v20  ;;  %5960 = vmatmul.mubr.msk.bf16.gmra.mrb[48].mxu1 %vm1525_vm1, %v7145_v20  ;;  %v7191_v20 = vld [vmem:[%s9431_s3 + $0x110] ss:$8 sps:$4 sm:$0xff]  }
 0x203   :  { %2273 = vmatprep.mubr.bf16.mxu0 %v9441_v33  ;;  %3032 = vmatprep.mubr.bf16.mxu1 %v9441_v33 }
 0x20a   :  { %5938 = vmatmul.mubr.msk.bf16.gmra.mrb[52].mxu0 %vm1525_vm1, %v7149_v22  ;;  %5961 = vmatmul.mubr.msk.bf16.gmra.mrb[52].mxu1 %vm1525_vm1, %v7149_v22 }
 0x20b   :  { %2283 = vmatprep.mubr.bf16.mxu0 %v9441_v33  ;;  %3042 = vmatprep.mubr.bf16.mxu1 %v9441_v33 }
 0x212   :  { %5939 = vmatmul.mubr.msk.bf16.gmra.mrb[56].mxu0 %vm1525_vm1, %v7150_v23  ;;  %5962 = vmatmul.mubr.msk.bf16.gmra.mrb[56].mxu1 %vm1525_vm1, %v7150_v23 }
 0x213   :  { %2293 = vmatprep.mubr.bf16.mxu0 %v9441_v33  ;;  %3052 = vmatprep.mubr.bf16.mxu1 %v9441_v33 }
 0x21a   :  { %5940 = vmatmul.mubr.msk.bf16.gmra.mrb[60].mxu0 %vm1525_vm1, %v7154_v24  ;;  %5963 = vmatmul.mubr.msk.bf16.gmra.mrb[60].mxu1 %vm1525_vm1, %v7154_v24 }
 0x21b   :  { %2303 = vmatprep.mubr.bf16.mxu0 %v9441_v33  ;;  %3062 = vmatprep.mubr.bf16.mxu1 %v9441_v33 }
 0x222   :  { %5941 = vmatmul.mubr.msk.bf16.gmra.mrb[64].mxu0 %vm1525_vm1, %v7158_v25  ;;  %5964 = vmatmul.mubr.msk.bf16.gmra.mrb[64].mxu1 %vm1525_vm1, %v7158_v25  ;;  %v7196_v25 = vld [vmem:[%s9431_s3 + $0x124] ss:$8 sps:$4 sm:$0xff]  }
 0x223   :  { %2313 = vmatprep.mubr.bf16.mxu0 %v9441_v33  ;;  %3072 = vmatprep.mubr.bf16.mxu1 %v9441_v33 }
 0x22a   :  { %5942 = vmatmul.mubr.msk.bf16.gmra.mrb[68].mxu0 %vm1525_vm1, %v7162_v26  ;;  %5965 = vmatmul.mubr.msk.bf16.gmra.mrb[68].mxu1 %vm1525_vm1, %v7162_v26 }
 0x22b   :  { %2323 = vmatprep.mubr.bf16.mxu0 %v9441_v33  ;;  %3082 = vmatprep.mubr.bf16.mxu1 %v9441_v33 }
 0x232   :  { %5943 = vmatmul.mubr.msk.bf16.gmra.mrb[72].mxu0 %vm1525_vm1, %v7163_v27  ;;  %5966 = vmatmul.mubr.msk.bf16.gmra.mrb[72].mxu1 %vm1525_vm1, %v7163_v27 }
 0x233   :  { %2333 = vmatprep.mubr.bf16.mxu0 %v9441_v33  ;;  %3092 = vmatprep.mubr.bf16.mxu1 %v9441_v33 }
 0x23a   :  { %5944 = vmatmul.mubr.msk.bf16.gmra.mrb[76].mxu0 %vm1525_vm1, %v7167_v28  ;;  %5967 = vmatmul.mubr.msk.bf16.gmra.mrb[76].mxu1 %vm1525_vm1, %v7167_v28 }
 0x23b   :  { %2343 = vmatprep.mubr.bf16.mxu0 %v9441_v33  ;;  %3102 = vmatprep.mubr.bf16.mxu1 %v9441_v33 }
 0x242   :  { %5945 = vmatmul.mubr.msk.bf16.gmra.mrb[80].mxu0 %vm1525_vm1, %v7171_v29  ;;  %5968 = vmatmul.mubr.msk.bf16.gmra.mrb[80].mxu1 %vm1525_vm1, %v7171_v29 }
 0x243   :  { %2353 = vmatprep.mubr.bf16.mxu0 %v9441_v33  ;;  %3112 = vmatprep.mubr.bf16.mxu1 %v9441_v33 }
 0x24a   :  { %5946 = vmatmul.mubr.msk.bf16.gmra.mrb[84].mxu0 %vm1525_vm1, %v7175_v30  ;;  %5969 = vmatmul.mubr.msk.bf16.gmra.mrb[84].mxu1 %vm1525_vm1, %v7175_v30 }
 0x275   :  { %v2145_v36 = vpop.f32.mrb[0].mxu0  ;;  %v2904_v37 = vpop.f32.mrb[0].mxu1 }
 0x276   :  { %v6085_v38 = vadd.f32 %v2145_v36, %v8301_v34  ;;  %v6173_v39 = vadd.f32 %v2904_v37, %v8204_v15  ;;  %v2147_v40 = vpop.f32.mrb[1].mxu0  ;;  %v2906_v41 = vpop.f32.mrb[1].mxu1 }
 0x277   :  { %v6086_v42 = vadd.f32 %v2147_v40, %v8305_v35  ;;  %v6174_v43 = vadd.f32 %v2906_v41, %v8207_v16  ;;  %v2149_v44 = vpop.f32.mrb[2].mxu0  ;;  %v2908_v45 = vpop.f32.mrb[2].mxu1  ;;  %v7194_v40 = vld [vmem:[%s9431_s3 + $0x120] ss:$8 sps:$4 sm:$0xff]  }
 0x278   :  { %v6087_v46 = vadd.f32 %v2149_v44, %v8301_v34  ;;  %v6175_v47 = vadd.f32 %v2908_v45, %v8204_v15  ;;  %v2151_v48 = vpop.f32.mrb[3].mxu0  ;;  %v2910_v49 = vpop.f32.mrb[3].mxu1  ;;  %v3123_v52 = vmax.f32 %v6085_v38, 0.0  ;;  %v3125_v53 = vmax.f32 %v6173_v39, 0.0 }
 0x279   :  { %v6088_v50 = vadd.f32 %v2151_v48, %v8305_v35  ;;  %v6176_v51 = vadd.f32 %v2910_v49, %v8207_v16  ;;  %v3124_v56 = vmax.f32 %v6086_v42, 0.0  ;;  %v3126_v57 = vmax.f32 %v6174_v43, 0.0 }
 0x27a   :  { %v3127_v54 = vmax.f32 %v6087_v46, 0.0  ;;  %v3129_v55 = vmax.f32 %v6175_v47, 0.0  ;;  %v7199_v46 = vld [vmem:[%s9431_s3 + $0x134] ss:$8 sps:$4 sm:$0xff]  }
 0x27b   :  { %v3128_v58 = vmax.f32 %v6088_v50, 0.0  ;;  %v3130_v59 = vmax.f32 %v6176_v51, 0.0 }
 0x27c   :  { %v3299_v60 = vpack.c.bf16 %v3127_v54, %v3123_v52  ;;  %v8315_v61 = vpack.c.bf16 %v3129_v55, %v3125_v53 }
 0x27d   :  { %v3300_v62 = vpack.c.bf16 %v3128_v58, %v3124_v56  ;;  %v2155_v63 = vpop.f32.mrb[4].mxu0  ;;  %v2914_v0 = vpop.f32.mrb[4].mxu1  ;;  %v8320_v2 = vpack.c.bf16 %v3130_v59, %v3126_v57  ;;  %v7197_v57 = vld [vmem:[%s9431_s3 + $0x130] ss:$8 sps:$4 sm:$0xff]  }
 0x27e   :  { %v6089_v3 = vadd.f32 %v2155_v63, %v8301_v34  ;;  %v6177_v4 = vadd.f32 %v2914_v0, %v8204_v15  ;;  %v2157_v5 = vpop.f32.mrb[5].mxu0  ;;  %v2916_v6 = vpop.f32.mrb[5].mxu1  ;;  %v7202_v63 = vld [vmem:[%s9431_s3 + $0x144] ss:$8 sps:$4 sm:$0xff]  }
 0x27f   :  { %v6090_v8 = vadd.f32 %v2157_v5, %v8305_v35  ;;  %v6178_v9 = vadd.f32 %v2916_v6, %v8207_v16  ;;  %v2159_v10 = vpop.f32.mrb[6].mxu0  ;;  %v2918_v11 = vpop.f32.mrb[6].mxu1  ;;  %3815 = vmatprep.mubr.bf16.mxu0 %v3300_v62 }
 0x280   :  { %v6091_v12 = vadd.f32 %v2159_v10, %v8301_v34  ;;  %v6179_v13 = vadd.f32 %v2918_v11, %v8204_v15  ;;  %v2161_v14 = vpop.f32.mrb[7].mxu0  ;;  %v2920_v17 = vpop.f32.mrb[7].mxu1  ;;  %3816 = vmatmul.mubr.bf16.vlgmr.msra.gmra.mrb[88].mxu0 %v3299_v60  ;;  %v3131_v21 = vmax.f32 %v6089_v3, 0.0  ;;  %v3133_v22 = vmax.f32 %v6177_v4, 0.0  ;;  %v7200_v11 = vld [vmem:[%s9431_s3 + $0x140] ss:$8 sps:$4 sm:$0xff]  }
 0x281   :  { %v6092_v18 = vadd.f32 %v2161_v14, %v8305_v35  ;;  %v6180_v19 = vadd.f32 %v2920_v17, %v8207_v16  ;;  %4037 = vmatpush1.bf16.msra.mxu0 %v7188_v1  ;;  %v3132_v26 = vmax.f32 %v6090_v8, 0.0  ;;  %v3134_v27 = vmax.f32 %v6178_v9, 0.0 }
 0x282   :  { %v3135_v23 = vmax.f32 %v6091_v12, 0.0  ;;  %v3137_v24 = vmax.f32 %v6179_v13, 0.0  ;;  %4038 = vmatprep.subr.bf16.mxu0 %v7193_v7 }
 0x283   :  { %v3136_v28 = vmax.f32 %v6092_v18, 0.0  ;;  %v3138_v29 = vmax.f32 %v6180_v19, 0.0  ;;  %v7205_v18 = vld [vmem:[%s9431_s3 + $0x154] ss:$8 sps:$4 sm:$0xff]  }
 0x284   :  { %v3303_v30 = vpack.c.bf16 %v3135_v23, %v3131_v21  ;;  %v8339_v36 = vpack.c.bf16 %v3137_v24, %v3133_v22 }
 0x285   :  { %v3304_v37 = vpack.c.bf16 %v3136_v28, %v3132_v26  ;;  %v2165_v38 = vpop.f32.mrb[8].mxu0  ;;  %v2924_v39 = vpop.f32.mrb[8].mxu1  ;;  %4039 = vmatpush1.bf16.msra.mxu0 %v7191_v20  ;;  %v8344_v41 = vpack.c.bf16 %v3138_v29, %v3134_v27  ;;  %v7203_v29 = vld [vmem:[%s9431_s3 + $0x150] ss:$8 sps:$4 sm:$0xff]  }
 0x286   :  { %v6093_v42 = vadd.f32 %v2165_v38, %v8301_v34  ;;  %v6181_v43 = vadd.f32 %v2924_v39, %v8204_v15  ;;  %v2167_v44 = vpop.f32.mrb[9].mxu0  ;;  %v2926_v45 = vpop.f32.mrb[9].mxu1  ;;  %4040 = vmatprep.subr.bf16.mxu0 %v7196_v25 }
 0x287   :  { %v6094_v47 = vadd.f32 %v2167_v44, %v8305_v35  ;;  %v6182_v48 = vadd.f32 %v2926_v45, %v8207_v16  ;;  %v2169_v49 = vpop.f32.mrb[10].mxu0  ;;  %v2928_v50 = vpop.f32.mrb[10].mxu1  ;;  %3825 = vmatprep.mubr.bf16.mxu0 %v3304_v37 }
 0x288   :  { %v6095_v51 = vadd.f32 %v2169_v49, %v8301_v34  ;;  %v6183_v52 = vadd.f32 %v2928_v50, %v8204_v15  ;;  %v2171_v53 = vpop.f32.mrb[11].mxu0  ;;  %v2930_v54 = vpop.f32.mrb[11].mxu1  ;;  %3826 = vmatmul.mubr.bf16.gmra.mrb[92].mxu0 %v3303_v30  ;;  %v3139_v58 = vmax.f32 %v6093_v42, 0.0  ;;  %v3141_v59 = vmax.f32 %v6181_v43, 0.0 }
 0x289   :  { %v6096_v55 = vadd.f32 %v2171_v53, %v8305_v35  ;;  %v6184_v56 = vadd.f32 %v2930_v54, %v8207_v16  ;;  %4041 = vmatpush1.bf16.msra.mxu0 %v7194_v40  ;;  %v3140_v0 = vmax.f32 %v6094_v47, 0.0  ;;  %v3142_v1 = vmax.f32 %v6182_v48, 0.0  ;;  %v7208_v40 = vld [vmem:[%s9431_s3 + $0x164] ss:$8 sps:$4 sm:$0xff]  }
 0x28a   :  { %v3143_v60 = vmax.f32 %v6095_v51, 0.0  ;;  %v3145_v62 = vmax.f32 %v6183_v52, 0.0  ;;  %4042 = vmatprep.subr.bf16.mxu0 %v7199_v46  ;;  %v7206_v52 = vld [vmem:[%s9431_s3 + $0x160] ss:$8 sps:$4 sm:$0xff]  }
 0x28b   :  { %v3144_v3 = vmax.f32 %v6096_v55, 0.0  ;;  %v3146_v4 = vmax.f32 %v6184_v56, 0.0 }
 0x28c   :  { %v3307_v5 = vpack.c.bf16 %v3143_v60, %v3139_v58  ;;  %v8363_v6 = vpack.c.bf16 %v3145_v62, %v3141_v59 }
 0x28d   :  { %v3308_v7 = vpack.c.bf16 %v3144_v3, %v3140_v0  ;;  %v8365_v8 = vpack.c.bf16 %v3146_v4, %v3142_v1  ;;  %v2175_v9 = vpop.f32.mrb[12].mxu0  ;;  %v2934_v10 = vpop.f32.mrb[12].mxu1  ;;  %4043 = vmatpush1.bf16.msra.mxu0 %v7197_v57  ;;  %v7211_v57 = vld [vmem:[%s9431_s3 + $0x174] ss:$8 sps:$4 sm:$0xff]  }
 0x28e   :  { %v6097_v12 = vadd.f32 %v2175_v9, %v8301_v34  ;;  %v6185_v13 = vadd.f32 %v2934_v10, %v8204_v15  ;;  %v2177_v14 = vpop.f32.mrb[13].mxu0  ;;  %v2936_v17 = vpop.f32.mrb[13].mxu1  ;;  %4044 = vmatprep.subr.bf16.mxu0 %v7202_v63 }
 0x28f   :  { %v6098_v19 = vadd.f32 %v2177_v14, %v8305_v35  ;;  %v6186_v20 = vadd.f32 %v2936_v17, %v8207_v16  ;;  %v2179_v21 = vpop.f32.mrb[14].mxu0  ;;  %v2938_v22 = vpop.f32.mrb[14].mxu1  ;;  %3835 = vmatprep.mubr.bf16.mxu0 %v3308_v7  ;;  %v7209_v7 = vld [vmem:[%s9431_s3 + $0x170] ss:$8 sps:$4 sm:$0xff]  }
 0x290   :  { %v6099_v23 = vadd.f32 %v2179_v21, %v8301_v34  ;;  %v6187_v24 = vadd.f32 %v2938_v22, %v8204_v15  ;;  %v2181_v25 = vpop.f32.mrb[15].mxu0  ;;  %v2940_v26 = vpop.f32.mrb[15].mxu1  ;;  %3836 = vmatmul.mubr.bf16.gmra.mrb[96].mxu0 %v3307_v5  ;;  %v3147_v30 = vmax.f32 %v6097_v12, 0.0  ;;  %v3149_v37 = vmax.f32 %v6185_v13, 0.0  ;;  %v7214_v13 = vld [vmem:[%s9431_s3 + $0x184] ss:$8 sps:$4 sm:$0xff]  }
 0x291   :  { %v6100_v27 = vadd.f32 %v2181_v25, %v8305_v35  ;;  %v6188_v28 = vadd.f32 %v2940_v26, %v8207_v16  ;;  %4045 = vmatpush1.bf16.msra.mxu0 %v7200_v11  ;;  %v3148_v42 = vmax.f32 %v6098_v19, 0.0  ;;  %v3150_v43 = vmax.f32 %v6186_v20, 0.0  ;;  %v7212_v26 = vld [vmem:[%s9431_s3 + $0x180] ss:$8 sps:$4 sm:$0xff]  }
 0x292   :  { %v3151_v38 = vmax.f32 %v6099_v23, 0.0  ;;  %v3153_v39 = vmax.f32 %v6187_v24, 0.0  ;;  %4046 = vmatprep.subr.bf16.mxu0 %v7205_v18 }
 0x293   :  { %v3152_v44 = vmax.f32 %v6100_v27, 0.0  ;;  %v3154_v45 = vmax.f32 %v6188_v28, 0.0 }
 0x294   :  { %v3311_v46 = vpack.c.bf16 %v3151_v38, %v3147_v30  ;;  %v8387_v47 = vpack.c.bf16 %v3153_v39, %v3149_v37  ;;  %v7217_v37 = vld [vmem:[%s9431_s3 + $0x194] ss:$8 sps:$4 sm:$0xff]  }
 0x295   :  { %v3312_v48 = vpack.c.bf16 %v3152_v44, %v3148_v42  ;;  %v8389_v49 = vpack.c.bf16 %v3154_v45, %v3150_v43  ;;  %v2185_v50 = vpop.f32.mrb[16].mxu0  ;;  %v2944_v51 = vpop.f32.mrb[16].mxu1  ;;  %4047 = vmatpush1.bf16.msra.mxu0 %v7203_v29 }
 0x296   :  { %v6101_v53 = vadd.f32 %v2185_v50, %v8301_v34  ;;  %v6189_v54 = vadd.f32 %v2944_v51, %v8204_v15  ;;  %v2187_v55 = vpop.f32.mrb[17].mxu0  ;;  %v2946_v56 = vpop.f32.mrb[17].mxu1  ;;  %4048 = vmatprep.subr.bf16.mxu0 %v7208_v40  ;;  %v7215_v51 = vld [vmem:[%s9431_s3 + $0x190] ss:$8 sps:$4 sm:$0xff]  }
 0x297   :  { %v6102_v58 = vadd.f32 %v2187_v55, %v8305_v35  ;;  %v6190_v59 = vadd.f32 %v2946_v56, %v8207_v16  ;;  %v2189_v60 = vpop.f32.mrb[18].mxu0  ;;  %v2948_v62 = vpop.f32.mrb[18].mxu1  ;;  %3845 = vmatprep.mubr.bf16.mxu0 %v3312_v48  ;;  %v7220_v56 = vld [vmem:[%s9431_s3 + $0x1a4] ss:$8 sps:$4 sm:$0xff]  }
 0x298   :  { %v6103_v63 = vadd.f32 %v2189_v60, %v8301_v34  ;;  %v6191_v0 = vadd.f32 %v2948_v62, %v8204_v15  ;;  %v2191_v1 = vpop.f32.mrb[19].mxu0  ;;  %v2950_v3 = vpop.f32.mrb[19].mxu1  ;;  %3846 = vmatmul.mubr.bf16.gmra.mrb[100].mxu0 %v3311_v46  ;;  %v3155_v9 = vmax.f32 %v6101_v53, 0.0  ;;  %v3157_v10 = vmax.f32 %v6189_v54, 0.0 }
 0x299   :  { %v6104_v4 = vadd.f32 %v2191_v1, %v8305_v35  ;;  %v6192_v5 = vadd.f32 %v2950_v3, %v8207_v16  ;;  %4049 = vmatpush1.bf16.msra.mxu0 %v7206_v52  ;;  %v3156_v14 = vmax.f32 %v6102_v58, 0.0  ;;  %v3158_v17 = vmax.f32 %v6190_v59, 0.0 }
 0x29a   :  { %v3159_v11 = vmax.f32 %v6103_v63, 0.0  ;;  %v3161_v12 = vmax.f32 %v6191_v0, 0.0  ;;  %4050 = vmatprep.subr.bf16.mxu0 %v7211_v57 }
 0x29b   :  { %v3160_v18 = vmax.f32 %v6104_v4, 0.0  ;;  %v3162_v19 = vmax.f32 %v6192_v5, 0.0  ;;  %v7218_v5 = vld [vmem:[%s9431_s3 + $0x1a0] ss:$8 sps:$4 sm:$0xff]  }
 0x29c   :  { %v3315_v20 = vpack.c.bf16 %v3159_v11, %v3155_v9  ;;  %v8411_v21 = vpack.c.bf16 %v3161_v12, %v3157_v10  ;;  %v7223_v12 = vld [vmem:[%s9431_s3 + $0x1b4] ss:$8 sps:$4 sm:$0xff]  }
 0x29d   :  { %v3316_v22 = vpack.c.bf16 %v3160_v18, %v3156_v14  ;;  %v8413_v23 = vpack.c.bf16 %v3162_v19, %v3158_v17  ;;  %v2195_v24 = vpop.f32.mrb[20].mxu0  ;;  %v2954_v25 = vpop.f32.mrb[20].mxu1  ;;  %4051 = vmatpush1.bf16.msra.mxu0 %v7209_v7 }
 0x29e   :  { %v6105_v27 = vadd.f32 %v2195_v24, %v8301_v34  ;;  %v6193_v28 = vadd.f32 %v2954_v25, %v8204_v15  ;;  %v2197_v29 = vpop.f32.mrb[21].mxu0  ;;  %v2956_v30 = vpop.f32.mrb[21].mxu1  ;;  %4052 = vmatprep.subr.bf16.mxu0 %v7214_v13 }
 0x29f   :  { %v6106_v38 = vadd.f32 %v2197_v29, %v8305_v35  ;;  %v6194_v39 = vadd.f32 %v2956_v30, %v8207_v16  ;;  %v2199_v40 = vpop.f32.mrb[22].mxu0  ;;  %v2958_v42 = vpop.f32.mrb[22].mxu1  ;;  %3855 = vmatprep.mubr.bf16.mxu0 %v3316_v22 }
 0x2a0   :  { %v6107_v43 = vadd.f32 %v2199_v40, %v8301_v34  ;;  %v6195_v44 = vadd.f32 %v2958_v42, %v8204_v15  ;;  %v2201_v45 = vpop.f32.mrb[23].mxu0  ;;  %v2960_v46 = vpop.f32.mrb[23].mxu1  ;;  %3856 = vmatmul.mubr.bf16.gmra.mrb[104].mxu0 %v3315_v20  ;;  %v3163_v52 = vmax.f32 %v6105_v27, 0.0  ;;  %v3165_v53 = vmax.f32 %v6193_v28, 0.0  ;;  %v7221_v27 = vld [vmem:[%s9431_s3 + $0x1b0] ss:$8 sps:$4 sm:$0xff]  }
 0x2a1   :  { %v6108_v48 = vadd.f32 %v2201_v45, %v8305_v35  ;;  %v6196_v50 = vadd.f32 %v2960_v46, %v8207_v16  ;;  %4053 = vmatpush1.bf16.msra.mxu0 %v7212_v26  ;;  %v3164_v57 = vmax.f32 %v6106_v38, 0.0  ;;  %v3166_v58 = vmax.f32 %v6194_v39, 0.0  ;;  %v7226_v38 = vld [vmem:[%s9431_s3 + $0x1c4] ss:$8 sps:$4 sm:$0xff]  }
 0x2a2   :  { %v3167_v54 = vmax.f32 %v6107_v43, 0.0  ;;  %v3169_v55 = vmax.f32 %v6195_v44, 0.0  ;;  %4054 = vmatprep.subr.bf16.mxu0 %v7217_v37 }
 0x2a3   :  { %v3168_v59 = vmax.f32 %v6108_v48, 0.0  ;;  %v3170_v60 = vmax.f32 %v6196_v50, 0.0 }
 0x2a4   :  { %v3319_v62 = vpack.c.bf16 %v3167_v54, %v3163_v52  ;;  %v8435_v63 = vpack.c.bf16 %v3169_v55, %v3165_v53  ;;  %v7224_v52 = vld [vmem:[%s9431_s3 + $0x1c0] ss:$8 sps:$4 sm:$0xff]  }
 0x2a5   :  { %v3320_v0 = vpack.c.bf16 %v3168_v59, %v3164_v57  ;;  %v8437_v1 = vpack.c.bf16 %v3170_v60, %v3166_v58  ;;  %v2205_v3 = vpop.f32.mrb[24].mxu0  ;;  %v2964_v4 = vpop.f32.mrb[24].mxu1  ;;  %4055 = vmatpush1.bf16.msra.mxu0 %v7215_v51  ;;  %v7229_v57 = vld [vmem:[%s9431_s3 + $0x1d4] ss:$8 sps:$4 sm:$0xff]  }
 0x2a6   :  { %v6109_v7 = vadd.f32 %v2205_v3, %v8301_v34  ;;  %v6197_v9 = vadd.f32 %v2964_v4, %v8204_v15  ;;  %v2207_v10 = vpop.f32.mrb[25].mxu0  ;;  %v2966_v11 = vpop.f32.mrb[25].mxu1  ;;  %4056 = vmatprep.subr.bf16.mxu0 %v7220_v56 }
 0x2a7   :  { %v6110_v13 = vadd.f32 %v2207_v10, %v8305_v35  ;;  %v6198_v14 = vadd.f32 %v2966_v11, %v8207_v16  ;;  %v2209_v17 = vpop.f32.mrb[26].mxu0  ;;  %v2968_v18 = vpop.f32.mrb[26].mxu1  ;;  %3865 = vmatprep.mubr.bf16.mxu0 %v3320_v0  ;;  %v7227_v10 = vld [vmem:[%s9431_s3 + $0x1d0] ss:$8 sps:$4 sm:$0xff]  }
 0x2a8   :  { %v6111_v19 = vadd.f32 %v2209_v17, %v8301_v34  ;;  %v6199_v20 = vadd.f32 %v2968_v18, %v8204_v15  ;;  %v2211_v22 = vpop.f32.mrb[27].mxu0  ;;  %v2970_v24 = vpop.f32.mrb[27].mxu1  ;;  %3866 = vmatmul.mubr.bf16.gmra.mrb[108].mxu0 %v3319_v62  ;;  %v3171_v28 = vmax.f32 %v6109_v7, 0.0  ;;  %v3173_v29 = vmax.f32 %v6197_v9, 0.0  ;;  %v7232_v17 = vld [vmem:[%s9431_s3 + $0x1e4] ss:$8 sps:$4 sm:$0xff]  }
 0x2a9   :  { %v6112_v25 = vadd.f32 %v2211_v22, %v8305_v35  ;;  %v6200_v26 = vadd.f32 %v2970_v24, %v8207_v16  ;;  %4057 = vmatpush1.bf16.msra.mxu0 %v7218_v5  ;;  %v3172_v39 = vmax.f32 %v6110_v13, 0.0  ;;  %v3174_v40 = vmax.f32 %v6198_v14, 0.0 }
 0x2aa   :  { %v3175_v30 = vmax.f32 %v6111_v19, 0.0  ;;  %v3177_v37 = vmax.f32 %v6199_v20, 0.0  ;;  %4058 = vmatprep.subr.bf16.mxu0 %v7223_v12 }
 0x2ab   :  { %v3176_v42 = vmax.f32 %v6112_v25, 0.0  ;;  %v3178_v43 = vmax.f32 %v6200_v26, 0.0 }
 0x2ac   :  { %v3323_v44 = vpack.c.bf16 %v3175_v30, %v3171_v28  ;;  %v8459_v45 = vpack.c.bf16 %v3177_v37, %v3173_v29  ;;  %v7230_v30 = vld [vmem:[%s9431_s3 + $0x1e0] ss:$8 sps:$4 sm:$0xff]  }
 0x2ad   :  { %v3324_v46 = vpack.c.bf16 %v3176_v42, %v3172_v39  ;;  %v8461_v48 = vpack.c.bf16 %v3178_v43, %v3174_v40  ;;  %v2215_v50 = vpop.f32.mrb[28].mxu0  ;;  %v2974_v51 = vpop.f32.mrb[28].mxu1  ;;  %4059 = vmatpush1.bf16.msra.mxu0 %v7221_v27  ;;  %v7235_v42 = vld [vmem:[%s9431_s3 + $0x1f4] ss:$8 sps:$4 sm:$0xff]  }
 0x2ae   :  { %v6113_v53 = vadd.f32 %v2215_v50, %v8301_v34  ;;  %v6201_v54 = vadd.f32 %v2974_v51, %v8204_v15  ;;  %v2217_v55 = vpop.f32.mrb[29].mxu0  ;;  %v2976_v56 = vpop.f32.mrb[29].mxu1  ;;  %4060 = vmatprep.subr.bf16.mxu0 %v7226_v38 }
 0x2af   :  { %v6114_v58 = vadd.f32 %v2217_v55, %v8305_v35  ;;  %v6202_v59 = vadd.f32 %v2976_v56, %v8207_v16  ;;  %v2219_v60 = vpop.f32.mrb[30].mxu0  ;;  %v2978_v62 = vpop.f32.mrb[30].mxu1  ;;  %3875 = vmatprep.mubr.bf16.mxu0 %v3324_v46 }
 0x2b0   :  { %v6115_v0 = vadd.f32 %v2219_v60, %v8301_v34  ;;  %v6203_v3 = vadd.f32 %v2978_v62, %v8204_v15  ;;  %v2221_v4 = vpop.f32.mrb[31].mxu0  ;;  %v2980_v5 = vpop.f32.mrb[31].mxu1  ;;  %3876 = vmatmul.mubr.bf16.gmra.mrb[112].mxu0 %v3323_v44  ;;  %v3179_v11 = vmax.f32 %v6113_v53, 0.0  ;;  %v3181_v12 = vmax.f32 %v6201_v54, 0.0 }
 0x2b1   :  { %v6116_v7 = vadd.f32 %v2221_v4, %v8305_v35  ;;  %v6204_v9 = vadd.f32 %v2980_v5, %v8207_v16  ;;  %4061 = vmatpush1.bf16.msra.mxu0 %v7224_v52  ;;  %v3180_v18 = vmax.f32 %v6114_v58, 0.0  ;;  %v3182_v19 = vmax.f32 %v6202_v59, 0.0 }
 0x2b2   :  { %v3183_v13 = vmax.f32 %v6115_v0, 0.0  ;;  %v3185_v14 = vmax.f32 %v6203_v3, 0.0  ;;  %4062 = vmatprep.subr.bf16.mxu0 %v7229_v57  ;;  %v7233_v57 = vld [vmem:[%s9431_s3 + $0x1f0] ss:$8 sps:$4 sm:$0xff]  }
 0x2b3   :  { %v3184_v20 = vmax.f32 %v6116_v7, 0.0  ;;  %v3186_v22 = vmax.f32 %v6204_v9, 0.0 }
 0x2b4   :  { %v3327_v24 = vpack.c.bf16 %v3183_v13, %v3179_v11  ;;  %v8483_v25 = vpack.c.bf16 %v3185_v14, %v3181_v12 }
 0x2b5   :  { %v3328_v26 = vpack.c.bf16 %v3184_v20, %v3180_v18  ;;  %v8485_v27 = vpack.c.bf16 %v3186_v22, %v3182_v19  ;;  %v2225_v28 = vpop.f32.mrb[32].mxu0  ;;  %v2984_v29 = vpop.f32.mrb[32].mxu1  ;;  %4063 = vmatpush1.bf16.msra.mxu0 %v7227_v10 }
 0x2b6   :  { %v6117_v37 = vadd.f32 %v2225_v28, %v8301_v34  ;;  %v6205_v38 = vadd.f32 %v2984_v29, %v8204_v15  ;;  %v2227_v39 = vpop.f32.mrb[33].mxu0  ;;  %v2986_v40 = vpop.f32.mrb[33].mxu1  ;;  %4064 = vmatprep.subr.bf16.mxu0 %v7232_v17 }
 0x2b7   :  { %v6118_v43 = vadd.f32 %v2227_v39, %v8305_v35  ;;  %v6206_v44 = vadd.f32 %v2986_v40, %v8207_v16  ;;  %v2229_v46 = vpop.f32.mrb[34].mxu0  ;;  %v2988_v50 = vpop.f32.mrb[34].mxu1  ;;  %3885 = vmatprep.mubr.bf16.mxu0 %v3328_v26 }
 0x2b8   :  { %v6119_v51 = vadd.f32 %v2229_v46, %v8301_v34  ;;  %v6207_v52 = vadd.f32 %v2988_v50, %v8204_v15  ;;  %v2231_v53 = vpop.f32.mrb[35].mxu0  ;;  %v2990_v54 = vpop.f32.mrb[35].mxu1  ;;  %3886 = vmatmul.mubr.bf16.gmra.mrb[116].mxu0 %v3327_v24  ;;  %v3187_v58 = vmax.f32 %v6117_v37, 0.0  ;;  %v3189_v59 = vmax.f32 %v6205_v38, 0.0 }
 0x2b9   :  { %v6120_v55 = vadd.f32 %v2231_v53, %v8305_v35  ;;  %v6208_v56 = vadd.f32 %v2990_v54, %v8207_v16  ;;  %4065 = vmatpush1.bf16.msra.mxu0 %v7230_v30  ;;  %v3188_v0 = vmax.f32 %v6118_v43, 0.0  ;;  %v3190_v3 = vmax.f32 %v6206_v44, 0.0 }
 0x2ba   :  { %v3191_v60 = vmax.f32 %v6119_v51, 0.0  ;;  %v3193_v62 = vmax.f32 %v6207_v52, 0.0  ;;  %4066 = vmatprep.subr.bf16.mxu0 %v7235_v42 }
 0x2bb   :  { %v3192_v4 = vmax.f32 %v6120_v55, 0.0  ;;  %v3194_v5 = vmax.f32 %v6208_v56, 0.0 }
 0x2bc   :  { %v3331_v7 = vpack.c.bf16 %v3191_v60, %v3187_v58  ;;  %v8504_v9 = vpack.c.bf16 %v3193_v62, %v3189_v59 }
 0x2bd   :  { %v3332_v10 = vpack.c.bf16 %v3192_v4, %v3188_v0  ;;  %v8506_v11 = vpack.c.bf16 %v3194_v5, %v3190_v3  ;;  %v2235_v12 = vpop.f32.mrb[36].mxu0  ;;  %v2994_v13 = vpop.f32.mrb[36].mxu1  ;;  %4067 = vmatpush1.bf16.msra.mxu0 %v7233_v57 }
 0x2be   :  { %v6121_v14 = vadd.f32 %v2235_v12, %v8301_v34  ;;  %v6209_v17 = vadd.f32 %v2994_v13, %v8204_v15  ;;  %v2237_v18 = vpop.f32.mrb[37].mxu0  ;;  %v2996_v19 = vpop.f32.mrb[37].mxu1 }
 0x2bf   :  { %v6122_v20 = vadd.f32 %v2237_v18, %v8305_v35  ;;  %v6210_v22 = vadd.f32 %v2996_v19, %v8207_v16  ;;  %v2239_v24 = vpop.f32.mrb[38].mxu0  ;;  %v2998_v26 = vpop.f32.mrb[38].mxu1  ;;  %3895 = vmatprep.mubr.bf16.mxu0 %v3332_v10 }
 0x2c0   :  { %v6123_v28 = vadd.f32 %v2239_v24, %v8301_v34  ;;  %v6211_v29 = vadd.f32 %v2998_v26, %v8204_v15  ;;  %v2241_v30 = vpop.f32.mrb[39].mxu0  ;;  %v3000_v37 = vpop.f32.mrb[39].mxu1  ;;  %3896 = vmatmul.mubr.bf16.gmra.mrb[120].mxu0 %v3331_v7  ;;  %v3195_v40 = vmax.f32 %v6121_v14, 0.0  ;;  %v3197_v42 = vmax.f32 %v6209_v17, 0.0 }
 0x2c1   :  { %v6124_v38 = vadd.f32 %v2241_v30, %v8305_v35  ;;  %v6212_v39 = vadd.f32 %v3000_v37, %v8207_v16  ;;  %v3196_v46 = vmax.f32 %v6122_v20, 0.0  ;;  %v3198_v50 = vmax.f32 %v6210_v22, 0.0 }
 0x2c2   :  { %v3199_v43 = vmax.f32 %v6123_v28, 0.0  ;;  %v3201_v44 = vmax.f32 %v6211_v29, 0.0 }
 0x2c3   :  { %v3200_v51 = vmax.f32 %v6124_v38, 0.0  ;;  %v3202_v52 = vmax.f32 %v6212_v39, 0.0 }
 0x2c4   :  { %v3335_v53 = vpack.c.bf16 %v3199_v43, %v3195_v40  ;;  %v8516_v54 = vpack.c.bf16 %v3201_v44, %v3197_v42 }
 0x2c5   :  { %v3336_v55 = vpack.c.bf16 %v3200_v51, %v3196_v46  ;;  %v8518_v56 = vpack.c.bf16 %v3202_v52, %v3198_v50  ;;  %v2245_v57 = vpop.f32.mrb[40].mxu0  ;;  %v3004_v58 = vpop.f32.mrb[40].mxu1 }
 0x2c6   :  { %v6125_v59 = vadd.f32 %v2245_v57, %v8301_v34  ;;  %v6213_v60 = vadd.f32 %v3004_v58, %v8204_v15  ;;  %v2247_v62 = vpop.f32.mrb[41].mxu0  ;;  %v3006_v0 = vpop.f32.mrb[41].mxu1 }
 0x2c7   :  { %v6126_v3 = vadd.f32 %v2247_v62, %v8305_v35  ;;  %v6214_v4 = vadd.f32 %v3006_v0, %v8207_v16  ;;  %v2249_v5 = vpop.f32.mrb[42].mxu0  ;;  %v3008_v7 = vpop.f32.mrb[42].mxu1  ;;  %3905 = vmatprep.mubr.bf16.mxu0 %v3336_v55 }
 0x2c8   :  { %v6127_v10 = vadd.f32 %v2249_v5, %v8301_v34  ;;  %v6215_v12 = vadd.f32 %v3008_v7, %v8204_v15  ;;  %v2251_v13 = vpop.f32.mrb[43].mxu0  ;;  %v3010_v14 = vpop.f32.mrb[43].mxu1  ;;  %3906 = vmatmul.mubr.bf16.gmra.mrb[124].mxu0 %v3335_v53  ;;  %v3203_v19 = vmax.f32 %v6125_v59, 0.0  ;;  %v3205_v20 = vmax.f32 %v6213_v60, 0.0 }
 0x2c9   :  { %v6128_v17 = vadd.f32 %v2251_v13, %v8305_v35  ;;  %v6216_v18 = vadd.f32 %v3010_v14, %v8207_v16  ;;  %v3204_v26 = vmax.f32 %v6126_v3, 0.0  ;;  %v3206_v28 = vmax.f32 %v6214_v4, 0.0 }
 0x2ca   :  { %v3207_v22 = vmax.f32 %v6127_v10, 0.0  ;;  %v3209_v24 = vmax.f32 %v6215_v12, 0.0 }
 0x2cb   :  { %v3208_v29 = vmax.f32 %v6128_v17, 0.0  ;;  %v3210_v30 = vmax.f32 %v6216_v18, 0.0 }
 0x2cc   :  { %v3339_v37 = vpack.c.bf16 %v3207_v22, %v3203_v19  ;;  %v8528_v38 = vpack.c.bf16 %v3209_v24, %v3205_v20 }
 0x2cd   :  { %v3340_v39 = vpack.c.bf16 %v3208_v29, %v3204_v26  ;;  %v8530_v40 = vpack.c.bf16 %v3210_v30, %v3206_v28  ;;  %v2255_v42 = vpop.f32.mrb[44].mxu0  ;;  %v3014_v43 = vpop.f32.mrb[44].mxu1 }
 0x2ce   :  { %v6129_v44 = vadd.f32 %v2255_v42, %v8301_v34  ;;  %v6217_v46 = vadd.f32 %v3014_v43, %v8204_v15  ;;  %v2257_v50 = vpop.f32.mrb[45].mxu0  ;;  %v3016_v51 = vpop.f32.mrb[45].mxu1 }
 0x2cf   :  { %v6130_v52 = vadd.f32 %v2257_v50, %v8305_v35  ;;  %v6218_v53 = vadd.f32 %v3016_v51, %v8207_v16  ;;  %v2259_v55 = vpop.f32.mrb[46].mxu0  ;;  %v3018_v57 = vpop.f32.mrb[46].mxu1  ;;  %3915 = vmatprep.mubr.bf16.mxu0 %v3340_v39 }
 0x2d0   :  { %v6131_v58 = vadd.f32 %v2259_v55, %v8301_v34  ;;  %v6219_v59 = vadd.f32 %v3018_v57, %v8204_v15  ;;  %v2261_v60 = vpop.f32.mrb[47].mxu0  ;;  %v3020_v62 = vpop.f32.mrb[47].mxu1  ;;  %3916 = vmatmul.mubr.bf16.gmra.mrb[128].mxu0 %v3339_v37  ;;  %v3211_v4 = vmax.f32 %v6129_v44, 0.0  ;;  %v3213_v5 = vmax.f32 %v6217_v46, 0.0 }
 0x2d1   :  { %v6132_v0 = vadd.f32 %v2261_v60, %v8305_v35  ;;  %v6220_v3 = vadd.f32 %v3020_v62, %v8207_v16  ;;  %v3212_v12 = vmax.f32 %v6130_v52, 0.0  ;;  %v3214_v13 = vmax.f32 %v6218_v53, 0.0 }
 0x2d2   :  { %v3215_v7 = vmax.f32 %v6131_v58, 0.0  ;;  %v3217_v10 = vmax.f32 %v6219_v59, 0.0 }
 0x2d3   :  { %v3216_v14 = vmax.f32 %v6132_v0, 0.0  ;;  %v3218_v17 = vmax.f32 %v6220_v3, 0.0  ;;  %v7236_v3 = vld [vmem:[%s9433_s5] ss:$8 sps:$4 sm:$0xff]  }
 0x2d4   :  { %v3343_v18 = vpack.c.bf16 %v3215_v7, %v3211_v4  ;;  %v8540_v19 = vpack.c.bf16 %v3217_v10, %v3213_v5  ;;  %v7238_v7 = vld [vmem:[%s9433_s5 + $0x4] ss:$8 sps:$4 sm:$0xff]  }
 0x2d5   :  { %v3344_v20 = vpack.c.bf16 %v3216_v14, %v3212_v12  ;;  %v8542_v22 = vpack.c.bf16 %v3218_v17, %v3214_v13  ;;  %v2265_v24 = vpop.f32.mrb[48].mxu0  ;;  %v3024_v26 = vpop.f32.mrb[48].mxu1  ;;  %4625 = vmatprep.subr.bf16.mxu1 %v7238_v7 }
 0x2d6   :  { %v6133_v28 = vadd.f32 %v2265_v24, %v8301_v34  ;;  %v6221_v29 = vadd.f32 %v3024_v26, %v8204_v15  ;;  %v2267_v30 = vpop.f32.mrb[49].mxu0  ;;  %v3026_v37 = vpop.f32.mrb[49].mxu1  ;;  %4626 = vmatpush1.bf16.msra.mxu1 %v7236_v3 }
 0x2d7   :  { %v6134_v39 = vadd.f32 %v2267_v30, %v8305_v35  ;;  %v6222_v42 = vadd.f32 %v3026_v37, %v8207_v16  ;;  %v2269_v43 = vpop.f32.mrb[50].mxu0  ;;  %v3028_v44 = vpop.f32.mrb[50].mxu1  ;;  %3925 = vmatprep.mubr.bf16.mxu0 %v3344_v20 }
 0x2d8   :  { %v3219_v46 = vmax.f32 %v6133_v28, 0.0  ;;  %v3221_v50 = vmax.f32 %v6221_v29, 0.0  ;;  %v6135_v51 = vadd.f32 %v2269_v43, %v8301_v34  ;;  %v6223_v52 = vadd.f32 %v3028_v44, %v8204_v15  ;;  %v2271_v53 = vpop.f32.mrb[51].mxu0  ;;  %v3030_v55 = vpop.f32.mrb[51].mxu1  ;;  %3926 = vmatmul.mubr.bf16.gmra.mrb[132].mxu0 %v3343_v18 }
 0x2d9   :  { %v3220_v57 = vmax.f32 %v6134_v39, 0.0  ;;  %v3222_v58 = vmax.f32 %v6222_v42, 0.0  ;;  %v6136_v59 = vadd.f32 %v2271_v53, %v8305_v35  ;;  %v6224_v60 = vadd.f32 %v3030_v55, %v8207_v16 }
 0x2da   :  { %v3223_v62 = vmax.f32 %v6135_v51, 0.0  ;;  %v3225_v0 = vmax.f32 %v6223_v52, 0.0 }
 0x2db   :  { %v3224_v4 = vmax.f32 %v6136_v59, 0.0  ;;  %v3226_v5 = vmax.f32 %v6224_v60, 0.0 }
 0x2dc   :  { %v3347_v10 = vpack.c.bf16 %v3223_v62, %v3219_v46  ;;  %v8558_v12 = vpack.c.bf16 %v3225_v0, %v3221_v50 }
 0x2dd   :  { %v3348_v13 = vpack.c.bf16 %v3224_v4, %v3220_v57  ;;  %v8560_v14 = vpack.c.bf16 %v3226_v5, %v3222_v58  ;;  %v2275_v17 = vpop.f32.mrb[52].mxu0  ;;  %v3034_v18 = vpop.f32.mrb[52].mxu1 }
 0x2de   :  { %v6137_v20 = vadd.f32 %v2275_v17, %v8301_v34  ;;  %v6225_v24 = vadd.f32 %v3034_v18, %v8204_v15  ;;  %v2277_v26 = vpop.f32.mrb[53].mxu0  ;;  %v3036_v28 = vpop.f32.mrb[53].mxu1 }
 0x2df   :  { %v6138_v29 = vadd.f32 %v2277_v26, %v8305_v35  ;;  %v6226_v30 = vadd.f32 %v3036_v28, %v8207_v16  ;;  %v2279_v37 = vpop.f32.mrb[54].mxu0  ;;  %v3038_v39 = vpop.f32.mrb[54].mxu1  ;;  %3935 = vmatprep.mubr.bf16.mxu0 %v3348_v13 }
 0x2e0   :  { %v6139_v42 = vadd.f32 %v2279_v37, %v8301_v34  ;;  %v6227_v43 = vadd.f32 %v3038_v39, %v8204_v15  ;;  %v2281_v44 = vpop.f32.mrb[55].mxu0  ;;  %v3040_v46 = vpop.f32.mrb[55].mxu1  ;;  %3936 = vmatmul.mubr.bf16.gmra.mrb[136].mxu0 %v3347_v10  ;;  %v3227_v50 = vmax.f32 %v6137_v20, 0.0  ;;  %v3229_v51 = vmax.f32 %v6225_v24, 0.0 }
 0x2e1   :  { %v6140_v52 = vadd.f32 %v2281_v44, %v8305_v35  ;;  %v6228_v53 = vadd.f32 %v3040_v46, %v8207_v16  ;;  %v3228_v55 = vmax.f32 %v6138_v29, 0.0  ;;  %v3230_v59 = vmax.f32 %v6226_v30, 0.0  ;;  %v7239_v46 = vld [vmem:[%s9433_s5 + $0x10] ss:$8 sps:$4 sm:$0xff]  }
 0x2e2   :  { %v3231_v57 = vmax.f32 %v6139_v42, 0.0  ;;  %v3233_v58 = vmax.f32 %v6227_v43, 0.0 }
 0x2e3   :  { %v3232_v60 = vmax.f32 %v6140_v52, 0.0  ;;  %v3234_v62 = vmax.f32 %v6228_v53, 0.0 }
 0x2e4   :  { %v3351_v0 = vpack.c.bf16 %v3231_v57, %v3227_v50  ;;  %v8570_v3 = vpack.c.bf16 %v3233_v58, %v3229_v51  ;;  %v7241_v50 = vld [vmem:[%s9433_s5 + $0x14] ss:$8 sps:$4 sm:$0xff]  }
 0x2e5   :  { %v3352_v4 = vpack.c.bf16 %v3232_v60, %v3228_v55  ;;  %v8572_v5 = vpack.c.bf16 %v3234_v62, %v3230_v59  ;;  %v2285_v7 = vpop.f32.mrb[56].mxu0  ;;  %v3044_v10 = vpop.f32.mrb[56].mxu1  ;;  %4627 = vmatprep.subr.bf16.mxu1 %v7241_v50  ;;  %v7242_v50 = vld [vmem:[%s9433_s5 + $0x20] ss:$8 sps:$4 sm:$0xff]  }
 0x2e6   :  { %v6141_v13 = vadd.f32 %v2285_v7, %v8301_v34  ;;  %v6229_v17 = vadd.f32 %v3044_v10, %v8204_v15  ;;  %v2287_v18 = vpop.f32.mrb[57].mxu0  ;;  %v3046_v20 = vpop.f32.mrb[57].mxu1  ;;  %4628 = vmatpush1.bf16.msra.mxu1 %v7239_v46 }
 0x2e7   :  { %v6142_v24 = vadd.f32 %v2287_v18, %v8305_v35  ;;  %v6230_v26 = vadd.f32 %v3046_v20, %v8207_v16  ;;  %v2289_v28 = vpop.f32.mrb[58].mxu0  ;;  %v3048_v29 = vpop.f32.mrb[58].mxu1  ;;  %3945 = vmatprep.mubr.bf16.mxu0 %v3352_v4 }
 0x2e8   :  { %v6143_v30 = vadd.f32 %v2289_v28, %v8301_v34  ;;  %v6231_v37 = vadd.f32 %v3048_v29, %v8204_v15  ;;  %v2291_v39 = vpop.f32.mrb[59].mxu0  ;;  %v3050_v42 = vpop.f32.mrb[59].mxu1  ;;  %3946 = vmatmul.mubr.bf16.gmra.mrb[140].mxu0 %v3351_v0  ;;  %v3235_v51 = vmax.f32 %v6141_v13, 0.0  ;;  %v3237_v52 = vmax.f32 %v6229_v17, 0.0 }
 0x2e9   :  { %v6144_v43 = vadd.f32 %v2291_v39, %v8305_v35  ;;  %v6232_v44 = vadd.f32 %v3050_v42, %v8207_v16  ;;  %v3236_v57 = vmax.f32 %v6142_v24, 0.0  ;;  %v3238_v58 = vmax.f32 %v6230_v26, 0.0 }
 0x2ea   :  { %v3239_v53 = vmax.f32 %v6143_v30, 0.0  ;;  %v3241_v55 = vmax.f32 %v6231_v37, 0.0 }
 0x2eb   :  { %v3240_v59 = vmax.f32 %v6144_v43, 0.0  ;;  %v3242_v60 = vmax.f32 %v6232_v44, 0.0 }
 0x2ec   :  { %v3355_v62 = vpack.c.bf16 %v3239_v53, %v3235_v51  ;;  %v8588_v0 = vpack.c.bf16 %v3241_v55, %v3237_v52  ;;  %v7244_v51 = vld [vmem:[%s9433_s5 + $0x24] ss:$8 sps:$4 sm:$0xff]  }
 0x2ed   :  { %v3356_v4 = vpack.c.bf16 %v3240_v59, %v3236_v57  ;;  %v8590_v7 = vpack.c.bf16 %v3242_v60, %v3238_v58  ;;  %v2295_v10 = vpop.f32.mrb[60].mxu0  ;;  %v3054_v18 = vpop.f32.mrb[60].mxu1  ;;  %4629 = vmatprep.subr.bf16.mxu1 %v7244_v51 }
 0x2ee   :  { %v6145_v20 = vadd.f32 %v2295_v10, %v8301_v34  ;;  %v6233_v13 = vadd.f32 %v3054_v18, %v8204_v15  ;;  %v2297_v17 = vpop.f32.mrb[61].mxu0  ;;  %v3056_v28 = vpop.f32.mrb[61].mxu1  ;;  %4630 = vmatpush1.bf16.msra.mxu1 %v7242_v50 }
 0x2ef   :  { %v6146_v24 = vadd.f32 %v2297_v17, %v8305_v35  ;;  %v6234_v26 = vadd.f32 %v3056_v28, %v8207_v16  ;;  %v2299_v29 = vpop.f32.mrb[62].mxu0  ;;  %v3058_v30 = vpop.f32.mrb[62].mxu1  ;;  %3955 = vmatprep.mubr.bf16.mxu0 %v3356_v4 }
 0x2f0   :  { %v6147_v37 = vadd.f32 %v2299_v29, %v8301_v34  ;;  %v6235_v39 = vadd.f32 %v3058_v30, %v8204_v15  ;;  %v2301_v42 = vpop.f32.mrb[63].mxu0  ;;  %v3060_v43 = vpop.f32.mrb[63].mxu1  ;;  %3956 = vmatmul.mubr.bf16.gmra.mrb[144].mxu0 %v3355_v62  ;;  %v3243_v52 = vmax.f32 %v6145_v20, 0.0  ;;  %v3245_v53 = vmax.f32 %v6233_v13, 0.0 }
 0x2f1   :  { %v6148_v44 = vadd.f32 %v2301_v42, %v8305_v35  ;;  %v6236_v46 = vadd.f32 %v3060_v43, %v8207_v16  ;;  %v3244_v58 = vmax.f32 %v6146_v24, 0.0  ;;  %v3246_v59 = vmax.f32 %v6234_v26, 0.0 }
 0x2f2   :  { %v3247_v55 = vmax.f32 %v6147_v37, 0.0  ;;  %v3249_v57 = vmax.f32 %v6235_v39, 0.0 }
 0x2f3   :  { %v3248_v60 = vmax.f32 %v6148_v44, 0.0  ;;  %v3250_v62 = vmax.f32 %v6236_v46, 0.0 }
 0x2f4   :  { %v3359_v4 = vpack.c.bf16 %v3247_v55, %v3243_v52  ;;  %v8606_v10 = vpack.c.bf16 %v3249_v57, %v3245_v53  ;;  %v7245_v53 = vld [vmem:[%s9433_s5 + $0x30] ss:$8 sps:$4 sm:$0xff]   ;;  %v7247_v55 = vld [vmem:[%s9433_s5 + $0x34] ss:$8 sps:$4 sm:$0xff]  }
 0x2f5   :  { %v3360_v18 = vpack.c.bf16 %v3248_v60, %v3244_v58  ;;  %v8608_v17 = vpack.c.bf16 %v3250_v62, %v3246_v59  ;;  %v2305_v28 = vpop.f32.mrb[64].mxu0  ;;  %v3064_v29 = vpop.f32.mrb[64].mxu1  ;;  %4631 = vmatprep.subr.bf16.mxu1 %v7247_v55 }
 0x2f6   :  { %v6149_v30 = vadd.f32 %v2305_v28, %v8301_v34  ;;  %v6237_v20 = vadd.f32 %v3064_v29, %v8204_v15  ;;  %v2307_v13 = vpop.f32.mrb[65].mxu0  ;;  %v3066_v37 = vpop.f32.mrb[65].mxu1  ;;  %4632 = vmatpush1.bf16.msra.mxu1 %v7245_v53 }
 0x2f7   :  { %v6150_v24 = vadd.f32 %v2307_v13, %v8305_v35  ;;  %v6238_v26 = vadd.f32 %v3066_v37, %v8207_v16  ;;  %v2309_v39 = vpop.f32.mrb[66].mxu0  ;;  %v3068_v42 = vpop.f32.mrb[66].mxu1  ;;  %3965 = vmatprep.mubr.bf16.mxu0 %v3360_v18 }
 0x2f8   :  { %v6151_v43 = vadd.f32 %v2309_v39, %v8301_v34  ;;  %v6239_v44 = vadd.f32 %v3068_v42, %v8204_v15  ;;  %v2311_v46 = vpop.f32.mrb[67].mxu0  ;;  %v3070_v50 = vpop.f32.mrb[67].mxu1  ;;  %3966 = vmatmul.mubr.bf16.gmra.mrb[148].mxu0 %v3359_v4  ;;  %v3251_v57 = vmax.f32 %v6149_v30, 0.0  ;;  %v3253_v58 = vmax.f32 %v6237_v20, 0.0 }
 0x2f9   :  { %v6152_v51 = vadd.f32 %v2311_v46, %v8305_v35  ;;  %v6240_v52 = vadd.f32 %v3070_v50, %v8207_v16  ;;  %v3252_v62 = vmax.f32 %v6150_v24, 0.0  ;;  %v3254_v18 = vmax.f32 %v6238_v26, 0.0 }
 0x2fa   :  { %v3255_v59 = vmax.f32 %v6151_v43, 0.0  ;;  %v3257_v60 = vmax.f32 %v6239_v44, 0.0 }
 0x2fb   :  { %v3256_v28 = vmax.f32 %v6152_v51, 0.0  ;;  %v3258_v4 = vmax.f32 %v6240_v52, 0.0 }
 0x2fc   :  { %v3363_v29 = vpack.c.bf16 %v3255_v59, %v3251_v57  ;;  %v8624_v13 = vpack.c.bf16 %v3257_v60, %v3253_v58 }
 0x2fd   :  { %v3364_v37 = vpack.c.bf16 %v3256_v28, %v3252_v62  ;;  %v8626_v39 = vpack.c.bf16 %v3258_v4, %v3254_v18  ;;  %v2315_v42 = vpop.f32.mrb[68].mxu0  ;;  %v3074_v46 = vpop.f32.mrb[68].mxu1 }
 0x2fe   :  { %v6153_v50 = vadd.f32 %v2315_v42, %v8301_v34  ;;  %v6241_v30 = vadd.f32 %v3074_v46, %v8204_v15  ;;  %v2317_v20 = vpop.f32.mrb[69].mxu0  ;;  %v3076_v43 = vpop.f32.mrb[69].mxu1 }
 0x2ff   :  { %v6154_v24 = vadd.f32 %v2317_v20, %v8305_v35  ;;  %v6242_v26 = vadd.f32 %v3076_v43, %v8207_v16  ;;  %v2319_v44 = vpop.f32.mrb[70].mxu0  ;;  %v3078_v51 = vpop.f32.mrb[70].mxu1  ;;  %3975 = vmatprep.mubr.bf16.mxu0 %v3364_v37 }
 0x300   :  { %v6155_v52 = vadd.f32 %v2319_v44, %v8301_v34  ;;  %v6243_v53 = vadd.f32 %v3078_v51, %v8204_v15  ;;  %v2321_v55 = vpop.f32.mrb[71].mxu0  ;;  %v3080_v57 = vpop.f32.mrb[71].mxu1  ;;  %3976 = vmatmul.mubr.bf16.gmra.mrb[152].mxu0 %v3363_v29  ;;  %v3259_v60 = vmax.f32 %v6153_v50, 0.0  ;;  %v3261_v62 = vmax.f32 %v6241_v30, 0.0 }
 0x301   :  { %v6156_v58 = vadd.f32 %v2321_v55, %v8305_v35  ;;  %v6244_v59 = vadd.f32 %v3080_v57, %v8207_v16  ;;  %v3260_v4 = vmax.f32 %v6154_v24, 0.0  ;;  %v3262_v42 = vmax.f32 %v6242_v26, 0.0 }
 0x302   :  { %v3263_v18 = vmax.f32 %v6155_v52, 0.0  ;;  %v3265_v28 = vmax.f32 %v6243_v53, 0.0 }
 0x303   :  { %v3264_v46 = vmax.f32 %v6156_v58, 0.0  ;;  %v3266_v20 = vmax.f32 %v6244_v59, 0.0 }
 0x304   :  { %v3367_v37 = vpack.c.bf16 %v3263_v18, %v3259_v60  ;;  %v8636_v43 = vpack.c.bf16 %v3265_v28, %v3261_v62  ;;  %v7248_v28 = vld [vmem:[%s9433_s5 + $0x40] ss:$8 sps:$4 sm:$0xff]  }
 0x305   :  { %v3368_v44 = vpack.c.bf16 %v3264_v46, %v3260_v4  ;;  %v8638_v51 = vpack.c.bf16 %v3266_v20, %v3262_v42  ;;  %v2325_v33 = vpop.f32.mrb[72].mxu0  ;;  %v3084_v29 = vpop.f32.mrb[72].mxu1  ;;  %v7250_v4 = vld [vmem:[%s9433_s5 + $0x44] ss:$8 sps:$4 sm:$0xff]  }
 0x306   :  { %9449 = vst [vmem:[#allocation5_spill] sm:$0xff] %v8636_v43  ;;  %v6157_v55 = vadd.f32 %v2325_v33, %v8301_v34  ;;  %v6245_v57 = vadd.f32 %v3084_v29, %v8204_v15  ;;  %v2327_v50 = vpop.f32.mrb[73].mxu0  ;;  %v3086_v30 = vpop.f32.mrb[73].mxu1  ;;  %4633 = vmatprep.subr.bf16.mxu1 %v7250_v4 }
 0x307   :  { %v6158_v52 = vadd.f32 %v2327_v50, %v8305_v35  ;;  %v6246_v24 = vadd.f32 %v3086_v30, %v8207_v16  ;;  %v2329_v26 = vpop.f32.mrb[74].mxu0  ;;  %v3088_v53 = vpop.f32.mrb[74].mxu1  ;;  %3985 = vmatprep.mubr.bf16.mxu0 %v3368_v44  ;;  %4634 = vmatpush1.bf16.msra.mxu1 %v7248_v28 }
 0x308   :  { %v6159_v58 = vadd.f32 %v2329_v26, %v8301_v34  ;;  %v6247_v59 = vadd.f32 %v3088_v53, %v8204_v15  ;;  %v2331_v60 = vpop.f32.mrb[75].mxu0  ;;  %v3090_v62 = vpop.f32.mrb[75].mxu1  ;;  %3986 = vmatmul.mubr.bf16.gmra.mrb[156].mxu0 %v3367_v37  ;;  %v3267_v42 = vmax.f32 %v6157_v55, 0.0  ;;  %v3269_v46 = vmax.f32 %v6245_v57, 0.0 }
 0x309   :  { %v6160_v33 = vadd.f32 %v2331_v60, %v8305_v35  ;;  %v6248_v18 = vadd.f32 %v3090_v62, %v8207_v16  ;;  %v3268_v29 = vmax.f32 %v6158_v52, 0.0  ;;  %v3270_v50 = vmax.f32 %v6246_v24, 0.0 }
 0x30a   :  { %v3271_v20 = vmax.f32 %v6159_v58, 0.0  ;;  %v3273_v44 = vmax.f32 %v6247_v59, 0.0 }
 0x30b   :  { %v3272_v30 = vmax.f32 %v6160_v33, 0.0  ;;  %v3274_v37 = vmax.f32 %v6248_v18, 0.0 }
 0x30c   :  { %v3371_v26 = vpack.c.bf16 %v3271_v20, %v3267_v42  ;;  %v8654_v53 = vpack.c.bf16 %v3273_v44, %v3269_v46  ;;  %v7251_v46 = vld [vmem:[%s9433_s5 + $0x50] ss:$8 sps:$4 sm:$0xff]   ;;  %v7253_v20 = vld [vmem:[%s9433_s5 + $0x54] ss:$8 sps:$4 sm:$0xff]  }
 0x30d   :  { %v3372_v60 = vpack.c.bf16 %v3272_v30, %v3268_v29  ;;  %v8656_v62 = vpack.c.bf16 %v3274_v37, %v3270_v50  ;;  %v2335_v32 = vpop.f32.mrb[76].mxu0  ;;  %v3094_v31 = vpop.f32.mrb[76].mxu1  ;;  %4635 = vmatprep.subr.bf16.mxu1 %v7253_v20 }
 0x30e   :  { %9450 = vst [vmem:[#allocation6_spill] sm:$0xff] %v8654_v53  ;;  %v6161_v43 = vadd.f32 %v2335_v32, %v8301_v34  ;;  %v6249_v55 = vadd.f32 %v3094_v31, %v8204_v15  ;;  %v2337_v57 = vpop.f32.mrb[77].mxu0  ;;  %v3096_v58 = vpop.f32.mrb[77].mxu1  ;;  %4636 = vmatpush1.bf16.msra.mxu1 %v7251_v46 }
 0x30f   :  { %9451 = vst [vmem:[#allocation7_spill] sm:$0xff] %v8656_v62  ;;  %v6162_v52 = vadd.f32 %v2337_v57, %v8305_v35  ;;  %v6250_v24 = vadd.f32 %v3096_v58, %v8207_v16  ;;  %v2339_v59 = vpop.f32.mrb[78].mxu0  ;;  %v3098_v33 = vpop.f32.mrb[78].mxu1  ;;  %3995 = vmatprep.mubr.bf16.mxu0 %v3372_v60 }
 0x310   :  { %v6163_v18 = vadd.f32 %v2339_v59, %v8301_v34  ;;  %v6251_v28 = vadd.f32 %v3098_v33, %v8204_v15  ;;  %v2341_v4 = vpop.f32.mrb[79].mxu0  ;;  %v3100_v42 = vpop.f32.mrb[79].mxu1  ;;  %3996 = vmatmul.mubr.bf16.gmra.mrb[160].mxu0 %v3371_v26  ;;  %v3275_v44 = vmax.f32 %v6161_v43, 0.0  ;;  %v3277_v29 = vmax.f32 %v6249_v55, 0.0 }
 0x311   :  { %v6164_v32 = vadd.f32 %v2341_v4, %v8305_v35  ;;  %v6252_v31 = vadd.f32 %v3100_v42, %v8207_v16  ;;  %v3276_v37 = vmax.f32 %v6162_v52, 0.0  ;;  %v3278_v60 = vmax.f32 %v6250_v24, 0.0 }
 0x312   :  { %v3279_v50 = vmax.f32 %v6163_v18, 0.0  ;;  %v3281_v30 = vmax.f32 %v6251_v28, 0.0 }
 0x313   :  { %v3280_v57 = vmax.f32 %v6164_v32, 0.0  ;;  %v3282_v26 = vmax.f32 %v6252_v31, 0.0 }
 0x314   :  { %v3375_v58 = vpack.c.bf16 %v3279_v50, %v3275_v44  ;;  %v8672_v59 = vpack.c.bf16 %v3281_v30, %v3277_v29 }
 0x315   :  { %v3376_v33 = vpack.c.bf16 %v3280_v57, %v3276_v37  ;;  %v8674_v4 = vpack.c.bf16 %v3282_v26, %v3278_v60  ;;  %v2345_v42 = vpop.f32.mrb[80].mxu0  ;;  %v3104_v53 = vpop.f32.mrb[80].mxu1 }
 0x316   :  { %9452 = vst [vmem:[#allocation8_spill] sm:$0xff] %v8672_v59  ;;  %v6165_v62 = vadd.f32 %v2345_v42, %v8301_v34  ;;  %v6253_v43 = vadd.f32 %v3104_v53, %v8204_v15  ;;  %v2347_v55 = vpop.f32.mrb[81].mxu0  ;;  %v3106_v18 = vpop.f32.mrb[81].mxu1 }
 0x317   :  { %v6166_v52 = vadd.f32 %v2347_v55, %v8305_v35  ;;  %v6254_v24 = vadd.f32 %v3106_v18, %v8207_v16  ;;  %v2349_v28 = vpop.f32.mrb[82].mxu0  ;;  %v3108_v32 = vpop.f32.mrb[82].mxu1  ;;  %4005 = vmatprep.mubr.bf16.mxu0 %v3376_v33 }
 0x318   :  { %v6167_v31 = vadd.f32 %v2349_v28, %v8301_v34  ;;  %v6255_v46 = vadd.f32 %v3108_v32, %v8204_v15  ;;  %v2351_v20 = vpop.f32.mrb[83].mxu0  ;;  %v3110_v44 = vpop.f32.mrb[83].mxu1  ;;  %4006 = vmatmul.mubr.bf16.gmra.mrb[164].mxu0 %v3375_v58  ;;  %v3283_v50 = vmax.f32 %v6165_v62, 0.0  ;;  %v3285_v30 = vmax.f32 %v6253_v43, 0.0 }
 0x319   :  { %v6168_v29 = vadd.f32 %v2351_v20, %v8305_v35  ;;  %v6256_v53 = vadd.f32 %v3110_v44, %v8207_v16  ;;  %v3284_v57 = vmax.f32 %v6166_v52, 0.0  ;;  %v3286_v26 = vmax.f32 %v6254_v24, 0.0 }
 0x31a   :  { %v3287_v37 = vmax.f32 %v6167_v31, 0.0  ;;  %v3289_v60 = vmax.f32 %v6255_v46, 0.0 }
 0x31b   :  { %v3288_v42 = vmax.f32 %v6168_v29, 0.0  ;;  %v3290_v55 = vmax.f32 %v6256_v53, 0.0 }
 0x31c   :  { %v3379_v33 = vpack.c.bf16 %v3287_v37, %v3283_v50  ;;  %v8684_v18 = vpack.c.bf16 %v3289_v60, %v3285_v30 }
 0x31d   :  { %v3380_v28 = vpack.c.bf16 %v3288_v42, %v3284_v57  ;;  %v8686_v32 = vpack.c.bf16 %v3290_v55, %v3286_v26  ;;  %v2355_v59 = vpop.f32.mrb[84].mxu0  ;;  %v3114_v58 = vpop.f32.mrb[84].mxu1  ;;  %v7256_v57 = vld [vmem:[%s9433_s5 + $0x64] ss:$8 sps:$4 sm:$0xff]  }
 0x31e   :  { %v6169_v20 = vadd.f32 %v2355_v59, %v8301_v34  ;;  %v6257_v44 = vadd.f32 %v3114_v58, %v8204_v15  ;;  %v2357_v62 = vpop.f32.mrb[85].mxu0  ;;  %v3116_v43 = vpop.f32.mrb[85].mxu1  ;;  %v7254_v59 = vld [vmem:[%s9433_s5 + $0x60] ss:$8 sps:$4 sm:$0xff]   ;;  %4637 = vmatprep.subr.bf16.mxu1 %v7256_v57 }
 0x31f   :  { %v6170_v31 = vadd.f32 %v2357_v62, %v8305_v35  ;;  %v6258_v52 = vadd.f32 %v3116_v43, %v8207_v16  ;;  %v2359_v24 = vpop.f32.mrb[86].mxu0  ;;  %v3118_v46 = vpop.f32.mrb[86].mxu1  ;;  %4015 = vmatprep.mubr.bf16.mxu0 %v3380_v28  ;;  %4638 = vmatpush1.bf16.msra.mxu1 %v7254_v59  ;;  %v7285_v57 = vld [vmem:[%s9434_s7 + $0x8] sm:$0xff]  }
 0x320   :  { %v6171_v29 = vadd.f32 %v2359_v24, %v8301_v34  ;;  %v6259_v53 = vadd.f32 %v3118_v46, %v8204_v15  ;;  %v2361_v50 = vpop.f32.mrb[87].mxu0  ;;  %v3120_v30 = vpop.f32.mrb[87].mxu1  ;;  %4016 = vmatmul.mubr.bf16.gmra.mrb[168].mxu0 %v3379_v33  ;;  %v3291_v26 = vmax.f32 %v6169_v20, 0.0  ;;  %v3293_v42 = vmax.f32 %v6257_v44, 0.0  ;;  %v7259_v20 = vld [vmem:[%s9433_s5 + $0x74] ss:$8 sps:$4 sm:$0xff]  }
 0x321   :  { %v6172_v37 = vadd.f32 %v2361_v50, %v8305_v35  ;;  %v6260_v60 = vadd.f32 %v3120_v30, %v8207_v16  ;;  %v3292_v15 = vmax.f32 %v6170_v31, 0.0  ;;  %v3294_v28 = vmax.f32 %v6258_v52, 0.0  ;;  %v7257_v16 = vld [vmem:[%s9433_s5 + $0x70] ss:$8 sps:$4 sm:$0xff]   ;;  %4639 = vmatprep.subr.bf16.mxu1 %v7259_v20  ;;  %v7260_v44 = vld [vmem:[%s9433_s5 + $0x80] ss:$8 sps:$4 sm:$0xff]  }
 0x322   :  { %v3295_v34 = vmax.f32 %v6171_v29, 0.0  ;;  %v3297_v55 = vmax.f32 %v6259_v53, 0.0  ;;  %v7284_v46 = vld [vmem:[%s9434_s7] sm:$0xff]  }
 0x323   :  { %v3296_v58 = vmax.f32 %v6172_v37, 0.0  ;;  %v3298_v33 = vmax.f32 %v6260_v60, 0.0  ;;  %4640 = vmatpush1.bf16.msra.mxu1 %v7257_v16 }
 0x324   :  { %v3383_v62 = vpack.c.bf16 %v3295_v34, %v3291_v26  ;;  %v8702_v43 = vpack.c.bf16 %v3297_v55, %v3293_v42 }
 0x325   :  { %v3384_v35 = vpack.c.bf16 %v3296_v58, %v3292_v15  ;;  %v8704_v24 = vpack.c.bf16 %v3298_v33, %v3294_v28  ;;  %v7286_v33 = vld [vmem:[%s9434_s7 + $0x10] sm:$0xff]  }
 0x327   :  { %4025 = vmatprep.mubr.bf16.mxu0 %v3384_v35 }
 0x328   :  { %4026 = vmatmul.mubr.bf16.gmra.mrb[172].mxu0 %v3383_v62 }
 0x329   :  { %4068 = vmatprep.mubr.bf16.mxu0 %v8320_v2  ;;  %v7262_v2 = vld [vmem:[%s9433_s5 + $0x84] ss:$8 sps:$4 sm:$0xff]  }
 0x32a   :  { %4641 = vmatprep.subr.bf16.mxu1 %v7262_v2  ;;  %v7287_v2 = vld [vmem:[%s9434_s7 + $0x18] sm:$0xff]  }
 0x32b   :  { %4642 = vmatpush1.bf16.msra.mxu1 %v7260_v44 }
 0x330   :  { %4069 = vmatmul.mubr.bf16.vlgmr.msra.gmra.mrb[88].mxu0 %v8315_v61  ;;  %v7263_v61 = vld [vmem:[%s9433_s5 + $0x90] ss:$8 sps:$4 sm:$0xff]  }
 0x331   :  { %4078 = vmatprep.mubr.bf16.mxu0 %v8344_v41  ;;  %v7265_v41 = vld [vmem:[%s9433_s5 + $0x94] ss:$8 sps:$4 sm:$0xff]  }
 0x332   :  { %4643 = vmatprep.subr.bf16.mxu1 %v7265_v41 }
 0x333   :  { %4644 = vmatpush1.bf16.msra.mxu1 %v7263_v61 }
 0x338   :  { %4079 = vmatmul.mubr.bf16.gmra.mrb[92].mxu0 %v8339_v36  ;;  %v7266_v36 = vld [vmem:[%s9433_s5 + $0xa0] ss:$8 sps:$4 sm:$0xff]  }
 0x339   :  { %4088 = vmatprep.mubr.bf16.mxu0 %v8365_v8  ;;  %v7269_v8 = vld [vmem:[%s9433_s5 + $0xb0] ss:$8 sps:$4 sm:$0xff]  }
 0x340   :  { %4089 = vmatmul.mubr.bf16.gmra.mrb[96].mxu0 %v8363_v6  ;;  %v7268_v6 = vld [vmem:[%s9433_s5 + $0xa4] ss:$8 sps:$4 sm:$0xff]  }
 0x341   :  { %4098 = vmatprep.mubr.bf16.mxu0 %v8389_v49  ;;  %4645 = vmatprep.subr.bf16.mxu1 %v7268_v6  ;;  %v7272_v49 = vld [vmem:[%s9433_s5 + $0xc0] ss:$8 sps:$4 sm:$0xff]  }
 0x342   :  { %4646 = vmatpush1.bf16.msra.mxu1 %v7266_v36 }
 0x348   :  { %4099 = vmatmul.mubr.bf16.gmra.mrb[100].mxu0 %v8387_v47  ;;  %v7271_v47 = vld [vmem:[%s9433_s5 + $0xb4] ss:$8 sps:$4 sm:$0xff]  }
 0x349   :  { %4108 = vmatprep.mubr.bf16.mxu0 %v8413_v23  ;;  %4647 = vmatprep.subr.bf16.mxu1 %v7271_v47  ;;  %v7277_v23 = vld [vmem:[%s9433_s5 + $0xd4] ss:$8 sps:$4 sm:$0xff]  }
 0x34a   :  { %4648 = vmatpush1.bf16.msra.mxu1 %v7269_v8 }
 0x350   :  { %4109 = vmatmul.mubr.bf16.gmra.mrb[104].mxu0 %v8411_v21  ;;  %v7274_v21 = vld [vmem:[%s9433_s5 + $0xc4] ss:$8 sps:$4 sm:$0xff]  }
 0x351   :  { %4118 = vmatprep.mubr.bf16.mxu0 %v8437_v1  ;;  %4649 = vmatprep.subr.bf16.mxu1 %v7274_v21  ;;  %v7280_v1 = vld [vmem:[%s9433_s5 + $0xe4] ss:$8 sps:$4 sm:$0xff]  }
 0x352   :  { %4650 = vmatpush1.bf16.msra.mxu1 %v7272_v49  ;;  %v7288_v21 = vld [vmem:[%s9434_s7 + $0x20] sm:$0xff]  }
 0x353   :  { %4651 = vmatprep.subr.bf16.mxu1 %v7277_v23 }
 0x358   :  { %4119 = vmatmul.mubr.bf16.gmra.mrb[108].mxu0 %v8435_v63  ;;  %v7275_v63 = vld [vmem:[%s9433_s5 + $0xd0] ss:$8 sps:$4 sm:$0xff]  }
 0x359   :  { %4128 = vmatprep.mubr.bf16.mxu0 %v8461_v48  ;;  %4652 = vmatpush1.bf16.msra.mxu1 %v7275_v63  ;;  %v7278_v48 = vld [vmem:[%s9433_s5 + $0xe0] ss:$8 sps:$4 sm:$0xff]  }
 0x35a   :  { %4653 = vmatprep.subr.bf16.mxu1 %v7280_v1 }
 0x35d   :  { %4654 = vmatpush1.bf16.msra.mxu1 %v7278_v48 }
 0x360   :  { %4129 = vmatmul.mubr.bf16.gmra.mrb[112].mxu0 %v8459_v45  ;;  %v7281_v45 = vld [vmem:[%s9433_s5 + $0xf0] ss:$8 sps:$4 sm:$0xff]  }
 0x361   :  { %4138 = vmatprep.mubr.bf16.mxu0 %v8485_v27  ;;  %v9453_v27 = vmov 0  }
 0x368   :  { %4139 = vmatmul.mubr.bf16.gmra.mrb[116].mxu0 %v8483_v25  ;;  %v7283_v25 = vld [vmem:[%s9433_s5 + $0xf4] ss:$8 sps:$4 sm:$0xff]  }
 0x369   :  { %4148 = vmatprep.mubr.bf16.mxu0 %v8506_v11  ;;  %4655 = vmatprep.subr.bf16.mxu1 %v7283_v25  ;;  %v9455_v11 = vld [vmem:[#allocation7_spill] sm:$0xff] }
 0x36a   :  { %4656 = vmatpush1.bf16.msra.mxu1 %v7281_v45 }
 0x36b   :  { %5145 = vmatprep.subr.bf16.mxu1 %v9453_v27 }
 0x370   :  { %4149 = vmatmul.mubr.bf16.gmra.mrb[120].mxu0 %v8504_v9  ;;  %v9454_v9 = vld [vmem:[#allocation5_spill] sm:$0xff] }
 0x371   :  { %4158 = vmatprep.mubr.bf16.mxu0 %v8518_v56  ;;  %v9457_v56 = vld [vmem:[#allocation8_spill] sm:$0xff] }
 0x378   :  { %4159 = vmatmul.mubr.bf16.gmra.mrb[124].mxu0 %v8516_v54  ;;  %v9456_v54 = vld [vmem:[#allocation6_spill] sm:$0xff] }
 0x379   :  { %4168 = vmatprep.mubr.bf16.mxu0 %v8530_v40  ;;  %v9458_v40 = vld [vmem:[#allocation3_spill] sm:$0xff] }
 0x380   :  { %4169 = vmatmul.mubr.bf16.gmra.mrb[128].mxu0 %v8528_v38  ;;  %v3451_v38 = vld [vmem:[%s9435_s4] sm:$0x3] }
 0x381   :  { %4178 = vmatprep.mubr.bf16.mxu0 %v8542_v22  ;;  %v9459_v22 = vld [vmem:[#allocation4_spill] sm:$0xff] }
 0x388   :  { %4179 = vmatmul.mubr.bf16.gmra.mrb[132].mxu0 %v8540_v19  ;;  %v8809_v19 = vrot.slane %v3451_v38, %v9458_v40 }
 0x389   :  { %4188 = vmatprep.mubr.bf16.mxu0 %v8560_v14 }
 0x390   :  { %4189 = vmatmul.mubr.bf16.gmra.mrb[136].mxu0 %v8558_v12  ;;  %v8812_v12 = vrot.slane %v3451_v38, %v9459_v22 }
 0x391   :  { %4198 = vmatprep.mubr.bf16.mxu0 %v8572_v5 }
 0x398   :  { %4199 = vmatmul.mubr.bf16.gmra.mrb[140].mxu0 %v8570_v3 }
 0x399   :  { %4208 = vmatprep.mubr.bf16.mxu0 %v8590_v7 }
 0x3a0   :  { %4209 = vmatmul.mubr.bf16.gmra.mrb[144].mxu0 %v8588_v0 }
 0x3a1   :  { %4218 = vmatprep.mubr.bf16.mxu0 %v8608_v17 }
 0x3a8   :  { %4219 = vmatmul.mubr.bf16.gmra.mrb[148].mxu0 %v8606_v10 }
 0x3a9   :  { %4228 = vmatprep.mubr.bf16.mxu0 %v8626_v39 }
 0x3b0   :  { %4229 = vmatmul.mubr.bf16.gmra.mrb[152].mxu0 %v8624_v13 }
 0x3b1   :  { %4238 = vmatprep.mubr.bf16.mxu0 %v8638_v51 }
 0x3b8   :  { %4239 = vmatmul.mubr.bf16.gmra.mrb[156].mxu0 %v9454_v9 }
 0x3b9   :  { %4248 = vmatprep.mubr.bf16.mxu0 %v9455_v11  ;;  %v7289_v11 = vld [vmem:[%s9434_s7 + $0x28] sm:$0xff]  }
 0x3c0   :  { %4249 = vmatmul.mubr.bf16.gmra.mrb[160].mxu0 %v9456_v54 }
 0x3c1   :  { %4258 = vmatprep.mubr.bf16.mxu0 %v8674_v4 }
 0x3c8   :  { %4259 = vmatmul.mubr.bf16.gmra.mrb[164].mxu0 %v9457_v56 }
 0x3c9   :  { %4268 = vmatprep.mubr.bf16.mxu0 %v8686_v32 }
 0x3d0   :  { %4269 = vmatmul.mubr.bf16.gmra.mrb[168].mxu0 %v8684_v18 }
 0x3d1   :  { %4278 = vmatprep.mubr.bf16.mxu0 %v8704_v24 }
 0x3d8   :  { %4279 = vmatmul.mubr.bf16.gmra.mrb[172].mxu0 %v8702_v43 }
 0x403   :  { %v4070_v14 = vpop.f32.mrb[88].mxu0 }
 0x404   :  { %v6261_v3 = vadd.f32 %v4070_v14, %v8809_v19  ;;  %v4072_v5 = vpop.f32.mrb[89].mxu0 }
 0x405   :  { %v6262_v0 = vadd.f32 %v4072_v5, %v8812_v12  ;;  %v4074_v7 = vpop.f32.mrb[90].mxu0 }
 0x406   :  { %v6263_v10 = vadd.f32 %v4074_v7, %v8809_v19  ;;  %v4076_v17 = vpop.f32.mrb[91].mxu0  ;;  %v4289_v39 = vmax.f32 %v6261_v3, 0.0  ;;  %v7290_v7 = vld [vmem:[%s9434_s7 + $0x30] sm:$0xff]  }
 0x407   :  { %v6264_v13 = vadd.f32 %v4076_v17, %v8812_v12  ;;  %v4290_v4 = vmax.f32 %v6262_v0, 0.0 }
 0x408   :  { %v4291_v51 = vmax.f32 %v6263_v10, 0.0 }
 0x409   :  { %v4292_v18 = vmax.f32 %v6264_v13, 0.0 }
 0x40a   :  { %v4377_v32 = vpack.c.bf16 %v4291_v51, %v4289_v39 }
 0x40b   :  { %v4378_v31 = vpack.c.bf16 %v4292_v18, %v4290_v4  ;;  %v4080_v52 = vpop.f32.mrb[92].mxu0 }
 0x40c   :  { %v6265_v29 = vadd.f32 %v4080_v52, %v8809_v19  ;;  %v4082_v53 = vpop.f32.mrb[93].mxu0 }
 0x40d   :  { %v6266_v50 = vadd.f32 %v4082_v53, %v8812_v12  ;;  %v4084_v30 = vpop.f32.mrb[94].mxu0  ;;  %4657 = vmatprep.mubr.bf16.mxu1 %v4378_v31 }
 0x40e   :  { %v6267_v59 = vadd.f32 %v4084_v30, %v8809_v19  ;;  %v4086_v37 = vpop.f32.mrb[95].mxu0  ;;  %4658 = vmatmul.mubr.bf16.vlgmr.msra.gmra.mrb[88].mxu1 %v4377_v32  ;;  %v4293_v26 = vmax.f32 %v6265_v29, 0.0  ;;  %v7291_v32 = vld [vmem:[%s9434_s7 + $0x38] sm:$0xff]  }
 0x40f   :  { %v6268_v60 = vadd.f32 %v4086_v37, %v8812_v12  ;;  %5146 = vmatpush1.bf16.msra.mxu1 %v7284_v46  ;;  %v4294_v34 = vmax.f32 %v6266_v50, 0.0 }
 0x410   :  { %v4295_v42 = vmax.f32 %v6267_v59, 0.0  ;;  %5147 = vmatprep.subr.bf16.mxu1 %v9453_v27  ;;  %v7292_v59 = vld [vmem:[%s9434_s7 + $0x40] sm:$0xff]  }
 0x411   :  { %v4296_v55 = vmax.f32 %v6268_v60, 0.0 }
 0x412   :  { %v4379_v15 = vpack.c.bf16 %v4295_v42, %v4293_v26 }
 0x413   :  { %v4380_v28 = vpack.c.bf16 %v4296_v55, %v4294_v34  ;;  %v4090_v58 = vpop.f32.mrb[96].mxu0  ;;  %5148 = vmatpush1.bf16.msra.mxu1 %v7285_v57 }
 0x414   :  { %v6269_v62 = vadd.f32 %v4090_v58, %v8809_v19  ;;  %v4092_v43 = vpop.f32.mrb[97].mxu0  ;;  %5149 = vmatprep.subr.bf16.mxu1 %v9453_v27 }
 0x415   :  { %v6270_v35 = vadd.f32 %v4092_v43, %v8812_v12  ;;  %v4094_v24 = vpop.f32.mrb[98].mxu0  ;;  %4667 = vmatprep.mubr.bf16.mxu1 %v4380_v28 }
 0x416   :  { %v6271_v16 = vadd.f32 %v4094_v24, %v8809_v19  ;;  %v4096_v20 = vpop.f32.mrb[99].mxu0  ;;  %4668 = vmatmul.mubr.bf16.gmra.mrb[92].mxu1 %v4379_v15  ;;  %v4297_v61 = vmax.f32 %v6269_v62, 0.0  ;;  %v7293_v15 = vld [vmem:[%s9434_s7 + $0x48] sm:$0xff]  }
 0x417   :  { %v6272_v44 = vadd.f32 %v4096_v20, %v8812_v12  ;;  %5150 = vmatpush1.bf16.msra.mxu1 %v7286_v33  ;;  %v4298_v36 = vmax.f32 %v6270_v35, 0.0 }
 0x418   :  { %v4299_v41 = vmax.f32 %v6271_v16, 0.0  ;;  %5151 = vmatprep.subr.bf16.mxu1 %v9453_v27  ;;  %v7294_v16 = vld [vmem:[%s9434_s7 + $0x50] sm:$0xff]  }
 0x419   :  { %v4300_v6 = vmax.f32 %v6272_v44, 0.0 }
 0x41a   :  { %v4381_v8 = vpack.c.bf16 %v4299_v41, %v4297_v61 }
 0x41b   :  { %v4382_v47 = vpack.c.bf16 %v4300_v6, %v4298_v36  ;;  %v4100_v49 = vpop.f32.mrb[100].mxu0  ;;  %5152 = vmatpush1.bf16.msra.mxu1 %v7287_v2 }
 0x41c   :  { %v6273_v23 = vadd.f32 %v4100_v49, %v8809_v19  ;;  %v4102_v63 = vpop.f32.mrb[101].mxu0  ;;  %5153 = vmatprep.subr.bf16.mxu1 %v9453_v27 }
 0x41d   :  { %v6274_v1 = vadd.f32 %v4102_v63, %v8812_v12  ;;  %v4104_v48 = vpop.f32.mrb[102].mxu0  ;;  %4677 = vmatprep.mubr.bf16.mxu1 %v4382_v47 }
 0x41e   :  { %v6275_v45 = vadd.f32 %v4104_v48, %v8809_v19  ;;  %v4106_v25 = vpop.f32.mrb[103].mxu0  ;;  %4678 = vmatmul.mubr.bf16.gmra.mrb[96].mxu1 %v4381_v8  ;;  %v4301_v54 = vmax.f32 %v6273_v23, 0.0  ;;  %v7295_v8 = vld [vmem:[%s9434_s7 + $0x58] sm:$0xff]  }
 0x41f   :  { %v6276_v9 = vadd.f32 %v4106_v25, %v8812_v12  ;;  %5154 = vmatpush1.bf16.msra.mxu1 %v7288_v21  ;;  %v4302_v38 = vmax.f32 %v6274_v1, 0.0 }
 0x420   :  { %v4303_v56 = vmax.f32 %v6275_v45, 0.0  ;;  %5155 = vmatprep.subr.bf16.mxu1 %v9453_v27  ;;  %v7296_v45 = vld [vmem:[%s9434_s7 + $0x60] sm:$0xff]  }
 0x421   :  { %v4304_v14 = vmax.f32 %v6276_v9, 0.0 }
 0x422   :  { %v4383_v3 = vpack.c.bf16 %v4303_v56, %v4301_v54 }
 0x423   :  { %v4384_v5 = vpack.c.bf16 %v4304_v14, %v4302_v38  ;;  %v4110_v0 = vpop.f32.mrb[104].mxu0  ;;  %5156 = vmatpush1.bf16.msra.mxu1 %v7289_v11 }
 0x424   :  { %v6277_v10 = vadd.f32 %v4110_v0, %v8809_v19  ;;  %v4112_v17 = vpop.f32.mrb[105].mxu0  ;;  %5157 = vmatprep.subr.bf16.mxu1 %v9453_v27 }
 0x425   :  { %v6278_v13 = vadd.f32 %v4112_v17, %v8812_v12  ;;  %v4114_v39 = vpop.f32.mrb[106].mxu0  ;;  %4687 = vmatprep.mubr.bf16.mxu1 %v4384_v5 }
 0x426   :  { %v6279_v51 = vadd.f32 %v4114_v39, %v8809_v19  ;;  %v4116_v4 = vpop.f32.mrb[107].mxu0  ;;  %4688 = vmatmul.mubr.bf16.gmra.mrb[100].mxu1 %v4383_v3  ;;  %v4305_v31 = vmax.f32 %v6277_v10, 0.0  ;;  %v7297_v3 = vld [vmem:[%s9434_s7 + $0x68] sm:$0xff]  }
 0x427   :  { %v6280_v18 = vadd.f32 %v4116_v4, %v8812_v12  ;;  %5158 = vmatpush1.bf16.msra.mxu1 %v7290_v7  ;;  %v4306_v46 = vmax.f32 %v6278_v13, 0.0 }
 0x428   :  { %v4307_v52 = vmax.f32 %v6279_v51, 0.0  ;;  %5159 = vmatprep.subr.bf16.mxu1 %v9453_v27  ;;  %v7298_v51 = vld [vmem:[%s9434_s7 + $0x70] sm:$0xff]  }
 0x429   :  { %v4308_v29 = vmax.f32 %v6280_v18, 0.0 }
 0x42a   :  { %v4385_v53 = vpack.c.bf16 %v4307_v52, %v4305_v31 }
 0x42b   :  { %v4386_v50 = vpack.c.bf16 %v4308_v29, %v4306_v46  ;;  %v4120_v30 = vpop.f32.mrb[108].mxu0  ;;  %5160 = vmatpush1.bf16.msra.mxu1 %v7291_v32 }
 0x42c   :  { %v6281_v37 = vadd.f32 %v4120_v30, %v8809_v19  ;;  %v4122_v60 = vpop.f32.mrb[109].mxu0  ;;  %5161 = vmatprep.subr.bf16.mxu1 %v9453_v27 }
 0x42d   :  { %v6282_v57 = vadd.f32 %v4122_v60, %v8812_v12  ;;  %v4124_v26 = vpop.f32.mrb[110].mxu0  ;;  %4697 = vmatprep.mubr.bf16.mxu1 %v4386_v50 }
 0x42e   :  { %v6283_v42 = vadd.f32 %v4124_v26, %v8809_v19  ;;  %v4126_v34 = vpop.f32.mrb[111].mxu0  ;;  %4698 = vmatmul.mubr.bf16.gmra.mrb[104].mxu1 %v4385_v53  ;;  %v4309_v28 = vmax.f32 %v6281_v37, 0.0 }
 0x42f   :  { %v6284_v55 = vadd.f32 %v4126_v34, %v8812_v12  ;;  %5162 = vmatpush1.bf16.msra.mxu1 %v7292_v59  ;;  %v4310_v33 = vmax.f32 %v6282_v57, 0.0 }
 0x430   :  { %v4311_v58 = vmax.f32 %v6283_v42, 0.0  ;;  %5163 = vmatprep.subr.bf16.mxu1 %v9453_v27 }
 0x431   :  { %v4312_v62 = vmax.f32 %v6284_v55, 0.0 }
 0x432   :  { %v4387_v43 = vpack.c.bf16 %v4311_v58, %v4309_v28 }
 0x433   :  { %v4388_v35 = vpack.c.bf16 %v4312_v62, %v4310_v33  ;;  %v4130_v24 = vpop.f32.mrb[112].mxu0  ;;  %5164 = vmatpush1.bf16.msra.mxu1 %v7293_v15 }
 0x434   :  { %v6285_v20 = vadd.f32 %v4130_v24, %v8809_v19  ;;  %v4132_v44 = vpop.f32.mrb[113].mxu0  ;;  %5165 = vmatprep.subr.bf16.mxu1 %v9453_v27 }
 0x435   :  { %v6286_v2 = vadd.f32 %v4132_v44, %v8812_v12  ;;  %v4134_v61 = vpop.f32.mrb[114].mxu0  ;;  %4707 = vmatprep.mubr.bf16.mxu1 %v4388_v35 }
 0x436   :  { %v6287_v41 = vadd.f32 %v4134_v61, %v8809_v19  ;;  %v4136_v36 = vpop.f32.mrb[115].mxu0  ;;  %4708 = vmatmul.mubr.bf16.gmra.mrb[108].mxu1 %v4387_v43  ;;  %v4313_v47 = vmax.f32 %v6285_v20, 0.0 }
 0x437   :  { %v6288_v6 = vadd.f32 %v4136_v36, %v8812_v12  ;;  %5166 = vmatpush1.bf16.msra.mxu1 %v7294_v16  ;;  %v4314_v21 = vmax.f32 %v6286_v2, 0.0 }
 0x438   :  { %v4315_v49 = vmax.f32 %v6287_v41, 0.0  ;;  %5167 = vmatprep.subr.bf16.mxu1 %v9453_v27 }
 0x439   :  { %v4316_v23 = vmax.f32 %v6288_v6, 0.0 }
 0x43a   :  { %v4389_v63 = vpack.c.bf16 %v4315_v49, %v4313_v47 }
 0x43b   :  { %v4390_v1 = vpack.c.bf16 %v4316_v23, %v4314_v21  ;;  %v4140_v48 = vpop.f32.mrb[116].mxu0  ;;  %5168 = vmatpush1.bf16.msra.mxu1 %v7295_v8 }
 0x43c   :  { %v6289_v25 = vadd.f32 %v4140_v48, %v8809_v19  ;;  %v4142_v9 = vpop.f32.mrb[117].mxu0  ;;  %5169 = vmatprep.subr.bf16.mxu1 %v9453_v27 }
 0x43d   :  { %v6290_v11 = vadd.f32 %v4142_v9, %v8812_v12  ;;  %v4144_v54 = vpop.f32.mrb[118].mxu0  ;;  %4717 = vmatprep.mubr.bf16.mxu1 %v4390_v1 }
 0x43e   :  { %v6291_v56 = vadd.f32 %v4144_v54, %v8809_v19  ;;  %v4146_v38 = vpop.f32.mrb[119].mxu0  ;;  %4718 = vmatmul.mubr.bf16.gmra.mrb[112].mxu1 %v4389_v63  ;;  %v4317_v5 = vmax.f32 %v6289_v25, 0.0 }
 0x43f   :  { %v6292_v14 = vadd.f32 %v4146_v38, %v8812_v12  ;;  %5170 = vmatpush1.bf16.msra.mxu1 %v7296_v45  ;;  %v4318_v7 = vmax.f32 %v6290_v11, 0.0 }
 0x440   :  { %v4319_v0 = vmax.f32 %v6291_v56, 0.0  ;;  %5171 = vmatprep.subr.bf16.mxu1 %v9453_v27 }
 0x441   :  { %v4320_v10 = vmax.f32 %v6292_v14, 0.0 }
 0x442   :  { %v4391_v17 = vpack.c.bf16 %v4319_v0, %v4317_v5 }
 0x443   :  { %v4392_v13 = vpack.c.bf16 %v4320_v10, %v4318_v7  ;;  %v4150_v39 = vpop.f32.mrb[120].mxu0  ;;  %5172 = vmatpush1.bf16.msra.mxu1 %v7297_v3 }
 0x444   :  { %v6293_v4 = vadd.f32 %v4150_v39, %v8809_v19  ;;  %v4152_v18 = vpop.f32.mrb[121].mxu0  ;;  %5173 = vmatprep.subr.bf16.mxu1 %v9453_v27 }
 0x445   :  { %v6294_v32 = vadd.f32 %v4152_v18, %v8812_v12  ;;  %v4154_v31 = vpop.f32.mrb[122].mxu0  ;;  %4727 = vmatprep.mubr.bf16.mxu1 %v4392_v13 }
 0x446   :  { %v6295_v52 = vadd.f32 %v4154_v31, %v8809_v19  ;;  %v4156_v46 = vpop.f32.mrb[123].mxu0  ;;  %4728 = vmatmul.mubr.bf16.gmra.mrb[116].mxu1 %v4391_v17  ;;  %v4321_v53 = vmax.f32 %v6293_v4, 0.0  ;;  %v7299_v4 = vld [vmem:[%s9434_s7 + $0x78] sm:$0xff]  }
 0x447   :  { %v6296_v29 = vadd.f32 %v4156_v46, %v8812_v12  ;;  %5174 = vmatpush1.bf16.msra.mxu1 %v7298_v51  ;;  %v4322_v30 = vmax.f32 %v6294_v32, 0.0 }
 0x448   :  { %v4323_v50 = vmax.f32 %v6295_v52, 0.0  ;;  %5175 = vmatprep.subr.bf16.mxu1 %v9453_v27 }
 0x449   :  { %v4324_v59 = vmax.f32 %v6296_v29, 0.0 }
 0x44a   :  { %v4393_v37 = vpack.c.bf16 %v4323_v50, %v4321_v53 }
 0x44b   :  { %v4394_v60 = vpack.c.bf16 %v4324_v59, %v4322_v30  ;;  %v4160_v57 = vpop.f32.mrb[124].mxu0  ;;  %5176 = vmatpush1.bf16.msra.mxu1 %v7299_v4 }
 0x44c   :  { %v6297_v26 = vadd.f32 %v4160_v57, %v8809_v19  ;;  %v4162_v42 = vpop.f32.mrb[125].mxu0 }
 0x44d   :  { %v6298_v34 = vadd.f32 %v4162_v42, %v8812_v12  ;;  %v4164_v55 = vpop.f32.mrb[126].mxu0  ;;  %4737 = vmatprep.mubr.bf16.mxu1 %v4394_v60 }
 0x44e   :  { %v6299_v15 = vadd.f32 %v4164_v55, %v8809_v19  ;;  %v4166_v28 = vpop.f32.mrb[127].mxu0  ;;  %4738 = vmatmul.mubr.bf16.gmra.mrb[120].mxu1 %v4393_v37  ;;  %v4325_v33 = vmax.f32 %v6297_v26, 0.0 }
 0x44f   :  { %v6300_v58 = vadd.f32 %v4166_v28, %v8812_v12  ;;  %v4326_v62 = vmax.f32 %v6298_v34, 0.0 }
 0x450   :  { %v4327_v27 = vmax.f32 %v6299_v15, 0.0 }
 0x451   :  { %v4328_v43 = vmax.f32 %v6300_v58, 0.0 }
 0x452   :  { %v4395_v35 = vpack.c.bf16 %v4327_v27, %v4325_v33 }
 0x453   :  { %v4396_v24 = vpack.c.bf16 %v4328_v43, %v4326_v62  ;;  %v4170_v16 = vpop.f32.mrb[128].mxu0 }
 0x454   :  { %v6301_v20 = vadd.f32 %v4170_v16, %v8809_v19  ;;  %v4172_v44 = vpop.f32.mrb[129].mxu0 }
 0x455   :  { %v6302_v2 = vadd.f32 %v4172_v44, %v8812_v12  ;;  %v4174_v61 = vpop.f32.mrb[130].mxu0  ;;  %4747 = vmatprep.mubr.bf16.mxu1 %v4396_v24 }
 0x456   :  { %v6303_v41 = vadd.f32 %v4174_v61, %v8809_v19  ;;  %v4176_v36 = vpop.f32.mrb[131].mxu0  ;;  %4748 = vmatmul.mubr.bf16.gmra.mrb[124].mxu1 %v4395_v35  ;;  %v4329_v8 = vmax.f32 %v6301_v20, 0.0 }
 0x457   :  { %v6304_v6 = vadd.f32 %v4176_v36, %v8812_v12  ;;  %v4330_v49 = vmax.f32 %v6302_v2, 0.0 }
 0x458   :  { %v4331_v47 = vmax.f32 %v6303_v41, 0.0 }
 0x459   :  { %v4332_v21 = vmax.f32 %v6304_v6, 0.0 }
 0x45a   :  { %v4397_v23 = vpack.c.bf16 %v4331_v47, %v4329_v8 }
 0x45b   :  { %v4398_v63 = vpack.c.bf16 %v4332_v21, %v4330_v49  ;;  %v4180_v1 = vpop.f32.mrb[132].mxu0 }
 0x45c   :  { %v6305_v48 = vadd.f32 %v4180_v1, %v8809_v19  ;;  %v4182_v45 = vpop.f32.mrb[133].mxu0 }
 0x45d   :  { %v6306_v25 = vadd.f32 %v4182_v45, %v8812_v12  ;;  %v4184_v9 = vpop.f32.mrb[134].mxu0  ;;  %4757 = vmatprep.mubr.bf16.mxu1 %v4398_v63 }
 0x45e   :  { %v6307_v11 = vadd.f32 %v4184_v9, %v8809_v19  ;;  %v4186_v54 = vpop.f32.mrb[135].mxu0  ;;  %4758 = vmatmul.mubr.bf16.gmra.mrb[128].mxu1 %v4397_v23  ;;  %v4333_v38 = vmax.f32 %v6305_v48, 0.0 }
 0x45f   :  { %v6308_v56 = vadd.f32 %v4186_v54, %v8812_v12  ;;  %v4334_v3 = vmax.f32 %v6306_v25, 0.0 }
 0x460   :  { %v4335_v14 = vmax.f32 %v6307_v11, 0.0 }
 0x461   :  { %v4336_v5 = vmax.f32 %v6308_v56, 0.0 }
 0x462   :  { %v4399_v0 = vpack.c.bf16 %v4335_v14, %v4333_v38 }
 0x463   :  { %v4400_v7 = vpack.c.bf16 %v4336_v5, %v4334_v3  ;;  %v4190_v10 = vpop.f32.mrb[136].mxu0 }
 0x464   :  { %v6309_v17 = vadd.f32 %v4190_v10, %v8809_v19  ;;  %v4192_v13 = vpop.f32.mrb[137].mxu0 }
 0x465   :  { %v6310_v39 = vadd.f32 %v4192_v13, %v8812_v12  ;;  %v4194_v51 = vpop.f32.mrb[138].mxu0  ;;  %4767 = vmatprep.mubr.bf16.mxu1 %v4400_v7 }
 0x466   :  { %v6311_v18 = vadd.f32 %v4194_v51, %v8809_v19  ;;  %v4196_v32 = vpop.f32.mrb[139].mxu0  ;;  %4768 = vmatmul.mubr.bf16.gmra.mrb[132].mxu1 %v4399_v0  ;;  %v4337_v52 = vmax.f32 %v6309_v17, 0.0 }
 0x467   :  { %v6312_v31 = vadd.f32 %v4196_v32, %v8812_v12  ;;  %v4338_v29 = vmax.f32 %v6310_v39, 0.0 }
 0x468   :  { %v4339_v46 = vmax.f32 %v6311_v18, 0.0 }
 0x469   :  { %v4340_v53 = vmax.f32 %v6312_v31, 0.0 }
 0x46a   :  { %v4401_v50 = vpack.c.bf16 %v4339_v46, %v4337_v52 }
 0x46b   :  { %v4402_v30 = vpack.c.bf16 %v4340_v53, %v4338_v29  ;;  %v4200_v59 = vpop.f32.mrb[140].mxu0 }
 0x46c   :  { %v6313_v37 = vadd.f32 %v4200_v59, %v8809_v19  ;;  %v4202_v60 = vpop.f32.mrb[141].mxu0 }
 0x46d   :  { %v6314_v57 = vadd.f32 %v4202_v60, %v8812_v12  ;;  %v4204_v26 = vpop.f32.mrb[142].mxu0  ;;  %4777 = vmatprep.mubr.bf16.mxu1 %v4402_v30 }
 0x46e   :  { %v6315_v42 = vadd.f32 %v4204_v26, %v8809_v19  ;;  %v4206_v34 = vpop.f32.mrb[143].mxu0  ;;  %4778 = vmatmul.mubr.bf16.gmra.mrb[136].mxu1 %v4401_v50  ;;  %v4341_v15 = vmax.f32 %v6313_v37, 0.0 }
 0x46f   :  { %v6316_v55 = vadd.f32 %v4206_v34, %v8812_v12  ;;  %v4342_v58 = vmax.f32 %v6314_v57, 0.0 }
 0x470   :  { %v4343_v28 = vmax.f32 %v6315_v42, 0.0 }
 0x471   :  { %v4344_v33 = vmax.f32 %v6316_v55, 0.0 }
 0x472   :  { %v4403_v27 = vpack.c.bf16 %v4343_v28, %v4341_v15 }
 0x473   :  { %v4404_v62 = vpack.c.bf16 %v4344_v33, %v4342_v58  ;;  %v4210_v43 = vpop.f32.mrb[144].mxu0 }
 0x474   :  { %v6317_v35 = vadd.f32 %v4210_v43, %v8809_v19  ;;  %v4212_v24 = vpop.f32.mrb[145].mxu0 }
 0x475   :  { %v6318_v16 = vadd.f32 %v4212_v24, %v8812_v12  ;;  %v4214_v20 = vpop.f32.mrb[146].mxu0  ;;  %4787 = vmatprep.mubr.bf16.mxu1 %v4404_v62 }
 0x476   :  { %v6319_v44 = vadd.f32 %v4214_v20, %v8809_v19  ;;  %v4216_v2 = vpop.f32.mrb[147].mxu0  ;;  %4788 = vmatmul.mubr.bf16.gmra.mrb[140].mxu1 %v4403_v27  ;;  %v4345_v41 = vmax.f32 %v6317_v35, 0.0 }
 0x477   :  { %v6320_v61 = vadd.f32 %v4216_v2, %v8812_v12  ;;  %v4346_v6 = vmax.f32 %v6318_v16, 0.0 }
 0x478   :  { %v4347_v36 = vmax.f32 %v6319_v44, 0.0 }
 0x479   :  { %v4348_v8 = vmax.f32 %v6320_v61, 0.0 }
 0x47a   :  { %v4405_v47 = vpack.c.bf16 %v4347_v36, %v4345_v41 }
 0x47b   :  { %v4406_v49 = vpack.c.bf16 %v4348_v8, %v4346_v6  ;;  %v4220_v21 = vpop.f32.mrb[148].mxu0 }
 0x47c   :  { %v6321_v23 = vadd.f32 %v4220_v21, %v8809_v19  ;;  %v4222_v63 = vpop.f32.mrb[149].mxu0 }
 0x47d   :  { %v6322_v1 = vadd.f32 %v4222_v63, %v8812_v12  ;;  %v4224_v48 = vpop.f32.mrb[150].mxu0  ;;  %4797 = vmatprep.mubr.bf16.mxu1 %v4406_v49 }
 0x47e   :  { %v6323_v45 = vadd.f32 %v4224_v48, %v8809_v19  ;;  %v4226_v25 = vpop.f32.mrb[151].mxu0  ;;  %4798 = vmatmul.mubr.bf16.gmra.mrb[144].mxu1 %v4405_v47  ;;  %v4349_v11 = vmax.f32 %v6321_v23, 0.0 }
 0x47f   :  { %v6324_v9 = vadd.f32 %v4226_v25, %v8812_v12  ;;  %v4350_v56 = vmax.f32 %v6322_v1, 0.0 }
 0x480   :  { %v4351_v54 = vmax.f32 %v6323_v45, 0.0 }
 0x481   :  { %v4352_v38 = vmax.f32 %v6324_v9, 0.0 }
 0x482   :  { %v4407_v14 = vpack.c.bf16 %v4351_v54, %v4349_v11 }
 0x483   :  { %v4408_v3 = vpack.c.bf16 %v4352_v38, %v4350_v56  ;;  %v4230_v5 = vpop.f32.mrb[152].mxu0 }
 0x484   :  { %v6325_v0 = vadd.f32 %v4230_v5, %v8809_v19  ;;  %v4232_v7 = vpop.f32.mrb[153].mxu0 }
 0x485   :  { %v6326_v10 = vadd.f32 %v4232_v7, %v8812_v12  ;;  %v4234_v17 = vpop.f32.mrb[154].mxu0  ;;  %4807 = vmatprep.mubr.bf16.mxu1 %v4408_v3 }
 0x486   :  { %v6327_v13 = vadd.f32 %v4234_v17, %v8809_v19  ;;  %v4236_v39 = vpop.f32.mrb[155].mxu0  ;;  %4808 = vmatmul.mubr.bf16.gmra.mrb[148].mxu1 %v4407_v14  ;;  %v4353_v4 = vmax.f32 %v6325_v0, 0.0 }
 0x487   :  { %v6328_v51 = vadd.f32 %v4236_v39, %v8812_v12  ;;  %v4354_v32 = vmax.f32 %v6326_v10, 0.0 }
 0x488   :  { %v4355_v18 = vmax.f32 %v6327_v13, 0.0 }
 0x489   :  { %v4356_v31 = vmax.f32 %v6328_v51, 0.0 }
 0x48a   :  { %v4409_v52 = vpack.c.bf16 %v4355_v18, %v4353_v4 }
 0x48b   :  { %v4410_v46 = vpack.c.bf16 %v4356_v31, %v4354_v32  ;;  %v4240_v29 = vpop.f32.mrb[156].mxu0 }
 0x48c   :  { %v6329_v53 = vadd.f32 %v4240_v29, %v8809_v19  ;;  %v4242_v50 = vpop.f32.mrb[157].mxu0 }
 0x48d   :  { %v6330_v30 = vadd.f32 %v4242_v50, %v8812_v12  ;;  %v4244_v59 = vpop.f32.mrb[158].mxu0  ;;  %4817 = vmatprep.mubr.bf16.mxu1 %v4410_v46 }
 0x48e   :  { %v6331_v37 = vadd.f32 %v4244_v59, %v8809_v19  ;;  %v4246_v60 = vpop.f32.mrb[159].mxu0  ;;  %4818 = vmatmul.mubr.bf16.gmra.mrb[152].mxu1 %v4409_v52  ;;  %v4357_v26 = vmax.f32 %v6329_v53, 0.0 }
 0x48f   :  { %v6332_v57 = vadd.f32 %v4246_v60, %v8812_v12  ;;  %v4358_v34 = vmax.f32 %v6330_v30, 0.0 }
 0x490   :  { %v4359_v42 = vmax.f32 %v6331_v37, 0.0 }
 0x491   :  { %v4360_v55 = vmax.f32 %v6332_v57, 0.0 }
 0x492   :  { %v4411_v15 = vpack.c.bf16 %v4359_v42, %v4357_v26 }
 0x493   :  { %v4412_v28 = vpack.c.bf16 %v4360_v55, %v4358_v34  ;;  %v4250_v58 = vpop.f32.mrb[160].mxu0  ;;  %v4453_v34 = vld [vmem:[%s9436_s6] sm:$0x3] }
 0x494   :  { %v6333_v33 = vadd.f32 %v4250_v58, %v8809_v19  ;;  %v4252_v27 = vpop.f32.mrb[161].mxu0  ;;  %v8969_v55 = vrot.slane %v4453_v34, %v9458_v40 }
 0x495   :  { %v6334_v62 = vadd.f32 %v4252_v27, %v8812_v12  ;;  %v4254_v43 = vpop.f32.mrb[162].mxu0  ;;  %4827 = vmatprep.mubr.bf16.mxu1 %v4412_v28 }
 0x496   :  { %v6335_v35 = vadd.f32 %v4254_v43, %v8809_v19  ;;  %v4256_v24 = vpop.f32.mrb[163].mxu0  ;;  %4828 = vmatmul.mubr.bf16.gmra.mrb[156].mxu1 %v4411_v15  ;;  %v4361_v20 = vmax.f32 %v6333_v33, 0.0 }
 0x497   :  { %v6336_v16 = vadd.f32 %v4256_v24, %v8812_v12  ;;  %v4362_v2 = vmax.f32 %v6334_v62, 0.0 }
 0x498   :  { %v4363_v44 = vmax.f32 %v6335_v35, 0.0 }
 0x499   :  { %v4364_v61 = vmax.f32 %v6336_v16, 0.0 }
 0x49a   :  { %v4413_v41 = vpack.c.bf16 %v4363_v44, %v4361_v20 }
 0x49b   :  { %v4414_v36 = vpack.c.bf16 %v4364_v61, %v4362_v2  ;;  %v4260_v6 = vpop.f32.mrb[164].mxu0 }
 0x49c   :  { %v6337_v8 = vadd.f32 %v4260_v6, %v8809_v19  ;;  %v4262_v47 = vpop.f32.mrb[165].mxu0 }
 0x49d   :  { %v6338_v49 = vadd.f32 %v4262_v47, %v8812_v12  ;;  %v4264_v21 = vpop.f32.mrb[166].mxu0  ;;  %4837 = vmatprep.mubr.bf16.mxu1 %v4414_v36 }
 0x49e   :  { %v6339_v23 = vadd.f32 %v4264_v21, %v8809_v19  ;;  %v4266_v63 = vpop.f32.mrb[167].mxu0  ;;  %4838 = vmatmul.mubr.bf16.gmra.mrb[160].mxu1 %v4413_v41  ;;  %v4365_v48 = vmax.f32 %v6337_v8, 0.0 }
 0x49f   :  { %v6340_v1 = vadd.f32 %v4266_v63, %v8812_v12  ;;  %v4366_v25 = vmax.f32 %v6338_v49, 0.0 }
 0x4a0   :  { %v4367_v45 = vmax.f32 %v6339_v23, 0.0 }
 0x4a1   :  { %v4368_v9 = vmax.f32 %v6340_v1, 0.0 }
 0x4a2   :  { %v4415_v11 = vpack.c.bf16 %v4367_v45, %v4365_v48 }
 0x4a3   :  { %v4416_v54 = vpack.c.bf16 %v4368_v9, %v4366_v25  ;;  %v4270_v56 = vpop.f32.mrb[168].mxu0 }
 0x4a4   :  { %v6341_v38 = vadd.f32 %v4270_v56, %v8809_v19  ;;  %v4272_v14 = vpop.f32.mrb[169].mxu0 }
 0x4a5   :  { %v6342_v3 = vadd.f32 %v4272_v14, %v8812_v12  ;;  %v4274_v5 = vpop.f32.mrb[170].mxu0  ;;  %4847 = vmatprep.mubr.bf16.mxu1 %v4416_v54 }
 0x4a6   :  { %v6343_v0 = vadd.f32 %v4274_v5, %v8809_v19  ;;  %v4276_v7 = vpop.f32.mrb[171].mxu0  ;;  %4848 = vmatmul.mubr.bf16.gmra.mrb[164].mxu1 %v4415_v11  ;;  %v4369_v17 = vmax.f32 %v6341_v38, 0.0 }
 0x4a7   :  { %v6344_v10 = vadd.f32 %v4276_v7, %v8812_v12  ;;  %v4370_v39 = vmax.f32 %v6342_v3, 0.0 }
 0x4a8   :  { %v4371_v13 = vmax.f32 %v6343_v0, 0.0 }
 0x4a9   :  { %v4372_v51 = vmax.f32 %v6344_v10, 0.0 }
 0x4aa   :  { %v4417_v4 = vpack.c.bf16 %v4371_v13, %v4369_v17 }
 0x4ab   :  { %v4418_v18 = vpack.c.bf16 %v4372_v51, %v4370_v39  ;;  %v4280_v32 = vpop.f32.mrb[172].mxu0 }
 0x4ac   :  { %v6345_v31 = vadd.f32 %v4280_v32, %v8809_v19  ;;  %v4282_v52 = vpop.f32.mrb[173].mxu0 }
 0x4ad   :  { %v6346_v46 = vadd.f32 %v4282_v52, %v8812_v12  ;;  %v4284_v29 = vpop.f32.mrb[174].mxu0  ;;  %4857 = vmatprep.mubr.bf16.mxu1 %v4418_v18 }
 0x4ae   :  { %v6347_v53 = vadd.f32 %v4284_v29, %v8809_v19  ;;  %v4286_v50 = vpop.f32.mrb[175].mxu0  ;;  %4858 = vmatmul.mubr.bf16.gmra.mrb[168].mxu1 %v4417_v4  ;;  %v4373_v59 = vmax.f32 %v6345_v31, 0.0  ;;  %v8972_v19 = vrot.slane %v4453_v34, %v9459_v22 }
 0x4af   :  { %v6348_v30 = vadd.f32 %v4286_v50, %v8812_v12  ;;  %v4374_v60 = vmax.f32 %v6346_v46, 0.0 }
 0x4b0   :  { %v4375_v37 = vmax.f32 %v6347_v53, 0.0 }
 0x4b1   :  { %v4376_v57 = vmax.f32 %v6348_v30, 0.0 }
 0x4b2   :  { %v4419_v26 = vpack.c.bf16 %v4375_v37, %v4373_v59 }
 0x4b3   :  { %v4420_v42 = vpack.c.bf16 %v4376_v57, %v4374_v60 }
 0x4b5   :  { %4867 = vmatprep.mubr.bf16.mxu1 %v4420_v42 }
 0x4b6   :  { %4868 = vmatmul.mubr.bf16.gmra.mrb[172].mxu1 %v4419_v26 }
 0x4e1   :  { %v4659_v15 = vpop.f32.mrb[88].mxu1 }
 0x4e2   :  { %v4660_v12 = vadd.f32 %v4659_v15, %v8969_v55  ;;  %v4661_v28 = vpop.f32.mrb[89].mxu1 }
 0x4e3   :  { %v4662_v58 = vadd.f32 %v4661_v28, %v8972_v19  ;;  %v4663_v33 = vpop.f32.mrb[90].mxu1 }
 0x4e4   :  { %v4664_v27 = vadd.f32 %v4663_v33, %v8969_v55  ;;  %v4665_v62 = vpop.f32.mrb[91].mxu1  ;;  %v4878_v35 = vmax.f32 %v4660_v12, 0.0 }
 0x4e5   :  { %v4666_v43 = vadd.f32 %v4665_v62, %v8972_v19  ;;  %v4879_v16 = vmax.f32 %v4662_v58, 0.0 }
 0x4e6   :  { %v4880_v24 = vmax.f32 %v4664_v27, 0.0 }
 0x4e7   :  { %v4881_v40 = vmax.f32 %v4666_v43, 0.0 }
 0x4e8   :  { %v4966_v20 = vpack.c.bf16 %v4880_v24, %v4878_v35 }
 0x4e9   :  { %v4967_v44 = vpack.c.bf16 %v4881_v40, %v4879_v16  ;;  %v4669_v22 = vpop.f32.mrb[92].mxu1 }
 0x4ea   :  { %v4670_v2 = vadd.f32 %v4669_v22, %v8969_v55  ;;  %v4671_v61 = vpop.f32.mrb[93].mxu1 }
 0x4eb   :  { %v4672_v41 = vadd.f32 %v4671_v61, %v8972_v19  ;;  %v4673_v36 = vpop.f32.mrb[94].mxu1  ;;  %5177 = vmatprep.mubr.bf16.mxu1 %v4967_v44 }
 0x4ec   :  { %v4674_v6 = vadd.f32 %v4673_v36, %v8969_v55  ;;  %v4675_v8 = vpop.f32.mrb[95].mxu1  ;;  %5178 = vmatmul.mubr.bf16.vlgmr.msra.gmra.mrb[176].mxu1 %v4966_v20  ;;  %v4882_v49 = vmax.f32 %v4670_v2, 0.0 }
 0x4ed   :  { %v4676_v47 = vadd.f32 %v4675_v8, %v8972_v19  ;;  %v4883_v23 = vmax.f32 %v4672_v41, 0.0 }
 0x4ee   :  { %v4884_v21 = vmax.f32 %v4674_v6, 0.0 }
 0x4ef   :  { %v4885_v63 = vmax.f32 %v4676_v47, 0.0 }
 0x4f0   :  { %v4968_v1 = vpack.c.bf16 %v4884_v21, %v4882_v49 }
 0x4f1   :  { %v4969_v48 = vpack.c.bf16 %v4885_v63, %v4883_v23  ;;  %v4679_v45 = vpop.f32.mrb[96].mxu1 }
 0x4f2   :  { %v4680_v25 = vadd.f32 %v4679_v45, %v8969_v55  ;;  %v4681_v9 = vpop.f32.mrb[97].mxu1 }
 0x4f3   :  { %v4682_v11 = vadd.f32 %v4681_v9, %v8972_v19  ;;  %v4683_v54 = vpop.f32.mrb[98].mxu1  ;;  %5185 = vmatprep.mubr.bf16.mxu1 %v4969_v48 }
 0x4f4   :  { %v4684_v56 = vadd.f32 %v4683_v54, %v8969_v55  ;;  %v4685_v38 = vpop.f32.mrb[99].mxu1  ;;  %5186 = vmatmul.mubr.bf16.gmra.mrb[180].mxu1 %v4968_v1  ;;  %v4886_v3 = vmax.f32 %v4680_v25, 0.0 }
 0x4f5   :  { %v4686_v14 = vadd.f32 %v4685_v38, %v8972_v19  ;;  %v4887_v0 = vmax.f32 %v4682_v11, 0.0 }
 0x4f6   :  { %v4888_v5 = vmax.f32 %v4684_v56, 0.0 }
 0x4f7   :  { %v4889_v7 = vmax.f32 %v4686_v14, 0.0 }
 0x4f8   :  { %v4970_v10 = vpack.c.bf16 %v4888_v5, %v4886_v3 }
 0x4f9   :  { %v4971_v17 = vpack.c.bf16 %v4889_v7, %v4887_v0  ;;  %v4689_v13 = vpop.f32.mrb[100].mxu1 }
 0x4fa   :  { %v4690_v39 = vadd.f32 %v4689_v13, %v8969_v55  ;;  %v4691_v51 = vpop.f32.mrb[101].mxu1 }
 0x4fb   :  { %v4692_v4 = vadd.f32 %v4691_v51, %v8972_v19  ;;  %v4693_v18 = vpop.f32.mrb[102].mxu1  ;;  %5193 = vmatprep.mubr.bf16.mxu1 %v4971_v17 }
 0x4fc   :  { %v4694_v32 = vadd.f32 %v4693_v18, %v8969_v55  ;;  %v4695_v31 = vpop.f32.mrb[103].mxu1  ;;  %5194 = vmatmul.mubr.bf16.gmra.mrb[184].mxu1 %v4970_v10  ;;  %v4890_v46 = vmax.f32 %v4690_v39, 0.0 }
 0x4fd   :  { %v4696_v52 = vadd.f32 %v4695_v31, %v8972_v19  ;;  %v4891_v53 = vmax.f32 %v4692_v4, 0.0 }
 0x4fe   :  { %v4892_v29 = vmax.f32 %v4694_v32, 0.0 }
 0x4ff   :  { %v4893_v50 = vmax.f32 %v4696_v52, 0.0 }
 0x500   :  { %v4972_v30 = vpack.c.bf16 %v4892_v29, %v4890_v46 }
 0x501   :  { %v4973_v59 = vpack.c.bf16 %v4893_v50, %v4891_v53  ;;  %v4699_v37 = vpop.f32.mrb[104].mxu1 }
 0x502   :  { %v4700_v60 = vadd.f32 %v4699_v37, %v8969_v55  ;;  %v4701_v57 = vpop.f32.mrb[105].mxu1 }
 0x503   :  { %v4702_v26 = vadd.f32 %v4701_v57, %v8972_v19  ;;  %v4703_v42 = vpop.f32.mrb[106].mxu1  ;;  %5201 = vmatprep.mubr.bf16.mxu1 %v4973_v59 }
 0x504   :  { %v4704_v34 = vadd.f32 %v4703_v42, %v8969_v55  ;;  %v4705_v15 = vpop.f32.mrb[107].mxu1  ;;  %5202 = vmatmul.mubr.bf16.gmra.mrb[188].mxu1 %v4972_v30  ;;  %v4894_v28 = vmax.f32 %v4700_v60, 0.0 }
 0x505   :  { %v4706_v12 = vadd.f32 %v4705_v15, %v8972_v19  ;;  %v4895_v33 = vmax.f32 %v4702_v26, 0.0 }
 0x506   :  { %v4896_v58 = vmax.f32 %v4704_v34, 0.0 }
 0x507   :  { %v4897_v27 = vmax.f32 %v4706_v12, 0.0 }
 0x508   :  { %v4974_v62 = vpack.c.bf16 %v4896_v58, %v4894_v28 }
 0x509   :  { %v4975_v43 = vpack.c.bf16 %v4897_v27, %v4895_v33  ;;  %v4709_v35 = vpop.f32.mrb[108].mxu1 }
 0x50a   :  { %v4710_v24 = vadd.f32 %v4709_v35, %v8969_v55  ;;  %v4711_v16 = vpop.f32.mrb[109].mxu1 }
 0x50b   :  { %v4712_v40 = vadd.f32 %v4711_v16, %v8972_v19  ;;  %v4713_v20 = vpop.f32.mrb[110].mxu1  ;;  %5209 = vmatprep.mubr.bf16.mxu1 %v4975_v43 }
 0x50c   :  { %v4714_v44 = vadd.f32 %v4713_v20, %v8969_v55  ;;  %v4715_v22 = vpop.f32.mrb[111].mxu1  ;;  %5210 = vmatmul.mubr.bf16.gmra.mrb[192].mxu1 %v4974_v62  ;;  %v4898_v61 = vmax.f32 %v4710_v24, 0.0 }
 0x50d   :  { %v4716_v2 = vadd.f32 %v4715_v22, %v8972_v19  ;;  %v4899_v36 = vmax.f32 %v4712_v40, 0.0 }
 0x50e   :  { %v4900_v41 = vmax.f32 %v4714_v44, 0.0 }
 0x50f   :  { %v4901_v6 = vmax.f32 %v4716_v2, 0.0 }
 0x510   :  { %v4976_v8 = vpack.c.bf16 %v4900_v41, %v4898_v61 }
 0x511   :  { %v4977_v47 = vpack.c.bf16 %v4901_v6, %v4899_v36  ;;  %v4719_v49 = vpop.f32.mrb[112].mxu1 }
 0x512   :  { %v4720_v21 = vadd.f32 %v4719_v49, %v8969_v55  ;;  %v4721_v23 = vpop.f32.mrb[113].mxu1 }
 0x513   :  { %v4722_v63 = vadd.f32 %v4721_v23, %v8972_v19  ;;  %v4723_v1 = vpop.f32.mrb[114].mxu1  ;;  %5217 = vmatprep.mubr.bf16.mxu1 %v4977_v47 }
 0x514   :  { %v4724_v48 = vadd.f32 %v4723_v1, %v8969_v55  ;;  %v4725_v45 = vpop.f32.mrb[115].mxu1  ;;  %5218 = vmatmul.mubr.bf16.gmra.mrb[196].mxu1 %v4976_v8  ;;  %v4902_v9 = vmax.f32 %v4720_v21, 0.0 }
 0x515   :  { %v4726_v25 = vadd.f32 %v4725_v45, %v8972_v19  ;;  %v4903_v54 = vmax.f32 %v4722_v63, 0.0 }
 0x516   :  { %v4904_v11 = vmax.f32 %v4724_v48, 0.0 }
 0x517   :  { %v4905_v56 = vmax.f32 %v4726_v25, 0.0 }
 0x518   :  { %v4978_v38 = vpack.c.bf16 %v4904_v11, %v4902_v9 }
 0x519   :  { %v4979_v14 = vpack.c.bf16 %v4905_v56, %v4903_v54  ;;  %v4729_v3 = vpop.f32.mrb[116].mxu1 }
 0x51a   :  { %v4730_v5 = vadd.f32 %v4729_v3, %v8969_v55  ;;  %v4731_v0 = vpop.f32.mrb[117].mxu1 }
 0x51b   :  { %v4732_v7 = vadd.f32 %v4731_v0, %v8972_v19  ;;  %v4733_v10 = vpop.f32.mrb[118].mxu1  ;;  %5225 = vmatprep.mubr.bf16.mxu1 %v4979_v14 }
 0x51c   :  { %v4734_v17 = vadd.f32 %v4733_v10, %v8969_v55  ;;  %v4735_v13 = vpop.f32.mrb[119].mxu1  ;;  %5226 = vmatmul.mubr.bf16.gmra.mrb[200].mxu1 %v4978_v38  ;;  %v4906_v51 = vmax.f32 %v4730_v5, 0.0 }
 0x51d   :  { %v4736_v39 = vadd.f32 %v4735_v13, %v8972_v19  ;;  %v4907_v18 = vmax.f32 %v4732_v7, 0.0 }
 0x51e   :  { %v4908_v4 = vmax.f32 %v4734_v17, 0.0 }
 0x51f   :  { %v4909_v32 = vmax.f32 %v4736_v39, 0.0 }
 0x520   :  { %v4980_v31 = vpack.c.bf16 %v4908_v4, %v4906_v51 }
 0x521   :  { %v4981_v52 = vpack.c.bf16 %v4909_v32, %v4907_v18  ;;  %v4739_v46 = vpop.f32.mrb[120].mxu1 }
 0x522   :  { %v4740_v29 = vadd.f32 %v4739_v46, %v8969_v55  ;;  %v4741_v53 = vpop.f32.mrb[121].mxu1 }
 0x523   :  { %v4742_v50 = vadd.f32 %v4741_v53, %v8972_v19  ;;  %v4743_v30 = vpop.f32.mrb[122].mxu1  ;;  %5233 = vmatprep.mubr.bf16.mxu1 %v4981_v52 }
 0x524   :  { %v4744_v59 = vadd.f32 %v4743_v30, %v8969_v55  ;;  %v4745_v37 = vpop.f32.mrb[123].mxu1  ;;  %5234 = vmatmul.mubr.bf16.gmra.mrb[204].mxu1 %v4980_v31  ;;  %v4910_v57 = vmax.f32 %v4740_v29, 0.0 }
 0x525   :  { %v4746_v60 = vadd.f32 %v4745_v37, %v8972_v19  ;;  %v4911_v42 = vmax.f32 %v4742_v50, 0.0 }
 0x526   :  { %v4912_v26 = vmax.f32 %v4744_v59, 0.0 }
 0x527   :  { %v4913_v34 = vmax.f32 %v4746_v60, 0.0 }
 0x528   :  { %v4982_v15 = vpack.c.bf16 %v4912_v26, %v4910_v57 }
 0x529   :  { %v4983_v12 = vpack.c.bf16 %v4913_v34, %v4911_v42  ;;  %v4749_v28 = vpop.f32.mrb[124].mxu1 }
 0x52a   :  { %v4750_v58 = vadd.f32 %v4749_v28, %v8969_v55  ;;  %v4751_v33 = vpop.f32.mrb[125].mxu1 }
 0x52b   :  { %v4752_v27 = vadd.f32 %v4751_v33, %v8972_v19  ;;  %v4753_v62 = vpop.f32.mrb[126].mxu1  ;;  %5241 = vmatprep.mubr.bf16.mxu1 %v4983_v12 }
 0x52c   :  { %v4754_v43 = vadd.f32 %v4753_v62, %v8969_v55  ;;  %v4755_v35 = vpop.f32.mrb[127].mxu1  ;;  %5242 = vmatmul.mubr.bf16.gmra.mrb[208].mxu1 %v4982_v15  ;;  %v4914_v16 = vmax.f32 %v4750_v58, 0.0 }
 0x52d   :  { %v4756_v24 = vadd.f32 %v4755_v35, %v8972_v19  ;;  %v4915_v20 = vmax.f32 %v4752_v27, 0.0 }
 0x52e   :  { %v4916_v40 = vmax.f32 %v4754_v43, 0.0 }
 0x52f   :  { %v4917_v44 = vmax.f32 %v4756_v24, 0.0 }
 0x530   :  { %v4984_v22 = vpack.c.bf16 %v4916_v40, %v4914_v16 }
 0x531   :  { %v4985_v2 = vpack.c.bf16 %v4917_v44, %v4915_v20  ;;  %v4759_v61 = vpop.f32.mrb[128].mxu1 }
 0x532   :  { %v4760_v41 = vadd.f32 %v4759_v61, %v8969_v55  ;;  %v4761_v36 = vpop.f32.mrb[129].mxu1 }
 0x533   :  { %v4762_v6 = vadd.f32 %v4761_v36, %v8972_v19  ;;  %v4763_v8 = vpop.f32.mrb[130].mxu1  ;;  %5249 = vmatprep.mubr.bf16.mxu1 %v4985_v2 }
 0x534   :  { %v4764_v47 = vadd.f32 %v4763_v8, %v8969_v55  ;;  %v4765_v49 = vpop.f32.mrb[131].mxu1  ;;  %5250 = vmatmul.mubr.bf16.gmra.mrb[212].mxu1 %v4984_v22  ;;  %v4918_v23 = vmax.f32 %v4760_v41, 0.0 }
 0x535   :  { %v4766_v21 = vadd.f32 %v4765_v49, %v8972_v19  ;;  %v4919_v1 = vmax.f32 %v4762_v6, 0.0 }
 0x536   :  { %v4920_v63 = vmax.f32 %v4764_v47, 0.0 }
 0x537   :  { %v4921_v48 = vmax.f32 %v4766_v21, 0.0 }
 0x538   :  { %v4986_v45 = vpack.c.bf16 %v4920_v63, %v4918_v23 }
 0x539   :  { %v4987_v25 = vpack.c.bf16 %v4921_v48, %v4919_v1  ;;  %v4769_v9 = vpop.f32.mrb[132].mxu1 }
 0x53a   :  { %v4770_v11 = vadd.f32 %v4769_v9, %v8969_v55  ;;  %v4771_v54 = vpop.f32.mrb[133].mxu1 }
 0x53b   :  { %v4772_v56 = vadd.f32 %v4771_v54, %v8972_v19  ;;  %v4773_v38 = vpop.f32.mrb[134].mxu1  ;;  %5257 = vmatprep.mubr.bf16.mxu1 %v4987_v25 }
 0x53c   :  { %v4774_v14 = vadd.f32 %v4773_v38, %v8969_v55  ;;  %v4775_v3 = vpop.f32.mrb[135].mxu1  ;;  %5258 = vmatmul.mubr.bf16.gmra.mrb[216].mxu1 %v4986_v45  ;;  %v4922_v0 = vmax.f32 %v4770_v11, 0.0 }
 0x53d   :  { %v4776_v5 = vadd.f32 %v4775_v3, %v8972_v19  ;;  %v4923_v10 = vmax.f32 %v4772_v56, 0.0 }
 0x53e   :  { %v4924_v7 = vmax.f32 %v4774_v14, 0.0 }
 0x53f   :  { %v4925_v17 = vmax.f32 %v4776_v5, 0.0 }
 0x540   :  { %v4988_v13 = vpack.c.bf16 %v4924_v7, %v4922_v0 }
 0x541   :  { %v4989_v39 = vpack.c.bf16 %v4925_v17, %v4923_v10  ;;  %v4779_v51 = vpop.f32.mrb[136].mxu1 }
 0x542   :  { %v4780_v4 = vadd.f32 %v4779_v51, %v8969_v55  ;;  %v4781_v18 = vpop.f32.mrb[137].mxu1 }
 0x543   :  { %v4782_v32 = vadd.f32 %v4781_v18, %v8972_v19  ;;  %v4783_v31 = vpop.f32.mrb[138].mxu1  ;;  %5265 = vmatprep.mubr.bf16.mxu1 %v4989_v39 }
 0x544   :  { %v4784_v52 = vadd.f32 %v4783_v31, %v8969_v55  ;;  %v4785_v46 = vpop.f32.mrb[139].mxu1  ;;  %5266 = vmatmul.mubr.bf16.gmra.mrb[220].mxu1 %v4988_v13  ;;  %v4926_v53 = vmax.f32 %v4780_v4, 0.0 }
 0x545   :  { %v4786_v29 = vadd.f32 %v4785_v46, %v8972_v19  ;;  %v4927_v30 = vmax.f32 %v4782_v32, 0.0 }
 0x546   :  { %v4928_v50 = vmax.f32 %v4784_v52, 0.0 }
 0x547   :  { %v4929_v59 = vmax.f32 %v4786_v29, 0.0 }
 0x548   :  { %v4990_v37 = vpack.c.bf16 %v4928_v50, %v4926_v53 }
 0x549   :  { %v4991_v60 = vpack.c.bf16 %v4929_v59, %v4927_v30  ;;  %v4789_v57 = vpop.f32.mrb[140].mxu1 }
 0x54a   :  { %v4790_v26 = vadd.f32 %v4789_v57, %v8969_v55  ;;  %v4791_v42 = vpop.f32.mrb[141].mxu1 }
 0x54b   :  { %v4792_v34 = vadd.f32 %v4791_v42, %v8972_v19  ;;  %v4793_v15 = vpop.f32.mrb[142].mxu1  ;;  %5273 = vmatprep.mubr.bf16.mxu1 %v4991_v60 }
 0x54c   :  { %v4794_v12 = vadd.f32 %v4793_v15, %v8969_v55  ;;  %v4795_v28 = vpop.f32.mrb[143].mxu1  ;;  %5274 = vmatmul.mubr.bf16.gmra.mrb[224].mxu1 %v4990_v37  ;;  %v4930_v33 = vmax.f32 %v4790_v26, 0.0 }
 0x54d   :  { %v4796_v58 = vadd.f32 %v4795_v28, %v8972_v19  ;;  %v4931_v62 = vmax.f32 %v4792_v34, 0.0 }
 0x54e   :  { %v4932_v27 = vmax.f32 %v4794_v12, 0.0 }
 0x54f   :  { %v4933_v43 = vmax.f32 %v4796_v58, 0.0 }
 0x550   :  { %v4992_v35 = vpack.c.bf16 %v4932_v27, %v4930_v33 }
 0x551   :  { %v4993_v24 = vpack.c.bf16 %v4933_v43, %v4931_v62  ;;  %v4799_v16 = vpop.f32.mrb[144].mxu1 }
 0x552   :  { %v4800_v40 = vadd.f32 %v4799_v16, %v8969_v55  ;;  %v4801_v20 = vpop.f32.mrb[145].mxu1 }
 0x553   :  { %v4802_v44 = vadd.f32 %v4801_v20, %v8972_v19  ;;  %v4803_v22 = vpop.f32.mrb[146].mxu1  ;;  %5281 = vmatprep.mubr.bf16.mxu1 %v4993_v24 }
 0x554   :  { %v4804_v2 = vadd.f32 %v4803_v22, %v8969_v55  ;;  %v4805_v61 = vpop.f32.mrb[147].mxu1  ;;  %5282 = vmatmul.mubr.bf16.gmra.mrb[228].mxu1 %v4992_v35  ;;  %v4934_v36 = vmax.f32 %v4800_v40, 0.0 }
 0x555   :  { %v4806_v41 = vadd.f32 %v4805_v61, %v8972_v19  ;;  %v4935_v8 = vmax.f32 %v4802_v44, 0.0 }
 0x556   :  { %v4936_v6 = vmax.f32 %v4804_v2, 0.0 }
 0x557   :  { %v4937_v47 = vmax.f32 %v4806_v41, 0.0 }
 0x558   :  { %v4994_v49 = vpack.c.bf16 %v4936_v6, %v4934_v36 }
 0x559   :  { %v4995_v21 = vpack.c.bf16 %v4937_v47, %v4935_v8  ;;  %v4809_v23 = vpop.f32.mrb[148].mxu1 }
 0x55a   :  { %v4810_v63 = vadd.f32 %v4809_v23, %v8969_v55  ;;  %v4811_v1 = vpop.f32.mrb[149].mxu1 }
 0x55b   :  { %v4812_v48 = vadd.f32 %v4811_v1, %v8972_v19  ;;  %v4813_v45 = vpop.f32.mrb[150].mxu1  ;;  %5289 = vmatprep.mubr.bf16.mxu1 %v4995_v21 }
 0x55c   :  { %v4814_v25 = vadd.f32 %v4813_v45, %v8969_v55  ;;  %v4815_v9 = vpop.f32.mrb[151].mxu1  ;;  %5290 = vmatmul.mubr.bf16.gmra.mrb[232].mxu1 %v4994_v49  ;;  %v4938_v54 = vmax.f32 %v4810_v63, 0.0 }
 0x55d   :  { %v4816_v11 = vadd.f32 %v4815_v9, %v8972_v19  ;;  %v4939_v38 = vmax.f32 %v4812_v48, 0.0 }
 0x55e   :  { %v4940_v56 = vmax.f32 %v4814_v25, 0.0 }
 0x55f   :  { %v4941_v14 = vmax.f32 %v4816_v11, 0.0 }
 0x560   :  { %v4996_v3 = vpack.c.bf16 %v4940_v56, %v4938_v54 }
 0x561   :  { %v4997_v5 = vpack.c.bf16 %v4941_v14, %v4939_v38  ;;  %v4819_v0 = vpop.f32.mrb[152].mxu1 }
 0x562   :  { %v4820_v7 = vadd.f32 %v4819_v0, %v8969_v55  ;;  %v4821_v10 = vpop.f32.mrb[153].mxu1 }
 0x563   :  { %v4822_v17 = vadd.f32 %v4821_v10, %v8972_v19  ;;  %v4823_v13 = vpop.f32.mrb[154].mxu1  ;;  %5297 = vmatprep.mubr.bf16.mxu1 %v4997_v5 }
 0x564   :  { %v4824_v39 = vadd.f32 %v4823_v13, %v8969_v55  ;;  %v4825_v51 = vpop.f32.mrb[155].mxu1  ;;  %5298 = vmatmul.mubr.bf16.gmra.mrb[236].mxu1 %v4996_v3  ;;  %v4942_v18 = vmax.f32 %v4820_v7, 0.0 }
 0x565   :  { %v4826_v4 = vadd.f32 %v4825_v51, %v8972_v19  ;;  %v4943_v31 = vmax.f32 %v4822_v17, 0.0 }
 0x566   :  { %v4944_v32 = vmax.f32 %v4824_v39, 0.0 }
 0x567   :  { %v4945_v52 = vmax.f32 %v4826_v4, 0.0 }
 0x568   :  { %v4998_v46 = vpack.c.bf16 %v4944_v32, %v4942_v18 }
 0x569   :  { %v4999_v29 = vpack.c.bf16 %v4945_v52, %v4943_v31  ;;  %v4829_v53 = vpop.f32.mrb[156].mxu1 }
 0x56a   :  { %v4830_v50 = vadd.f32 %v4829_v53, %v8969_v55  ;;  %v4831_v30 = vpop.f32.mrb[157].mxu1 }
 0x56b   :  { %v4832_v59 = vadd.f32 %v4831_v30, %v8972_v19  ;;  %v4833_v37 = vpop.f32.mrb[158].mxu1  ;;  %5305 = vmatprep.mubr.bf16.mxu1 %v4999_v29 }
 0x56c   :  { %v4834_v60 = vadd.f32 %v4833_v37, %v8969_v55  ;;  %v4835_v57 = vpop.f32.mrb[159].mxu1  ;;  %5306 = vmatmul.mubr.bf16.gmra.mrb[240].mxu1 %v4998_v46  ;;  %v4946_v42 = vmax.f32 %v4830_v50, 0.0 }
 0x56d   :  { %v4836_v26 = vadd.f32 %v4835_v57, %v8972_v19  ;;  %v4947_v15 = vmax.f32 %v4832_v59, 0.0 }
 0x56e   :  { %v4948_v34 = vmax.f32 %v4834_v60, 0.0 }
 0x56f   :  { %v4949_v12 = vmax.f32 %v4836_v26, 0.0 }
 0x570   :  { %v5000_v28 = vpack.c.bf16 %v4948_v34, %v4946_v42  ;;  %v9065_v42 = vld [vmem:[%s9437_s8] ss:$0 sm:$0xff] }
 0x571   :  { %v5001_v58 = vpack.c.bf16 %v4949_v12, %v4947_v15  ;;  %v4839_v33 = vpop.f32.mrb[160].mxu1 }
 0x572   :  { %v4840_v27 = vadd.f32 %v4839_v33, %v8969_v55  ;;  %v4841_v62 = vpop.f32.mrb[161].mxu1 }
 0x573   :  { %v4842_v43 = vadd.f32 %v4841_v62, %v8972_v19  ;;  %v4843_v35 = vpop.f32.mrb[162].mxu1  ;;  %5313 = vmatprep.mubr.bf16.mxu1 %v5001_v58 }
 0x574   :  { %v4844_v24 = vadd.f32 %v4843_v35, %v8969_v55  ;;  %v4845_v16 = vpop.f32.mrb[163].mxu1  ;;  %5314 = vmatmul.mubr.bf16.gmra.mrb[244].mxu1 %v5000_v28  ;;  %v4950_v20 = vmax.f32 %v4840_v27, 0.0 }
 0x575   :  { %v4846_v40 = vadd.f32 %v4845_v16, %v8972_v19  ;;  %v4951_v22 = vmax.f32 %v4842_v43, 0.0 }
 0x576   :  { %v4952_v44 = vmax.f32 %v4844_v24, 0.0 }
 0x577   :  { %v4953_v2 = vmax.f32 %v4846_v40, 0.0 }
 0x578   :  { %v5002_v61 = vpack.c.bf16 %v4952_v44, %v4950_v20 }
 0x579   :  { %v5003_v41 = vpack.c.bf16 %v4953_v2, %v4951_v22  ;;  %v4849_v36 = vpop.f32.mrb[164].mxu1 }
 0x57a   :  { %v4850_v6 = vadd.f32 %v4849_v36, %v8969_v55  ;;  %v4851_v8 = vpop.f32.mrb[165].mxu1 }
 0x57b   :  { %v4852_v47 = vadd.f32 %v4851_v8, %v8972_v19  ;;  %v4853_v49 = vpop.f32.mrb[166].mxu1  ;;  %5321 = vmatprep.mubr.bf16.mxu1 %v5003_v41 }
 0x57c   :  { %v4854_v21 = vadd.f32 %v4853_v49, %v8969_v55  ;;  %v4855_v23 = vpop.f32.mrb[167].mxu1  ;;  %5322 = vmatmul.mubr.bf16.gmra.mrb[248].mxu1 %v5002_v61  ;;  %v4954_v1 = vmax.f32 %v4850_v6, 0.0  ;;  %v16_v6 = vstv %s9439_s10 }
 0x57d   :  { %v4856_v63 = vadd.f32 %v4855_v23, %v8972_v19  ;;  %v4955_v45 = vmax.f32 %v4852_v47, 0.0  ;;  %17 = vst [vmem:[#allocation2] sm:$0x1] %v16_v6 }
 0x57e   :  { %v4956_v48 = vmax.f32 %v4854_v21, 0.0 }
 0x57f   :  { %v4957_v25 = vmax.f32 %v4856_v63, 0.0 }
 0x580   :  { %v5004_v9 = vpack.c.bf16 %v4956_v48, %v4954_v1 }
 0x581   :  { %v5005_v11 = vpack.c.bf16 %v4957_v25, %v4955_v45  ;;  %v4859_v54 = vpop.f32.mrb[168].mxu1 }
 0x582   :  { %v4860_v56 = vadd.f32 %v4859_v54, %v8969_v55  ;;  %v4861_v38 = vpop.f32.mrb[169].mxu1 }
 0x583   :  { %v4862_v14 = vadd.f32 %v4861_v38, %v8972_v19  ;;  %v4863_v3 = vpop.f32.mrb[170].mxu1  ;;  %5329 = vmatprep.mubr.bf16.mxu1 %v5005_v11 }
 0x584   :  { %v4864_v5 = vadd.f32 %v4863_v3, %v8969_v55  ;;  %v4865_v0 = vpop.f32.mrb[171].mxu1  ;;  %5330 = vmatmul.mubr.bf16.gmra.mrb[252].mxu1 %v5004_v9  ;;  %v4958_v10 = vmax.f32 %v4860_v56, 0.0 }
 0x585   :  { %v4866_v7 = vadd.f32 %v4865_v0, %v8972_v19  ;;  %v4959_v13 = vmax.f32 %v4862_v14, 0.0 }
 0x586   :  { %v4960_v17 = vmax.f32 %v4864_v5, 0.0 }
 0x587   :  { %v4961_v39 = vmax.f32 %v4866_v7, 0.0 }
 0x588   :  { %v5006_v51 = vpack.c.bf16 %v4960_v17, %v4958_v10 }
 0x589   :  { %v5007_v4 = vpack.c.bf16 %v4961_v39, %v4959_v13  ;;  %v4869_v18 = vpop.f32.mrb[172].mxu1 }
 0x58a   :  { %v4870_v32 = vadd.f32 %v4869_v18, %v8969_v55  ;;  %v4871_v31 = vpop.f32.mrb[173].mxu1 }
 0x58b   :  { %v4872_v52 = vadd.f32 %v4871_v31, %v8972_v19  ;;  %v4873_v46 = vpop.f32.mrb[174].mxu1  ;;  %5337 = vmatprep.mubr.bf16.mxu1 %v5007_v4 }
 0x58c   :  { %v4874_v29 = vadd.f32 %v4873_v46, %v8969_v55  ;;  %v4875_v53 = vpop.f32.mrb[175].mxu1  ;;  %5338 = vmatmul.mubr.bf16.gmra.mrb[0].mxu1 %v5006_v51  ;;  %v4962_v30 = vmax.f32 %v4870_v32, 0.0 }
 0x58d   :  { %v4876_v50 = vadd.f32 %v4875_v53, %v8972_v19  ;;  %v4963_v37 = vmax.f32 %v4872_v52, 0.0  ;;  %v9071_v19 = vld [vmem:[%s9438_s9] ss:$0 sm:$0xff] }
 0x58e   :  { %v4964_v59 = vmax.f32 %v4874_v29, 0.0 }
 0x58f   :  { %v4965_v60 = vmax.f32 %v4876_v50, 0.0 }
 0x590   :  { %v5008_v57 = vpack.c.bf16 %v4964_v59, %v4962_v30 }
 0x591   :  { %v5009_v26 = vpack.c.bf16 %v4965_v60, %v4963_v37 }
 0x593   :  { %5345 = vmatprep.mubr.bf16.mxu1 %v5009_v26 }
 0x594   :  { %5346 = vmatmul.mubr.bf16.gmra.mrb[4].mxu1 %v5008_v57 }
 0x5bf   :  { %v5179_v34 = vpop.f32.mrb[176].mxu1 }
 0x5c0   :  { %v5180_v55 = vadd.f32 %v9065_v42, %v5179_v34  ;;  %v5181_v15 = vpop.f32.mrb[177].mxu1 }
 0x5c1   :  { %v5182_v12 = vpop.f32.mrb[178].mxu1 }
 0x5c2   :  { %v5354_v28 = vmax.f32 %v5180_v55, 0.0  ;;  %v5183_v58 = vadd.f32 %v9065_v42, %v5182_v12  ;;  %v5184_v33 = vpop.f32.mrb[179].mxu1 }
 0x5c4   :  { %v5355_v27 = vmax.f32 %v5183_v58, 0.0  ;;  %v5405_v62 = vmul.f32 %v9071_v19, %v5354_v28 }
 0x5c6   :  { %v5450_v43 = vsel %vm5449_vm2, %v5405_v62, 0.0  ;;  %v5406_v35 = vmul.f32 %v9071_v19, %v5355_v27 }
 0x5c7   :  { %v5187_v24 = vpop.f32.mrb[180].mxu1  ;;  %5451 = vadd.xlane.f32.xlu0 %v5450_v43 }
 0x5c8   :  { %v5188_v16 = vadd.f32 %v9065_v42, %v5187_v24  ;;  %v5189_v40 = vpop.f32.mrb[181].mxu1  ;;  %v5453_v61 = vsel %vm5449_vm2, %v5406_v35, 0.0 }
 0x5c9   :  { %v5190_v20 = vpop.f32.mrb[182].mxu1 }
 0x5ca   :  { %v5356_v44 = vmax.f32 %v5188_v16, 0.0  ;;  %v5191_v22 = vadd.f32 %v9065_v42, %v5190_v20  ;;  %v5192_v2 = vpop.f32.mrb[183].mxu1 }
 0x5cb   :  { %5454 = vadd.xlane.f32.xlu0 %v5453_v61 }
 0x5cc   :  { %v5357_v41 = vmax.f32 %v5191_v22, 0.0  ;;  %v5407_v36 = vmul.f32 %v9071_v19, %v5356_v44 }
 0x5ce   :  { %v5456_v8 = vsel %vm5449_vm2, %v5407_v36, 0.0  ;;  %v5408_v47 = vmul.f32 %v9071_v19, %v5357_v41 }
 0x5cf   :  { %v5195_v49 = vpop.f32.mrb[184].mxu1  ;;  %5457 = vadd.xlane.f32.xlu1 %v5456_v8 }
 0x5d0   :  { %v5196_v21 = vadd.f32 %v9065_v42, %v5195_v49  ;;  %v5197_v23 = vpop.f32.mrb[185].mxu1  ;;  %v5459_v25 = vsel %vm5449_vm2, %v5408_v47, 0.0 }
 0x5d1   :  { %v5198_v63 = vpop.f32.mrb[186].mxu1 }
 0x5d2   :  { %v5358_v1 = vmax.f32 %v5196_v21, 0.0  ;;  %v5199_v48 = vadd.f32 %v9065_v42, %v5198_v63  ;;  %v5200_v45 = vpop.f32.mrb[187].mxu1 }
 0x5d3   :  { %5460 = vadd.xlane.f32.xlu1 %v5459_v25 }
 0x5d4   :  { %v5359_v9 = vmax.f32 %v5199_v48, 0.0  ;;  %v5409_v11 = vmul.f32 %v9071_v19, %v5358_v1 }
 0x5d6   :  { %v5462_v54 = vsel %vm5449_vm2, %v5409_v11, 0.0  ;;  %v5410_v56 = vmul.f32 %v9071_v19, %v5359_v9 }
 0x5d7   :  { %v5203_v38 = vpop.f32.mrb[188].mxu1  ;;  %5463 = vadd.xlane.f32.xlu0 %v5462_v54 }
 0x5d8   :  { %v5204_v14 = vadd.f32 %v9065_v42, %v5203_v38  ;;  %v5205_v3 = vpop.f32.mrb[189].mxu1  ;;  %v5465_v5 = vsel %vm5449_vm2, %v5410_v56, 0.0 }
 0x5d9   :  { %v5206_v0 = vpop.f32.mrb[190].mxu1  ;;  %5466 = vadd.xlane.f32.xlu1 %v5465_v5 }
 0x5da   :  { %v5360_v7 = vmax.f32 %v5204_v14, 0.0  ;;  %v5207_v10 = vadd.f32 %v9065_v42, %v5206_v0  ;;  %v5208_v17 = vpop.f32.mrb[191].mxu1 }
 0x5dc   :  { %v5361_v13 = vmax.f32 %v5207_v10, 0.0  ;;  %v5411_v39 = vmul.f32 %v9071_v19, %v5360_v7 }
 0x5de   :  { %v5468_v51 = vsel %vm5449_vm2, %v5411_v39, 0.0  ;;  %v5412_v4 = vmul.f32 %v9071_v19, %v5361_v13 }
 0x5df   :  { %v5211_v18 = vpop.f32.mrb[192].mxu1  ;;  %5469 = vadd.xlane.f32.xlu0 %v5468_v51 }
 0x5e0   :  { %v5212_v32 = vadd.f32 %v9065_v42, %v5211_v18  ;;  %v5213_v31 = vpop.f32.mrb[193].mxu1  ;;  %v5471_v52 = vsel %vm5449_vm2, %v5412_v4, 0.0 }
 0x5e1   :  { %v5214_v46 = vpop.f32.mrb[194].mxu1  ;;  %5472 = vadd.xlane.f32.xlu1 %v5471_v52 }
 0x5e2   :  { %v5362_v29 = vmax.f32 %v5212_v32, 0.0  ;;  %v5215_v53 = vadd.f32 %v9065_v42, %v5214_v46  ;;  %v5216_v50 = vpop.f32.mrb[195].mxu1 }
 0x5e4   :  { %v5363_v30 = vmax.f32 %v5215_v53, 0.0  ;;  %v5413_v59 = vmul.f32 %v9071_v19, %v5362_v29 }
 0x5e6   :  { %v5474_v37 = vsel %vm5449_vm2, %v5413_v59, 0.0  ;;  %v5414_v60 = vmul.f32 %v9071_v19, %v5363_v30 }
 0x5e7   :  { %v5219_v57 = vpop.f32.mrb[196].mxu1  ;;  %5475 = vadd.xlane.f32.xlu0 %v5474_v37 }
 0x5e8   :  { %v5220_v26 = vadd.f32 %v9065_v42, %v5219_v57  ;;  %v5221_v34 = vpop.f32.mrb[197].mxu1  ;;  %v5477_v55 = vsel %vm5449_vm2, %v5414_v60, 0.0 }
 0x5e9   :  { %v5222_v15 = vpop.f32.mrb[198].mxu1  ;;  %5478 = vadd.xlane.f32.xlu1 %v5477_v55 }
 0x5ea   :  { %v5364_v12 = vmax.f32 %v5220_v26, 0.0  ;;  %v5223_v28 = vadd.f32 %v9065_v42, %v5222_v15  ;;  %v5224_v58 = vpop.f32.mrb[199].mxu1 }
 0x5ec   :  { %v5365_v33 = vmax.f32 %v5223_v28, 0.0  ;;  %v5415_v27 = vmul.f32 %v9071_v19, %v5364_v12 }
 0x5ee   :  { %v5480_v62 = vsel %vm5449_vm2, %v5415_v27, 0.0  ;;  %v5416_v43 = vmul.f32 %v9071_v19, %v5365_v33 }
 0x5ef   :  { %v5227_v35 = vpop.f32.mrb[200].mxu1  ;;  %5481 = vadd.xlane.f32.xlu0 %v5480_v62 }
 0x5f0   :  { %v5228_v24 = vadd.f32 %v9065_v42, %v5227_v35  ;;  %v5229_v16 = vpop.f32.mrb[201].mxu1  ;;  %v5483_v40 = vsel %vm5449_vm2, %v5416_v43, 0.0 }
 0x5f1   :  { %v5230_v20 = vpop.f32.mrb[202].mxu1  ;;  %5484 = vadd.xlane.f32.xlu1 %v5483_v40 }
 0x5f2   :  { %v5366_v44 = vmax.f32 %v5228_v24, 0.0  ;;  %v5231_v22 = vadd.f32 %v9065_v42, %v5230_v20  ;;  %v5232_v2 = vpop.f32.mrb[203].mxu1 }
 0x5f4   :  { %v5367_v61 = vmax.f32 %v5231_v22, 0.0  ;;  %v5417_v41 = vmul.f32 %v9071_v19, %v5366_v44 }
 0x5f6   :  { %v5486_v36 = vsel %vm5449_vm2, %v5417_v41, 0.0  ;;  %v5418_v6 = vmul.f32 %v9071_v19, %v5367_v61 }
 0x5f7   :  { %v5235_v8 = vpop.f32.mrb[204].mxu1  ;;  %5487 = vadd.xlane.f32.xlu0 %v5486_v36 }
 0x5f8   :  { %v5236_v47 = vadd.f32 %v9065_v42, %v5235_v8  ;;  %v5237_v49 = vpop.f32.mrb[205].mxu1  ;;  %v5489_v21 = vsel %vm5449_vm2, %v5418_v6, 0.0 }
 0x5f9   :  { %v5238_v23 = vpop.f32.mrb[206].mxu1  ;;  %5490 = vadd.xlane.f32.xlu1 %v5489_v21 }
 0x5fa   :  { %v5368_v63 = vmax.f32 %v5236_v47, 0.0  ;;  %v5239_v1 = vadd.f32 %v9065_v42, %v5238_v23  ;;  %v5240_v48 = vpop.f32.mrb[207].mxu1 }
 0x5fc   :  { %v5369_v45 = vmax.f32 %v5239_v1, 0.0  ;;  %v5419_v25 = vmul.f32 %v9071_v19, %v5368_v63 }
 0x5fe   :  { %v5492_v9 = vsel %vm5449_vm2, %v5419_v25, 0.0  ;;  %v5420_v11 = vmul.f32 %v9071_v19, %v5369_v45 }
 0x5ff   :  { %v5243_v54 = vpop.f32.mrb[208].mxu1  ;;  %5493 = vadd.xlane.f32.xlu0 %v5492_v9 }
 0x600   :  { %v5244_v56 = vadd.f32 %v9065_v42, %v5243_v54  ;;  %v5245_v38 = vpop.f32.mrb[209].mxu1  ;;  %v5495_v14 = vsel %vm5449_vm2, %v5420_v11, 0.0 }
 0x601   :  { %v5246_v3 = vpop.f32.mrb[210].mxu1  ;;  %5496 = vadd.xlane.f32.xlu1 %v5495_v14 }
 0x602   :  { %v5370_v5 = vmax.f32 %v5244_v56, 0.0  ;;  %v5247_v0 = vadd.f32 %v9065_v42, %v5246_v3  ;;  %v5248_v7 = vpop.f32.mrb[211].mxu1 }
 0x604   :  { %v5371_v10 = vmax.f32 %v5247_v0, 0.0  ;;  %v5421_v17 = vmul.f32 %v9071_v19, %v5370_v5 }
 0x606   :  { %v5498_v13 = vsel %vm5449_vm2, %v5421_v17, 0.0  ;;  %v5422_v39 = vmul.f32 %v9071_v19, %v5371_v10 }
 0x607   :  { %v5251_v51 = vpop.f32.mrb[212].mxu1  ;;  %5499 = vadd.xlane.f32.xlu0 %v5498_v13 }
 0x608   :  { %v5252_v4 = vadd.f32 %v9065_v42, %v5251_v51  ;;  %v5253_v18 = vpop.f32.mrb[213].mxu1  ;;  %v5501_v32 = vsel %vm5449_vm2, %v5422_v39, 0.0 }
 0x609   :  { %v5254_v31 = vpop.f32.mrb[214].mxu1  ;;  %5502 = vadd.xlane.f32.xlu1 %v5501_v32 }
 0x60a   :  { %v5372_v52 = vmax.f32 %v5252_v4, 0.0  ;;  %v5255_v46 = vadd.f32 %v9065_v42, %v5254_v31  ;;  %v5256_v29 = vpop.f32.mrb[215].mxu1 }
 0x60c   :  { %v5373_v53 = vmax.f32 %v5255_v46, 0.0  ;;  %v5423_v50 = vmul.f32 %v9071_v19, %v5372_v52 }
 0x60e   :  { %v5504_v30 = vsel %vm5449_vm2, %v5423_v50, 0.0  ;;  %v5424_v59 = vmul.f32 %v9071_v19, %v5373_v53 }
 0x60f   :  { %v5259_v37 = vpop.f32.mrb[216].mxu1  ;;  %5505 = vadd.xlane.f32.xlu0 %v5504_v30 }
 0x610   :  { %v5260_v60 = vadd.f32 %v9065_v42, %v5259_v37  ;;  %v5261_v57 = vpop.f32.mrb[217].mxu1  ;;  %v5507_v26 = vsel %vm5449_vm2, %v5424_v59, 0.0 }
 0x611   :  { %v5262_v34 = vpop.f32.mrb[218].mxu1  ;;  %5508 = vadd.xlane.f32.xlu1 %v5507_v26 }
 0x612   :  { %v5374_v55 = vmax.f32 %v5260_v60, 0.0  ;;  %v5263_v15 = vadd.f32 %v9065_v42, %v5262_v34  ;;  %v5264_v12 = vpop.f32.mrb[219].mxu1 }
 0x614   :  { %v5375_v28 = vmax.f32 %v5263_v15, 0.0  ;;  %v5425_v58 = vmul.f32 %v9071_v19, %v5374_v55 }
 0x616   :  { %v5510_v33 = vsel %vm5449_vm2, %v5425_v58, 0.0  ;;  %v5426_v27 = vmul.f32 %v9071_v19, %v5375_v28 }
 0x617   :  { %v5267_v62 = vpop.f32.mrb[220].mxu1  ;;  %5511 = vadd.xlane.f32.xlu0 %v5510_v33 }
 0x618   :  { %v5268_v43 = vadd.f32 %v9065_v42, %v5267_v62  ;;  %v5269_v35 = vpop.f32.mrb[221].mxu1  ;;  %v5513_v24 = vsel %vm5449_vm2, %v5426_v27, 0.0 }
 0x619   :  { %v5270_v16 = vpop.f32.mrb[222].mxu1  ;;  %5514 = vadd.xlane.f32.xlu1 %v5513_v24 }
 0x61a   :  { %v5376_v40 = vmax.f32 %v5268_v43, 0.0  ;;  %v5271_v20 = vadd.f32 %v9065_v42, %v5270_v16  ;;  %v5272_v44 = vpop.f32.mrb[223].mxu1 }
 0x61c   :  { %v5377_v22 = vmax.f32 %v5271_v20, 0.0  ;;  %v5427_v2 = vmul.f32 %v9071_v19, %v5376_v40 }
 0x61e   :  { %v5516_v61 = vsel %vm5449_vm2, %v5427_v2, 0.0  ;;  %v5428_v41 = vmul.f32 %v9071_v19, %v5377_v22 }
 0x61f   :  { %v5275_v36 = vpop.f32.mrb[224].mxu1  ;;  %5517 = vadd.xlane.f32.xlu0 %v5516_v61 }
 0x620   :  { %v5276_v6 = vadd.f32 %v9065_v42, %v5275_v36  ;;  %v5277_v8 = vpop.f32.mrb[225].mxu1  ;;  %v5519_v47 = vsel %vm5449_vm2, %v5428_v41, 0.0 }
 0x621   :  { %v5278_v49 = vpop.f32.mrb[226].mxu1  ;;  %5520 = vadd.xlane.f32.xlu1 %v5519_v47 }
 0x622   :  { %v5378_v21 = vmax.f32 %v5276_v6, 0.0  ;;  %v5279_v23 = vadd.f32 %v9065_v42, %v5278_v49  ;;  %v5280_v63 = vpop.f32.mrb[227].mxu1 }
 0x624   :  { %v5379_v1 = vmax.f32 %v5279_v23, 0.0  ;;  %v5429_v48 = vmul.f32 %v9071_v19, %v5378_v21 }
 0x626   :  { %v5522_v45 = vsel %vm5449_vm2, %v5429_v48, 0.0  ;;  %v5430_v25 = vmul.f32 %v9071_v19, %v5379_v1 }
 0x627   :  { %v5283_v9 = vpop.f32.mrb[228].mxu1  ;;  %5523 = vadd.xlane.f32.xlu0 %v5522_v45 }
 0x628   :  { %v5284_v11 = vadd.f32 %v9065_v42, %v5283_v9  ;;  %v5285_v54 = vpop.f32.mrb[229].mxu1  ;;  %v5525_v56 = vsel %vm5449_vm2, %v5430_v25, 0.0 }
 0x629   :  { %v5286_v38 = vpop.f32.mrb[230].mxu1  ;;  %5526 = vadd.xlane.f32.xlu1 %v5525_v56 }
 0x62a   :  { %v5380_v14 = vmax.f32 %v5284_v11, 0.0  ;;  %v5287_v3 = vadd.f32 %v9065_v42, %v5286_v38  ;;  %v5288_v5 = vpop.f32.mrb[231].mxu1 }
 0x62c   :  { %v5381_v0 = vmax.f32 %v5287_v3, 0.0  ;;  %v5431_v7 = vmul.f32 %v9071_v19, %v5380_v14  ;;  %v9185_v3 = vld [vmem:[#allocation2] ss:$0 sm:$0xff] }
 0x62e   :  { %v5528_v10 = vsel %vm5449_vm2, %v5431_v7, 0.0  ;;  %v5432_v17 = vmul.f32 %v9071_v19, %v5381_v0 }
 0x62f   :  { %v5291_v13 = vpop.f32.mrb[232].mxu1  ;;  %5529 = vadd.xlane.f32.xlu0 %v5528_v10 }
 0x630   :  { %v5292_v39 = vadd.f32 %v9065_v42, %v5291_v13  ;;  %v5293_v51 = vpop.f32.mrb[233].mxu1  ;;  %v5531_v4 = vsel %vm5449_vm2, %v5432_v17, 0.0 }
 0x631   :  { %v5294_v18 = vpop.f32.mrb[234].mxu1  ;;  %5532 = vadd.xlane.f32.xlu1 %v5531_v4 }
 0x632   :  { %v5382_v32 = vmax.f32 %v5292_v39, 0.0  ;;  %v5295_v31 = vadd.f32 %v9065_v42, %v5294_v18  ;;  %v5296_v52 = vpop.f32.mrb[235].mxu1 }
 0x634   :  { %v5383_v46 = vmax.f32 %v5295_v31, 0.0  ;;  %v5433_v29 = vmul.f32 %v9071_v19, %v5382_v32 }
 0x636   :  { %v5534_v53 = vsel %vm5449_vm2, %v5433_v29, 0.0  ;;  %v5434_v50 = vmul.f32 %v9071_v19, %v5383_v46 }
 0x637   :  { %v5299_v30 = vpop.f32.mrb[236].mxu1  ;;  %5535 = vadd.xlane.f32.xlu0 %v5534_v53 }
 0x638   :  { %v5300_v59 = vadd.f32 %v9065_v42, %v5299_v30  ;;  %v5301_v37 = vpop.f32.mrb[237].mxu1  ;;  %v5537_v60 = vsel %vm5449_vm2, %v5434_v50, 0.0 }
 0x639   :  { %v5302_v57 = vpop.f32.mrb[238].mxu1  ;;  %5538 = vadd.xlane.f32.xlu1 %v5537_v60 }
 0x63a   :  { %v5384_v26 = vmax.f32 %v5300_v59, 0.0  ;;  %v5303_v34 = vadd.f32 %v9065_v42, %v5302_v57  ;;  %v5304_v55 = vpop.f32.mrb[239].mxu1 }
 0x63c   :  { %v5385_v15 = vmax.f32 %v5303_v34, 0.0  ;;  %v5435_v12 = vmul.f32 %v9071_v19, %v5384_v26 }
 0x63e   :  { %v5540_v28 = vsel %vm5449_vm2, %v5435_v12, 0.0  ;;  %v5436_v58 = vmul.f32 %v9071_v19, %v5385_v15 }
 0x63f   :  { %v5307_v33 = vpop.f32.mrb[240].mxu1  ;;  %5541 = vadd.xlane.f32.xlu0 %v5540_v28 }
 0x640   :  { %v5308_v27 = vadd.f32 %v9065_v42, %v5307_v33  ;;  %v5309_v62 = vpop.f32.mrb[241].mxu1  ;;  %v5543_v43 = vsel %vm5449_vm2, %v5436_v58, 0.0 }
 0x641   :  { %v5310_v35 = vpop.f32.mrb[242].mxu1  ;;  %5544 = vadd.xlane.f32.xlu1 %v5543_v43 }
 0x642   :  { %v5386_v24 = vmax.f32 %v5308_v27, 0.0  ;;  %v5311_v16 = vadd.f32 %v9065_v42, %v5310_v35  ;;  %v5312_v40 = vpop.f32.mrb[243].mxu1 }
 0x644   :  { %v5387_v20 = vmax.f32 %v5311_v16, 0.0  ;;  %v5437_v44 = vmul.f32 %v9071_v19, %v5386_v24 }
 0x646   :  { %v5546_v22 = vsel %vm5449_vm2, %v5437_v44, 0.0  ;;  %v5438_v2 = vmul.f32 %v9071_v19, %v5387_v20 }
 0x647   :  { %v5315_v61 = vpop.f32.mrb[244].mxu1  ;;  %5547 = vadd.xlane.f32.xlu0 %v5546_v22 }
 0x648   :  { %v5316_v41 = vadd.f32 %v9065_v42, %v5315_v61  ;;  %v5317_v36 = vpop.f32.mrb[245].mxu1  ;;  %v5549_v6 = vsel %vm5449_vm2, %v5438_v2, 0.0 }
 0x649   :  { %v5318_v8 = vpop.f32.mrb[246].mxu1  ;;  %5550 = vadd.xlane.f32.xlu1 %v5549_v6 }
 0x64a   :  { %v5388_v47 = vmax.f32 %v5316_v41, 0.0  ;;  %v5319_v49 = vadd.f32 %v9065_v42, %v5318_v8  ;;  %v5320_v21 = vpop.f32.mrb[247].mxu1 }
 0x64c   :  { %v5389_v23 = vmax.f32 %v5319_v49, 0.0  ;;  %v5439_v63 = vmul.f32 %v9071_v19, %v5388_v47 }
 0x64e   :  { %v5552_v1 = vsel %vm5449_vm2, %v5439_v63, 0.0  ;;  %v5440_v48 = vmul.f32 %v9071_v19, %v5389_v23 }
 0x64f   :  { %v5323_v45 = vpop.f32.mrb[248].mxu1  ;;  %5553 = vadd.xlane.f32.xlu0 %v5552_v1 }
 0x650   :  { %v5324_v25 = vadd.f32 %v9065_v42, %v5323_v45  ;;  %v5325_v9 = vpop.f32.mrb[249].mxu1  ;;  %v5555_v11 = vsel %vm5449_vm2, %v5440_v48, 0.0 }
 0x651   :  { %v5326_v54 = vpop.f32.mrb[250].mxu1  ;;  %5556 = vadd.xlane.f32.xlu1 %v5555_v11 }
 0x652   :  { %v5390_v56 = vmax.f32 %v5324_v25, 0.0  ;;  %v5327_v38 = vadd.f32 %v9065_v42, %v5326_v54  ;;  %v5328_v14 = vpop.f32.mrb[251].mxu1 }
 0x654   :  { %v5391_v5 = vmax.f32 %v5327_v38, 0.0  ;;  %v5452_v0 = vpop.xlane.xlu0 %5451  ;;  %v5441_v7 = vmul.f32 %v9071_v19, %v5390_v56 }
 0x655   :  { %v5589_v10 = vadd.f32 %v9185_v3, %v5452_v0 }
 0x656   :  { %v5558_v17 = vsel %vm5449_vm2, %v5441_v7, 0.0  ;;  %v5442_v13 = vmul.f32 %v9071_v19, %v5391_v5 }
 0x657   :  { %5634 = vst.msk [vmem:[%s9440_s11] sm:$0xff] %vm5633_vm3, %v5589_v10  ;;  %v5331_v39 = vpop.f32.mrb[252].mxu1  ;;  %5559 = vadd.xlane.f32.xlu0 %v5558_v17 }
 0x658   :  { %v5332_v51 = vadd.f32 %v9065_v42, %v5331_v39  ;;  %v5333_v4 = vpop.f32.mrb[253].mxu1  ;;  %v5455_v18 = vpop.xlane.xlu0 %5454  ;;  %v5561_v32 = vsel %vm5449_vm2, %v5442_v13, 0.0 }
 0x659   :  { %v5590_v31 = vadd.f32 %v9185_v3, %v5455_v18  ;;  %v5334_v52 = vpop.f32.mrb[254].mxu1  ;;  %5562 = vadd.xlane.f32.xlu1 %v5561_v32 }
 0x65a   :  { %v5392_v46 = vmax.f32 %v5332_v51, 0.0  ;;  %v5335_v29 = vadd.f32 %v9065_v42, %v5334_v52  ;;  %v5336_v53 = vpop.f32.mrb[255].mxu1 }
 0x65b   :  { %5635 = vst.msk [vmem:[%s9440_s11 + $0x8] sm:$0xff] %vm5633_vm3, %v5590_v31 }
 0x65c   :  { %v5393_v50 = vmax.f32 %v5335_v29, 0.0  ;;  %v5458_v30 = vpop.xlane.xlu1 %5457  ;;  %v5443_v59 = vmul.f32 %v9071_v19, %v5392_v46 }
 0x65d   :  { %v5591_v37 = vadd.f32 %v9185_v3, %v5458_v30 }
 0x65e   :  { %v5564_v60 = vsel %vm5449_vm2, %v5443_v59, 0.0  ;;  %v5444_v57 = vmul.f32 %v9071_v19, %v5393_v50 }
 0x65f   :  { %5636 = vst.msk [vmem:[%s9440_s11 + $0x10] sm:$0xff] %vm5633_vm3, %v5591_v37  ;;  %v5339_v26 = vpop.f32.mrb[0].mxu1  ;;  %5565 = vadd.xlane.f32.xlu0 %v5564_v60 }
 0x660   :  { %v5340_v34 = vadd.f32 %v9065_v42, %v5339_v26  ;;  %v5341_v55 = vpop.f32.mrb[1].mxu1  ;;  %v5461_v15 = vpop.xlane.xlu1 %5460  ;;  %v5567_v12 = vsel %vm5449_vm2, %v5444_v57, 0.0 }
 0x661   :  { %v5592_v28 = vadd.f32 %v9185_v3, %v5461_v15  ;;  %v5342_v58 = vpop.f32.mrb[2].mxu1  ;;  %5568 = vadd.xlane.f32.xlu1 %v5567_v12 }
 0x662   :  { %v5394_v33 = vmax.f32 %v5340_v34, 0.0  ;;  %v5343_v27 = vadd.f32 %v9065_v42, %v5342_v58  ;;  %v5344_v62 = vpop.f32.mrb[3].mxu1 }
 0x663   :  { %5637 = vst.msk [vmem:[%s9440_s11 + $0x18] sm:$0xff] %vm5633_vm3, %v5592_v28 }
 0x664   :  { %v5395_v43 = vmax.f32 %v5343_v27, 0.0  ;;  %v5464_v35 = vpop.xlane.xlu0 %5463  ;;  %v5445_v24 = vmul.f32 %v9071_v19, %v5394_v33 }
 0x665   :  { %v5593_v16 = vadd.f32 %v9185_v3, %v5464_v35 }
 0x666   :  { %v5467_v40 = vpop.xlane.xlu1 %5466  ;;  %v5570_v20 = vsel %vm5449_vm2, %v5445_v24, 0.0  ;;  %v5446_v44 = vmul.f32 %v9071_v19, %v5395_v43 }
 0x667   :  { %5638 = vst.msk [vmem:[%s9440_s11 + $0x20] sm:$0xff] %vm5633_vm3, %v5593_v16  ;;  %v5594_v22 = vadd.f32 %v9185_v3, %v5467_v40  ;;  %v5347_v2 = vpop.f32.mrb[4].mxu1  ;;  %5571 = vadd.xlane.f32.xlu0 %v5570_v20 }
 0x668   :  { %v5348_v61 = vadd.f32 %v9065_v42, %v5347_v2  ;;  %v5349_v41 = vpop.f32.mrb[5].mxu1  ;;  %v5573_v36 = vsel %vm5449_vm2, %v5446_v44, 0.0 }
 0x669   :  { %5639 = vst.msk [vmem:[%s9440_s11 + $0x28] sm:$0xff] %vm5633_vm3, %v5594_v22  ;;  %v5350_v6 = vpop.f32.mrb[6].mxu1  ;;  %5574 = vadd.xlane.f32.xlu1 %v5573_v36 }
 0x66a   :  { %v5396_v8 = vmax.f32 %v5348_v61, 0.0  ;;  %v5351_v47 = vadd.f32 %v9065_v42, %v5350_v6  ;;  %v5352_v49 = vpop.f32.mrb[7].mxu1 }
 0x66c   :  { %v5397_v21 = vmax.f32 %v5351_v47, 0.0  ;;  %v5470_v23 = vpop.xlane.xlu0 %5469  ;;  %v5447_v63 = vmul.f32 %v9071_v19, %v5396_v8 }
 0x66d   :  { %v5595_v1 = vadd.f32 %v9185_v3, %v5470_v23 }
 0x66e   :  { %v5473_v48 = vpop.xlane.xlu1 %5472  ;;  %v5576_v45 = vsel %vm5449_vm2, %v5447_v63, 0.0  ;;  %v5448_v25 = vmul.f32 %v9071_v19, %v5397_v21 }
 0x66f   :  { %5640 = vst.msk [vmem:[%s9440_s11 + $0x30] sm:$0xff] %vm5633_vm3, %v5595_v1  ;;  %v5596_v9 = vadd.f32 %v9185_v3, %v5473_v48  ;;  %5577 = vadd.xlane.f32.xlu0 %v5576_v45 }
 0x670   :  { %v5579_v42 = vsel %vm5449_vm2, %v5448_v25, 0.0 }
 0x671   :  { %5641 = vst.msk [vmem:[%s9440_s11 + $0x38] sm:$0xff] %vm5633_vm3, %v5596_v9  ;;  %5580 = vadd.xlane.f32.xlu1 %v5579_v42 }
 0x674   :  { %v5476_v11 = vpop.xlane.xlu0 %5475 }
 0x675   :  { %v5597_v54 = vadd.f32 %v9185_v3, %v5476_v11 }
 0x676   :  { %v5479_v19 = vpop.xlane.xlu1 %5478 }
 0x677   :  { %5642 = vst.msk [vmem:[%s9440_s11 + $0x40] sm:$0xff] %vm5633_vm3, %v5597_v54  ;;  %v5598_v56 = vadd.f32 %v9185_v3, %v5479_v19 }
 0x679   :  { %5643 = vst.msk [vmem:[%s9440_s11 + $0x48] sm:$0xff] %vm5633_vm3, %v5598_v56 }
 0x67c   :  { %v5482_v38 = vpop.xlane.xlu0 %5481 }
 0x67d   :  { %v5599_v14 = vadd.f32 %v9185_v3, %v5482_v38 }
 0x67e   :  { %v5485_v5 = vpop.xlane.xlu1 %5484 }
 0x67f   :  { %5644 = vst.msk [vmem:[%s9440_s11 + $0x50] sm:$0xff] %vm5633_vm3, %v5599_v14  ;;  %v5600_v0 = vadd.f32 %v9185_v3, %v5485_v5 }
 0x681   :  { %5645 = vst.msk [vmem:[%s9440_s11 + $0x58] sm:$0xff] %vm5633_vm3, %v5600_v0 }
 0x684   :  { %v5488_v7 = vpop.xlane.xlu0 %5487 }
 0x685   :  { %v5601_v10 = vadd.f32 %v9185_v3, %v5488_v7 }
 0x686   :  { %v5491_v17 = vpop.xlane.xlu1 %5490 }
 0x687   :  { %5646 = vst.msk [vmem:[%s9440_s11 + $0x60] sm:$0xff] %vm5633_vm3, %v5601_v10  ;;  %v5602_v13 = vadd.f32 %v9185_v3, %v5491_v17 }
 0x689   :  { %5647 = vst.msk [vmem:[%s9440_s11 + $0x68] sm:$0xff] %vm5633_vm3, %v5602_v13 }
 0x68c   :  { %v5494_v39 = vpop.xlane.xlu0 %5493 }
 0x68d   :  { %v5603_v51 = vadd.f32 %v9185_v3, %v5494_v39 }
 0x68e   :  { %v5497_v4 = vpop.xlane.xlu1 %5496 }
 0x68f   :  { %5648 = vst.msk [vmem:[%s9440_s11 + $0x70] sm:$0xff] %vm5633_vm3, %v5603_v51  ;;  %v5604_v18 = vadd.f32 %v9185_v3, %v5497_v4 }
 0x691   :  { %5649 = vst.msk [vmem:[%s9440_s11 + $0x78] sm:$0xff] %vm5633_vm3, %v5604_v18 }
 0x694   :  { %v5500_v32 = vpop.xlane.xlu0 %5499 }
 0x695   :  { %v5605_v31 = vadd.f32 %v9185_v3, %v5500_v32 }
 0x696   :  { %v5503_v52 = vpop.xlane.xlu1 %5502 }
 0x697   :  { %5650 = vst.msk [vmem:[%s9440_s11 + $0x80] sm:$0xff] %vm5633_vm3, %v5605_v31  ;;  %v5606_v46 = vadd.f32 %v9185_v3, %v5503_v52 }
 0x699   :  { %5651 = vst.msk [vmem:[%s9440_s11 + $0x88] sm:$0xff] %vm5633_vm3, %v5606_v46 }
 0x69c   :  { %v5506_v29 = vpop.xlane.xlu0 %5505 }
 0x69d   :  { %v5607_v53 = vadd.f32 %v9185_v3, %v5506_v29 }
 0x69e   :  { %v5509_v50 = vpop.xlane.xlu1 %5508 }
 0x69f   :  { %5652 = vst.msk [vmem:[%s9440_s11 + $0x90] sm:$0xff] %vm5633_vm3, %v5607_v53  ;;  %v5608_v30 = vadd.f32 %v9185_v3, %v5509_v50 }
 0x6a1   :  { %5653 = vst.msk [vmem:[%s9440_s11 + $0x98] sm:$0xff] %vm5633_vm3, %v5608_v30 }
 0x6a4   :  { %v5512_v59 = vpop.xlane.xlu0 %5511 }
 0x6a5   :  { %v5609_v37 = vadd.f32 %v9185_v3, %v5512_v59 }
 0x6a6   :  { %v5515_v60 = vpop.xlane.xlu1 %5514 }
 0x6a7   :  { %5654 = vst.msk [vmem:[%s9440_s11 + $0xa0] sm:$0xff] %vm5633_vm3, %v5609_v37  ;;  %v5610_v57 = vadd.f32 %v9185_v3, %v5515_v60 }
 0x6a9   :  { %5655 = vst.msk [vmem:[%s9440_s11 + $0xa8] sm:$0xff] %vm5633_vm3, %v5610_v57 }
 0x6ac   :  { %v5518_v26 = vpop.xlane.xlu0 %5517 }
 0x6ad   :  { %v5611_v34 = vadd.f32 %v9185_v3, %v5518_v26 }
 0x6ae   :  { %v5521_v55 = vpop.xlane.xlu1 %5520 }
 0x6af   :  { %5656 = vst.msk [vmem:[%s9440_s11 + $0xb0] sm:$0xff] %vm5633_vm3, %v5611_v34  ;;  %v5612_v15 = vadd.f32 %v9185_v3, %v5521_v55 }
 0x6b1   :  { %5657 = vst.msk [vmem:[%s9440_s11 + $0xb8] sm:$0xff] %vm5633_vm3, %v5612_v15 }
 0x6b4   :  { %v5524_v12 = vpop.xlane.xlu0 %5523 }
 0x6b5   :  { %v5613_v28 = vadd.f32 %v9185_v3, %v5524_v12 }
 0x6b6   :  { %v5527_v58 = vpop.xlane.xlu1 %5526 }
 0x6b7   :  { %5658 = vst.msk [vmem:[%s9440_s11 + $0xc0] sm:$0xff] %vm5633_vm3, %v5613_v28  ;;  %v5614_v33 = vadd.f32 %v9185_v3, %v5527_v58 }
 0x6b9   :  { %5659 = vst.msk [vmem:[%s9440_s11 + $0xc8] sm:$0xff] %vm5633_vm3, %v5614_v33 }
 0x6bc   :  { %v5530_v27 = vpop.xlane.xlu0 %5529 }
 0x6bd   :  { %v5615_v62 = vadd.f32 %v9185_v3, %v5530_v27 }
 0x6be   :  { %v5533_v43 = vpop.xlane.xlu1 %5532 }
 0x6bf   :  { %5660 = vst.msk [vmem:[%s9440_s11 + $0xd0] sm:$0xff] %vm5633_vm3, %v5615_v62  ;;  %v5616_v35 = vadd.f32 %v9185_v3, %v5533_v43 }
 0x6c1   :  { %5661 = vst.msk [vmem:[%s9440_s11 + $0xd8] sm:$0xff] %vm5633_vm3, %v5616_v35 }
 0x6c4   :  { %v5536_v24 = vpop.xlane.xlu0 %5535 }
 0x6c5   :  { %v5617_v16 = vadd.f32 %v9185_v3, %v5536_v24 }
 0x6c6   :  { %v5539_v40 = vpop.xlane.xlu1 %5538 }
 0x6c7   :  { %5662 = vst.msk [vmem:[%s9440_s11 + $0xe0] sm:$0xff] %vm5633_vm3, %v5617_v16  ;;  %v5618_v20 = vadd.f32 %v9185_v3, %v5539_v40 }
 0x6c9   :  { %5663 = vst.msk [vmem:[%s9440_s11 + $0xe8] sm:$0xff] %vm5633_vm3, %v5618_v20 }
 0x6cc   :  { %v5542_v44 = vpop.xlane.xlu0 %5541 }
 0x6cd   :  { %v5619_v22 = vadd.f32 %v9185_v3, %v5542_v44 }
 0x6ce   :  { %v5545_v2 = vpop.xlane.xlu1 %5544 }
 0x6cf   :  { %5664 = vst.msk [vmem:[%s9440_s11 + $0xf0] sm:$0xff] %vm5633_vm3, %v5619_v22  ;;  %v5620_v61 = vadd.f32 %v9185_v3, %v5545_v2 }
 0x6d1   :  { %5665 = vst.msk [vmem:[%s9440_s11 + $0xf8] sm:$0xff] %vm5633_vm3, %v5620_v61 }
 0x6d4   :  { %v5548_v41 = vpop.xlane.xlu0 %5547 }
 0x6d5   :  { %v5621_v36 = vadd.f32 %v9185_v3, %v5548_v41 }
 0x6d6   :  { %v5551_v6 = vpop.xlane.xlu1 %5550 }
 0x6d7   :  { %5666 = vst.msk [vmem:[%s9440_s11 + $0x100] sm:$0xff] %vm5633_vm3, %v5621_v36  ;;  %v5622_v8 = vadd.f32 %v9185_v3, %v5551_v6 }
 0x6d9   :  { %5667 = vst.msk [vmem:[%s9440_s11 + $0x108] sm:$0xff] %vm5633_vm3, %v5622_v8 }
 0x6dc   :  { %v5554_v47 = vpop.xlane.xlu0 %5553 }
 0x6dd   :  { %v5623_v49 = vadd.f32 %v9185_v3, %v5554_v47 }
 0x6de   :  { %v5557_v21 = vpop.xlane.xlu1 %5556 }
 0x6df   :  { %5668 = vst.msk [vmem:[%s9440_s11 + $0x110] sm:$0xff] %vm5633_vm3, %v5623_v49  ;;  %v5624_v23 = vadd.f32 %v9185_v3, %v5557_v21 }
 0x6e1   :  { %5669 = vst.msk [vmem:[%s9440_s11 + $0x118] sm:$0xff] %vm5633_vm3, %v5624_v23 }
 0x6e4   :  { %v5560_v63 = vpop.xlane.xlu0 %5559 }
 0x6e5   :  { %v5625_v1 = vadd.f32 %v9185_v3, %v5560_v63 }
 0x6e6   :  { %v5563_v48 = vpop.xlane.xlu1 %5562 }
 0x6e7   :  { %5670 = vst.msk [vmem:[%s9440_s11 + $0x120] sm:$0xff] %vm5633_vm3, %v5625_v1  ;;  %v5626_v45 = vadd.f32 %v9185_v3, %v5563_v48 }
 0x6e9   :  { %5671 = vst.msk [vmem:[%s9440_s11 + $0x128] sm:$0xff] %vm5633_vm3, %v5626_v45 }
 0x6ec   :  { %v5566_v25 = vpop.xlane.xlu0 %5565 }
 0x6ed   :  { %v5627_v9 = vadd.f32 %v9185_v3, %v5566_v25 }
 0x6ee   :  { %v5569_v42 = vpop.xlane.xlu1 %5568 }
 0x6ef   :  { %5672 = vst.msk [vmem:[%s9440_s11 + $0x130] sm:$0xff] %vm5633_vm3, %v5627_v9  ;;  %v5628_v11 = vadd.f32 %v9185_v3, %v5569_v42 }
 0x6f1   :  { %5673 = vst.msk [vmem:[%s9440_s11 + $0x138] sm:$0xff] %vm5633_vm3, %v5628_v11 }
 0x6f4   :  { %v5572_v54 = vpop.xlane.xlu0 %5571 }
 0x6f5   :  { %v5629_v19 = vadd.f32 %v9185_v3, %v5572_v54 }
 0x6f6   :  { %v5575_v56 = vpop.xlane.xlu1 %5574 }
 0x6f7   :  { %5674 = vst.msk [vmem:[%s9440_s11 + $0x140] sm:$0xff] %vm5633_vm3, %v5629_v19  ;;  %v5630_v38 = vadd.f32 %v9185_v3, %v5575_v56 }
 0x6f9   :  { %5675 = vst.msk [vmem:[%s9440_s11 + $0x148] sm:$0xff] %vm5633_vm3, %v5630_v38 }
 0x6fc   :  { %v5578_v14 = vpop.xlane.xlu0 %5577 }
 0x6fd   :  { %v5631_v5 = vadd.f32 %v9185_v3, %v5578_v14 }
 0x6fe   :  { %v5581_v0 = vpop.xlane.xlu1 %5580 }
 0x6ff   :  { %5676 = vst.msk [vmem:[%s9440_s11 + $0x150] sm:$0xff] %vm5633_vm3, %v5631_v5  ;;  %v5632_v7 = vadd.f32 %v9185_v3, %v5581_v0 }
 0x701   :  { %5677 = vst.msk [vmem:[%s9440_s11 + $0x158] sm:$0xff] %vm5633_vm3, %v5632_v7 }

</bundles_post_ra>
